<compile_context>
chip_gen: v5e
topology: v5e:2x2
jax: 0.10.0
libtpu: 0.0.40
codegen_flags: <defaults>
</compile_context>

<pallas_src>
import functools

import numpy as np
import jax
import jax.numpy as jnp
from jax.experimental import pallas as pl
from jax.experimental.pallas import tpu as pltpu

EPS = 1e-5          # nn.BatchNorm2d default eps
_ROW_UNIT = 16      # row-tile granularity (safe for bf16 sublane packing)


# ------------------------------ tiling helpers ----------------------------- #

def _pad128(n):
    return -(-n // 128) * 128


def _round_up(n, m):
    return -(-n // m) * m


def _vmem_budget():
    """(vmem_limit_bytes, per-call byte budget) for the current TPU."""
    try:
        kind = jax.devices()[0].device_kind.lower()
    except Exception:
        kind = ""
    if "v5 lite" in kind or "v5e" in kind or "v6" in kind:
        # 128-MiB VMEM parts: bigger tiles -> fewer grid steps, longer DMAs.
        return 96 * 1024 * 1024, 14 * 1024 * 1024
    # v7x (64 MiB per TensorCore) and unknown parts: stay conservative.
    return 40 * 1024 * 1024, 6 * 1024 * 1024


def _pick_rows(nrows, per_row_bytes, fixed_bytes, budget):
    """Largest multiple-of-_ROW_UNIT row tile whose double-buffered blocks fit
    the budget; when everything fits in one block, still split into >=2 blocks
    so v7x's second TensorCore gets work."""
    avail = max(0, budget // 2 - fixed_bytes)
    t = (avail // max(1, per_row_bytes)) // _ROW_UNIT * _ROW_UNIT
    t = max(_ROW_UNIT, min(t, 4096))
    if nrows <= t:
        if nrows >= 2 * _ROW_UNIT:
            return _round_up(-(-nrows // 2), _ROW_UNIT)
        return nrows
    return t


# ------------------------------ Pallas kernels ------------------------------ #

def _linear_kernel(x_ref, w_ref, b_ref, o_ref):
    acc = jnp.dot(x_ref[...], w_ref[...], preferred_element_type=jnp.float32)
    o_ref[...] = (acc + b_ref[...]).astype(o_ref.dtype)


def linear(x, w, b, *, vmem_limit, budget):
    """(B,L) @ (L,H) + (1,H) -> bf16, tiled over H."""
    B, L = x.shape
    H = w.shape[1]
    per_col = (L + 2 * B + 1) * 4
    fixed = B * _pad128(L) * 4
    avail = max(0, budget // 2 - fixed)
    TH = max(128, (avail // max(1, per_col)) // 128 * 128)
    TH = min(TH, 8192)
    if H <= TH:
        TH = H
    return pl.pallas_call(
        _linear_kernel,
        out_shape=jax.ShapeDtypeStruct((B, H), jnp.bfloat16),
        grid=(pl.cdiv(H, TH),),
        in_specs=[pl.BlockSpec((B, L), lambda i: (0, 0)),
                  pl.BlockSpec((L, TH), lambda i: (0, i)),
                  pl.BlockSpec((1, TH), lambda i: (0, i))],
        out_specs=pl.BlockSpec((B, TH), lambda i: (0, i)),
        compiler_params=pltpu.CompilerParams(
            dimension_semantics=("parallel",),
            vmem_limit_bytes=vmem_limit),
    )(x, w, b)


def _stats_kernel(x_ref, w_ref, stats_ref, *, p_total, tp, needs_mask):
    # ConvTranspose2d(k=2,s=2) as a channels matmul; emit per-block partial
    # (sum, sum-of-squares) column stats.  The product is NOT written to HBM.
    y = jnp.dot(x_ref[...], w_ref[...], preferred_element_type=jnp.float32)
    if needs_mask:
        row = (jax.lax.broadcasted_iota(jnp.int32, y.shape, 0)
               + pl.program_id(0) * tp)
        y = jnp.where(row < p_total, y, 0.0)
    stats_ref[0, 0:1, :] = jnp.sum(y, axis=0, keepdims=True)
    stats_ref[0, 1:2, :] = jnp.sum(y * y, axis=0, keepdims=True)


def deconv_stats(x_flat, w_flat, *, vmem_limit, budget):
    """Per-column (sum, sumsq) of x_flat @ w_flat (stats-only pass)."""
    P, Cin = x_flat.shape
    N = w_flat.shape[1]                                   # 4 * Cout
    per_row = _pad128(Cin) * 2 + _pad128(N) * 4           # x (bf16) + f32 product
    fixed = _round_up(Cin, 16) * _pad128(N) * 2 + 2 * _pad128(N) * 4
    TP = _pick_rows(P, per_row, fixed, budget)
    G = pl.cdiv(P, TP)
    kern = functools.partial(_stats_kernel, p_total=P, tp=TP,
                             needs_mask=(P % TP != 0))
    stats = pl.pallas_call(
        kern,
        out_shape=jax.ShapeDtypeStruct((G, 2, N), jnp.float32),
        grid=(G,),
        in_specs=[pl.BlockSpec((TP, Cin), lambda i: (i, 0)),
                  pl.BlockSpec((Cin, N), lambda i: (0, 0))],
        out_specs=pl.BlockSpec((1, 2, N), lambda i: (i, 0, 0)),
        compiler_params=pltpu.CompilerParams(
            dimension_semantics=("parallel",),
            vmem_limit_bytes=vmem_limit),
    )(x_flat, w_flat)
    return stats.sum(axis=0)                              # (2, N)


def _deconv_bn_act_kernel(x_ref, w0_ref, w1_ref, sc_ref, sh_ref, o_ref, *, act):
    # Recompute the deconv matmul (recompute fusion), then BN + activation.
    # w0/w1 hold the kernel-row-0 / kernel-row-1 halves of the ConvT weight,
    # so each input pixel's two output rows land in separate parity planes.
    x = x_ref[...]
    top = jnp.dot(x, w0_ref[...], preferred_element_type=jnp.float32)
    bot = jnp.dot(x, w1_ref[...], preferred_element_type=jnp.float32)
    sc = sc_ref[...]
    sh = sh_ref[...]
    top = top * sc + sh
    bot = bot * sc + sh
    if act == "relu":
        top = jnp.maximum(top, 0.0)
        bot = jnp.maximum(bot, 0.0)
    else:
        top = jax.nn.sigmoid(top)
        bot = jax.nn.sigmoid(bot)
    o_ref[0, :, :] = top.astype(o_ref.dtype)
    o_ref[1, :, :] = bot.astype(o_ref.dtype)


def deconv_bn_act(x_flat, w0, w1, sc, sh, *, act, out_dtype, vmem_limit, budget):
    """Fused recompute-matmul + BatchNorm + activation; output (2, P, 2*Cout)."""
    P, Cin = x_flat.shape
    C2 = w0.shape[1]                                      # 2 * Cout
    out_isz = jnp.dtype(out_dtype).itemsize
    per_row = (_pad128(Cin) * 2                           # x (bf16)
               + 2 * _pad128(C2) * out_isz                # two output planes
               + 2 * _pad128(C2) * 4)                     # f32 top/bot
    fixed = (2 * _round_up(Cin, 16) * _pad128(C2) * 2     # w0, w1 (bf16)
             + 2 * 8 * _pad128(C2) * 4)                   # scale, shift
    TP = _pick_rows(P, per_row, fixed, budget)
    G = pl.cdiv(P, TP)
    kern = functools.partial(_deconv_bn_act_kernel, act=act)
    return pl.pallas_call(
        kern,
        out_shape=jax.ShapeDtypeStruct((2, P, C2), out_dtype),
        grid=(G,),
        in_specs=[pl.BlockSpec((TP, Cin), lambda i: (i, 0)),
                  pl.BlockSpec((Cin, C2), lambda i: (0, 0)),
                  pl.BlockSpec((Cin, C2), lambda i: (0, 0)),
                  pl.BlockSpec((1, C2), lambda i: (0, 0)),
                  pl.BlockSpec((1, C2), lambda i: (0, 0))],
        out_specs=pl.BlockSpec((2, TP, C2), lambda i: (0, i, 0)),
        compiler_params=pltpu.CompilerParams(
            dimension_semantics=("parallel",),
            vmem_limit_bytes=vmem_limit),
    )(x_flat, w0, w1, sc, sh)


# ------------------------------- model wrapper ------------------------------ #

def calculate_channel_sizes(image_channels, max_filters, num_layers):
    channel_sizes = [(image_channels, max_filters // 2 ** (num_layers - 1))]
    for _ in range(1, num_layers):
        prev = channel_sizes[-1][-1]
        channel_sizes.append((prev, prev * 2))
    return channel_sizes


def init_params(key, *, hidden_dim, image_channels, max_filters,
                num_layers, latent_dim):
    sizes = calculate_channel_sizes(image_channels, max_filters, num_layers)
    keys = jax.random.split(key, 2 + num_layers)
    params = {
        "lin_w": (jax.random.normal(keys[0], (latent_dim, hidden_dim), jnp.float32)
                  / np.sqrt(latent_dim)),
        "lin_b": jax.random.normal(keys[1], (1, hidden_dim), jnp.float32) * 0.01,
        "convs": [],
    }
    for i, (cout, cin) in enumerate(sizes[::-1]):
        w = (jax.random.normal(keys[2 + i], (cin, cout, 2, 2), jnp.float32)
             / np.sqrt(cin * 4))
        gamma = jnp.ones((cout,), jnp.float32)    # BatchNorm2d default init
        beta = jnp.zeros((cout,), jnp.float32)
        params["convs"].append((w, gamma, beta))
    return params


def decoder_forward(params, x, *, image_size, max_filters):
    B = x.shape[0]
    C0 = max_filters
    Hs = image_size
    L_lat = params["lin_w"].shape[0]
    num_layers = len(params["convs"])
    vmem_limit, budget = _vmem_budget()

    # Fold nn.Unflatten's NCHW layout + the NHWC transpose into the linear
    # weight / bias columns (parameter-only preprocessing; hoisted under jit).
    w_nhwc = (params["lin_w"].reshape(L_lat, C0, Hs, Hs)
              .transpose(0, 2, 3, 1).reshape(L_lat, C0 * Hs * Hs))
    b_nhwc = (params["lin_b"].reshape(1, C0, Hs, Hs)
              .transpose(0, 2, 3, 1).reshape(1, C0 * Hs * Hs))

    h = linear(x, w_nhwc, b_nhwc, vmem_limit=vmem_limit, budget=budget)
    h = h.reshape(B * Hs * Hs, C0)          # (P0, Cin) channels-last, bf16

    for idx, (w, gamma, beta) in enumerate(params["convs"]):
        cin, cout = w.shape[0], w.shape[1]
        P = h.shape[0]
        # (Cin, Cout, kh, kw) -> (Cin, kh, kw, Cout) -> (Cin, 4*Cout), bf16.
        w_flat = (jnp.transpose(w, (0, 2, 3, 1))
                  .reshape(cin, 4 * cout).astype(jnp.bfloat16))

        # Pass 1: batch-norm statistics (training-mode, biased variance).
        stats = deconv_stats(h, w_flat, vmem_limit=vmem_limit, budget=budget)
        n_elem = 4.0 * P                     # = B * (2Hs)^2 output pixels
        s = stats.reshape(2, 4, cout).sum(axis=1)          # (2, Cout)
        mean = s[0] / n_elem
        var = s[1] / n_elem - mean * mean
        # TODO(synk): E[y^2]-E[y]^2 can lose precision when |mean|>>std; a
        # shifted two-pass reduction would be safer for extreme activations.
        scale = gamma / jnp.sqrt(var + EPS)
        shift = beta - mean * scale
        sc2 = jnp.tile(scale, 2).reshape(1, 2 * cout).astype(jnp.float32)
        sh2 = jnp.tile(shift, 2).reshape(1, 2 * cout).astype(jnp.float32)

        # Pass 2: recompute matmul + BN + activation, parity-split output.
        act = "relu" if idx != num_layers - 1 else "sigmoid"
        out_dtype = jnp.bfloat16 if idx != num_layers - 1 else jnp.float32
        w0 = w_flat[:, :2 * cout]            # kernel row a=0  (cols (kw, cout))
        w1 = w_flat[:, 2 * cout:]            # kernel row a=1
        o = deconv_bn_act(h, w0, w1, sc2, sh2, act=act, out_dtype=out_dtype,
                          vmem_limit=vmem_limit, budget=budget)   # (2, P, 2C)
        h = o.reshape(4 * P, cout)           # parity-major pixel rows (free)

    # h is (B * H_out * W_out, C_out) with rows in parity-permuted order:
    # flat digits (a_{L-1}, ..., a_0, b, i0, W_out, C).  One XLA transpose
    # simultaneously undoes the permutation and converts NHWC -> NCHW.
    L = num_layers
    C_out = params["convs"][-1][0].shape[1]
    H0 = image_size
    W_out = image_size * 2 ** L
    y = h.reshape((2,) * L + (B, H0, W_out, C_out))
    perm = (L, L + 3, L + 1) + tuple(range(L - 1, -1, -1)) + (L + 2,)
    return y.transpose(perm).reshape(B, C_out, W_out, W_out)


# ----------------------------- pure-JAX reference --------------------------- #
# Mirrors the kernel's bf16 storage of activations / deconv weights (with f32
# accumulation and f32 BatchNorm), so the comparison isolates kernel mechanics.

def ref_forward(params, x, *, image_size, max_filters):
    B = x.shape[0]
    Hs = image_size
    num_layers = len(params["convs"])
    h = (x @ params["lin_w"] + params["lin_b"]).astype(jnp.bfloat16)
    h = h.reshape(B, max_filters, Hs, Hs).transpose(0, 2, 3, 1)     # NHWC bf16
    for i, (w, gamma, beta) in enumerate(params["convs"]):
        cin, cout = w.shape[0], w.shape[1]
        wf = (jnp.transpose(w, (0, 2, 3, 1))
              .reshape(cin, 4 * cout).astype(jnp.bfloat16))
        y = jnp.dot(h.reshape(-1, cin), wf, preferred_element_type=jnp.float32)
        y = (y.reshape(B, Hs, Hs, 2, 2, cout)
             .transpose(0, 1, 3, 2, 4, 5).reshape(B, 2 * Hs, 2 * Hs, cout))
        mean = y.mean(axis=(0, 1, 2))
        var = y.var(axis=(0, 1, 2))
        yn = (y - mean) / jnp.sqrt(var + EPS) * gamma + beta
        a = jnp.maximum(yn, 0.0) if i != num_layers - 1 else jax.nn.sigmoid(yn)
        h = a.astype(jnp.bfloat16) if i != num_layers - 1 else a
        Hs *= 2
    return h.transpose(0, 3, 1, 2)


# ----------------------------------- main ----------------------------------- #

if __name__ == "__main__":
    # Small config consistent with the module:
    # hidden_dim must equal max_filters * image_size**2 for nn.Unflatten.
    B = 2
    image_size = 2
    max_filters = 32
    num_layers = 4
    latent_dim = 16
    image_channels = 3
    hidden_dim = max_filters * image_size * image_size

    key = jax.random.PRNGKey(0)
    pkey, xkey = jax.random.split(key)
    params = init_params(pkey, hidden_dim=hidden_dim,
                         image_channels=image_channels,
                         max_filters=max_filters, num_layers=num_layers,
                         latent_dim=latent_dim)
    x = jax.random.normal(xkey, (B, latent_dim), jnp.float32)

    fwd = jax.jit(functools.partial(decoder_forward, image_size=image_size,
                                    max_filters=max_filters))
    out = jax.block_until_ready(fwd(params, x))

    expected_shape = (B, image_channels,
                      image_size * 2 ** num_layers, image_size * 2 ** num_layers)
    assert out.shape == expected_shape, out.shape

    ref = ref_forward(params, x, image_size=image_size, max_filters=max_filters)
    np.testing.assert_allclose(np.asarray(out), np.asarray(ref),
                               atol=2e-3, rtol=2e-3)
    print("KERNEL_OK")
</pallas_src>

<mosaic_0001>
module attributes {stable_mosaic.version = 11 : i64} {
  func.func @_stats_kernel(%arg0: i32, %arg1: memref<8x32xbf16, #tpu.memory_space<vmem>>, %arg2: memref<32x64xbf16, #tpu.memory_space<vmem>>, %arg3: memref<1x2x64xf32, #tpu.memory_space<vmem>>) attributes {dimension_semantics = [#tpu.dimension_semantics<parallel>], iteration_bounds = array<i64: 1>, scalar_prefetch = 0 : i64, scratch_operands = 0 : i64, tpu.core_type = #tpu.core_type<tc>, window_params = [{transform_indices = @transform_0, window_bounds = array<i64: 8, 32>}, {pipeline_mode = #tpu.pipeline_mode<synchronous>, transform_indices = @transform_1, window_bounds = array<i64: 32, 64>}, {transform_indices = @transform_2, window_bounds = array<i64: 1, 2, 64>}]} {
    %c0 = arith.constant 0 : index
    %c0_0 = arith.constant 0 : index
    %0 = vector.load %arg1[%c0, %c0_0] : memref<8x32xbf16, #tpu.memory_space<vmem>>, vector<8x32xbf16>
    %c0_1 = arith.constant 0 : index
    %c0_2 = arith.constant 0 : index
    %1 = vector.load %arg2[%c0_1, %c0_2] : memref<32x64xbf16, #tpu.memory_space<vmem>>, vector<32x64xbf16>
    %cst = arith.constant dense<0.000000e+00> : vector<8x64xf32>
    %2 = tpu.matmul %0, %1, %cst {dimension_numbers = #tpu.dot_dimension_numbers<[1], [0], [0], [1], [0, 0, 1, 1], [], []>} : vector<8x32xbf16>, vector<32x64xbf16>, vector<8x64xf32> -> vector<8x64xf32>
    %cst_3 = arith.constant dense<0.000000e+00> : vector<64xf32>
    %3 = vector.multi_reduction <add>, %2, %cst_3 [0] : vector<8x64xf32> to vector<64xf32>
    %4 = vector.shape_cast %3 : vector<64xf32> to vector<1x64xf32>
    %c0_4 = arith.constant 0 : index
    %c0_5 = arith.constant 0 : index
    %c0_6 = arith.constant 0 : index
    %5 = vector.load %arg3[%c0_4, %c0_5, %c0_6] : memref<1x2x64xf32, #tpu.memory_space<vmem>>, vector<1x1x64xf32>
    %6 = vector.shape_cast %5 : vector<1x1x64xf32> to vector<1x64xf32>
    %7 = vector.shape_cast %4 : vector<1x64xf32> to vector<1x1x64xf32>
    tpu.vector_store %arg3[%c0_4, %c0_5, %c0_6], %7 {strides = array<i32>} : memref<1x2x64xf32, #tpu.memory_space<vmem>>, vector<1x1x64xf32>,
    %8 = arith.mulf %2, %2 : vector<8x64xf32>
    %cst_7 = arith.constant dense<0.000000e+00> : vector<64xf32>
    %9 = vector.multi_reduction <add>, %8, %cst_7 [0] : vector<8x64xf32> to vector<64xf32>
    %10 = vector.shape_cast %9 : vector<64xf32> to vector<1x64xf32>
    %c0_8 = arith.constant 0 : index
    %c1 = arith.constant 1 : index
    %c0_9 = arith.constant 0 : index
    %11 = vector.load %arg3[%c0_8, %c1, %c0_9] : memref<1x2x64xf32, #tpu.memory_space<vmem>>, vector<1x1x64xf32>
    %12 = vector.shape_cast %11 : vector<1x1x64xf32> to vector<1x64xf32>
    %13 = vector.shape_cast %10 : vector<1x64xf32> to vector<1x1x64xf32>
    tpu.vector_store %arg3[%c0_8, %c1, %c0_9], %13 {strides = array<i32>} : memref<1x2x64xf32, #tpu.memory_space<vmem>>, vector<1x1x64xf32>,
    return
  }
  func.func @transform_0(%arg0: i32) -> (i32, i32) {
    %c0_i32 = arith.constant 0 : i32
    %c0_i32_0 = arith.constant 0 : i32
    return %arg0, %c0_i32 : i32, i32
  }
  func.func @transform_1(%arg0: i32) -> (i32, i32) {
    %c0_i32 = arith.constant 0 : i32
    %c0_i32_0 = arith.constant 0 : i32
    %c0_i32_1 = arith.constant 0 : i32
    return %c0_i32, %c0_i32_0 : i32, i32
  }
  func.func @transform_2(%arg0: i32) -> (i32, i32, i32) {
    %c0_i32 = arith.constant 0 : i32
    %c0_i32_0 = arith.constant 0 : i32
    %c0_i32_1 = arith.constant 0 : i32
    return %arg0, %c0_i32, %c0_i32_0 : i32, i32, i32
  }
}

module attributes {stable_mosaic.version = 11 : i64} {
  func.func @_linear_kernel(%arg0: i32, %arg1: memref<2x16xf32, #tpu.memory_space<vmem>>, %arg2: memref<16x128xf32, #tpu.memory_space<vmem>>, %arg3: memref<1x128xf32, #tpu.memory_space<vmem>>, %arg4: memref<2x128xbf16, #tpu.memory_space<vmem>>) attributes {dimension_semantics = [#tpu.dimension_semantics<parallel>], iteration_bounds = array<i64: 1>, scalar_prefetch = 0 : i64, scratch_operands = 0 : i64, tpu.core_type = #tpu.core_type<tc>, window_params = [{pipeline_mode = #tpu.pipeline_mode<synchronous>, transform_indices = @transform_0, window_bounds = array<i64: 2, 16>}, {transform_indices = @transform_1, window_bounds = array<i64: 16, 128>}, {transform_indices = @transform_2, window_bounds = array<i64: 1, 128>}, {transform_indices = @transform_3, window_bounds = array<i64: 2, 128>}]} {
    %c0 = arith.constant 0 : index
    %c0_0 = arith.constant 0 : index
    %0 = vector.load %arg1[%c0, %c0_0] : memref<2x16xf32, #tpu.memory_space<vmem>>, vector<2x16xf32>
    %c0_1 = arith.constant 0 : index
    %c0_2 = arith.constant 0 : index
    %1 = vector.load %arg2[%c0_1, %c0_2] : memref<16x128xf32, #tpu.memory_space<vmem>>, vector<16x128xf32>
    %cst = arith.constant dense<0.000000e+00> : vector<2x128xf32>
    %2 = tpu.matmul %0, %1, %cst {dimension_numbers = #tpu.dot_dimension_numbers<[1], [0], [0], [1], [0, 0, 1, 1], [], []>} : vector<2x16xf32>, vector<16x128xf32>, vector<2x128xf32> -> vector<2x128xf32>
    %c0_3 = arith.constant 0 : index
    %c0_4 = arith.constant 0 : index
    %3 = vector.load %arg3[%c0_3, %c0_4] : memref<1x128xf32, #tpu.memory_space<vmem>>, vector<1x128xf32>
    %4 = vector.broadcast %3 : vector<1x128xf32> to vector<2x128xf32>
    %5 = arith.addf %2, %4 : vector<2x128xf32>
    %6 = arith.truncf %5 : vector<2x128xf32> to vector<2x128xbf16>
    %c0_5 = arith.constant 0 : index
    %c0_6 = arith.constant 0 : index
    %7 = vector.load %arg4[%c0_5, %c0_6] : memref<2x128xbf16, #tpu.memory_space<vmem>>, vector<2x128xbf16>
    tpu.vector_store %arg4[%c0_5, %c0_6], %6 {strides = array<i32>} : memref<2x128xbf16, #tpu.memory_space<vmem>>, vector<2x128xbf16>,
    return
  }
  func.func @transform_0(%arg0: i32) -> (i32, i32) {
    %c0_i32 = arith.constant 0 : i32
    %c0_i32_0 = arith.constant 0 : i32
    %c0_i32_1 = arith.constant 0 : i32
    return %c0_i32, %c0_i32_0 : i32, i32
  }
  func.func @transform_1(%arg0: i32) -> (i32, i32) {
    %c0_i32 = arith.constant 0 : i32
    %c0_i32_0 = arith.constant 0 : i32
    return %c0_i32, %arg0 : i32, i32
  }
  func.func @transform_2(%arg0: i32) -> (i32, i32) {
    %c0_i32 = arith.constant 0 : i32
    %c0_i32_0 = arith.constant 0 : i32
    return %c0_i32, %arg0 : i32, i32
  }
  func.func @transform_3(%arg0: i32) -> (i32, i32) {
    %c0_i32 = arith.constant 0 : i32
    %c0_i32_0 = arith.constant 0 : i32
    return %c0_i32, %arg0 : i32, i32
  }
}

module attributes {stable_mosaic.version = 11 : i64} {
  func.func @_deconv_bn_act_kernel(%arg0: i32, %arg1: memref<8x32xbf16, #tpu.memory_space<vmem>>, %arg2: memref<32x32xbf16, #tpu.memory_space<vmem>>, %arg3: memref<32x32xbf16, #tpu.memory_space<vmem>>, %arg4: memref<1x32xf32, #tpu.memory_space<vmem>>, %arg5: memref<1x32xf32, #tpu.memory_space<vmem>>, %arg6: memref<2x8x32xbf16, #tpu.memory_space<vmem>>) attributes {dimension_semantics = [#tpu.dimension_semantics<parallel>], iteration_bounds = array<i64: 1>, scalar_prefetch = 0 : i64, scratch_operands = 0 : i64, tpu.core_type = #tpu.core_type<tc>, window_params = [{transform_indices = @transform_0, window_bounds = array<i64: 8, 32>}, {pipeline_mode = #tpu.pipeline_mode<synchronous>, transform_indices = @transform_1, window_bounds = array<i64: 32, 32>}, {pipeline_mode = #tpu.pipeline_mode<synchronous>, transform_indices = @transform_2, window_bounds = array<i64: 32, 32>}, {pipeline_mode = #tpu.pipeline_mode<synchronous>, transform_indices = @transform_3, window_bounds = array<i64: 1, 32>}, {pipeline_mode = #tpu.pipeline_mode<synchronous>, transform_indices = @transform_4, window_bounds = array<i64: 1, 32>}, {transform_indices = @transform_5, window_bounds = array<i64: 2, 8, 32>}]} {
    %c0 = arith.constant 0 : index
    %c0_0 = arith.constant 0 : index
    %0 = vector.load %arg1[%c0, %c0_0] : memref<8x32xbf16, #tpu.memory_space<vmem>>, vector<8x32xbf16>
    %c0_1 = arith.constant 0 : index
    %c0_2 = arith.constant 0 : index
    %1 = vector.load %arg2[%c0_1, %c0_2] : memref<32x32xbf16, #tpu.memory_space<vmem>>, vector<32x32xbf16>
    %cst = arith.constant dense<0.000000e+00> : vector<8x32xf32>
    %2 = tpu.matmul %0, %1, %cst {dimension_numbers = #tpu.dot_dimension_numbers<[1], [0], [0], [1], [0, 0, 1, 1], [], []>} : vector<8x32xbf16>, vector<32x32xbf16>, vector<8x32xf32> -> vector<8x32xf32>
    %c0_3 = arith.constant 0 : index
    %c0_4 = arith.constant 0 : index
    %3 = vector.load %arg3[%c0_3, %c0_4] : memref<32x32xbf16, #tpu.memory_space<vmem>>, vector<32x32xbf16>
    %cst_5 = arith.constant dense<0.000000e+00> : vector<8x32xf32>
    %4 = tpu.matmul %0, %3, %cst_5 {dimension_numbers = #tpu.dot_dimension_numbers<[1], [0], [0], [1], [0, 0, 1, 1], [], []>} : vector<8x32xbf16>, vector<32x32xbf16>, vector<8x32xf32> -> vector<8x32xf32>
    %c0_6 = arith.constant 0 : index
    %c0_7 = arith.constant 0 : index
    %5 = vector.load %arg4[%c0_6, %c0_7] : memref<1x32xf32, #tpu.memory_space<vmem>>, vector<1x32xf32>
    %c0_8 = arith.constant 0 : index
    %c0_9 = arith.constant 0 : index
    %6 = vector.load %arg5[%c0_8, %c0_9] : memref<1x32xf32, #tpu.memory_space<vmem>>, vector<1x32xf32>
    %7 = vector.broadcast %5 : vector<1x32xf32> to vector<8x32xf32>
    %8 = arith.mulf %2, %7 : vector<8x32xf32>
    %9 = vector.broadcast %6 : vector<1x32xf32> to vector<8x32xf32>
    %10 = arith.addf %8, %9 : vector<8x32xf32>
    %11 = vector.broadcast %5 : vector<1x32xf32> to vector<8x32xf32>
    %12 = arith.mulf %4, %11 : vector<8x32xf32>
    %13 = vector.broadcast %6 : vector<1x32xf32> to vector<8x32xf32>
    %14 = arith.addf %12, %13 : vector<8x32xf32>
    %cst_10 = arith.constant 0.000000e+00 : f32
    %15 = vector.broadcast %cst_10 : f32 to vector<8x32xf32>
    %16 = arith.maximumf %10, %15 : vector<8x32xf32>
    %cst_11 = arith.constant 0.000000e+00 : f32
    %17 = vector.broadcast %cst_11 : f32 to vector<8x32xf32>
    %18 = arith.maximumf %14, %17 : vector<8x32xf32>
    %19 = arith.truncf %16 : vector<8x32xf32> to vector<8x32xbf16>
    %c0_12 = arith.constant 0 : index
    %c0_13 = arith.constant 0 : index
    %c0_14 = arith.constant 0 : index
    %20 = vector.load %arg6[%c0_12, %c0_13, %c0_14] : memref<2x8x32xbf16, #tpu.memory_space<vmem>>, vector<1x8x32xbf16>
    %21 = vector.shape_cast %20 : vector<1x8x32xbf16> to vector<8x32xbf16>
    %22 = vector.shape_cast %19 : vector<8x32xbf16> to vector<1x8x32xbf16>
    tpu.vector_store %arg6[%c0_12, %c0_13, %c0_14], %22 {strides = array<i32>} : memref<2x8x32xbf16, #tpu.memory_space<vmem>>, vector<1x8x32xbf16>,
    %23 = arith.truncf %18 : vector<8x32xf32> to vector<8x32xbf16>
    %c1 = arith.constant 1 : index
    %c0_15 = arith.constant 0 : index
    %c0_16 = arith.constant 0 : index
    %24 = vector.load %arg6[%c1, %c0_15, %c0_16] : memref<2x8x32xbf16, #tpu.memory_space<vmem>>, vector<1x8x32xbf16>
    %25 = vector.shape_cast %24 : vector<1x8x32xbf16> to vector<8x32xbf16>
    %26 = vector.shape_cast %23 : vector<8x32xbf16> to vector<1x8x32xbf16>
    tpu.vector_store %arg6[%c1, %c0_15, %c0_16], %26 {strides = array<i32>} : memref<2x8x32xbf16, #tpu.memory_space<vmem>>, vector<1x8x32xbf16>,
    return
  }
  func.func @transform_0(%arg0: i32) -> (i32, i32) {
    %c0_i32 = arith.constant 0 : i32
    %c0_i32_0 = arith.constant 0 : i32
    return %arg0, %c0_i32 : i32, i32
  }
  func.func @transform_1(%arg0: i32) -> (i32, i32) {
    %c0_i32 = arith.constant 0 : i32
    %c0_i32_0 = arith.constant 0 : i32
    %c0_i32_1 = arith.constant 0 : i32
    return %c0_i32, %c0_i32_0 : i32, i32
  }
  func.func @transform_2(%arg0: i32) -> (i32, i32) {
    %c0_i32 = arith.constant 0 : i32
    %c0_i32_0 = arith.constant 0 : i32
    %c0_i32_1 = arith.constant 0 : i32
    return %c0_i32, %c0_i32_0 : i32, i32
  }
  func.func @transform_3(%arg0: i32) -> (i32, i32) {
    %c0_i32 = arith.constant 0 : i32
    %c0_i32_0 = arith.constant 0 : i32
    %c0_i32_1 = arith.constant 0 : i32
    return %c0_i32, %c0_i32_0 : i32, i32
  }
  func.func @transform_4(%arg0: i32) -> (i32, i32) {
    %c0_i32 = arith.constant 0 : i32
    %c0_i32_0 = arith.constant 0 : i32
    %c0_i32_1 = arith.constant 0 : i32
    return %c0_i32, %c0_i32_0 : i32, i32
  }
  func.func @transform_5(%arg0: i32) -> (i32, i32, i32) {
    %c0_i32 = arith.constant 0 : i32
    %c0_i32_0 = arith.constant 0 : i32
    %c0_i32_1 = arith.constant 0 : i32
    return %c0_i32, %arg0, %c0_i32_0 : i32, i32, i32
  }
}

module attributes {stable_mosaic.version = 11 : i64} {
  func.func @_stats_kernel(%arg0: i32, %arg1: memref<16x16xbf16, #tpu.memory_space<vmem>>, %arg2: memref<16x32xbf16, #tpu.memory_space<vmem>>, %arg3: memref<1x2x32xf32, #tpu.memory_space<vmem>>) attributes {dimension_semantics = [#tpu.dimension_semantics<parallel>], iteration_bounds = array<i64: 2>, scalar_prefetch = 0 : i64, scratch_operands = 0 : i64, tpu.core_type = #tpu.core_type<tc>, window_params = [{transform_indices = @transform_0, window_bounds = array<i64: 16, 16>}, {pipeline_mode = #tpu.pipeline_mode<synchronous>, transform_indices = @transform_1, window_bounds = array<i64: 16, 32>}, {transform_indices = @transform_2, window_bounds = array<i64: 1, 2, 32>}]} {
    %c0 = arith.constant 0 : index
    %c0_0 = arith.constant 0 : index
    %0 = vector.load %arg1[%c0, %c0_0] : memref<16x16xbf16, #tpu.memory_space<vmem>>, vector<16x16xbf16>
    %c0_1 = arith.constant 0 : index
    %c0_2 = arith.constant 0 : index
    %1 = vector.load %arg2[%c0_1, %c0_2] : memref<16x32xbf16, #tpu.memory_space<vmem>>, vector<16x32xbf16>
    %cst = arith.constant dense<0.000000e+00> : vector<16x32xf32>
    %2 = tpu.matmul %0, %1, %cst {dimension_numbers = #tpu.dot_dimension_numbers<[1], [0], [0], [1], [0, 0, 1, 1], [], []>} : vector<16x16xbf16>, vector<16x32xbf16>, vector<16x32xf32> -> vector<16x32xf32>
    %cst_3 = arith.constant dense<0.000000e+00> : vector<32xf32>
    %3 = vector.multi_reduction <add>, %2, %cst_3 [0] : vector<16x32xf32> to vector<32xf32>
    %4 = vector.shape_cast %3 : vector<32xf32> to vector<1x32xf32>
    %c0_4 = arith.constant 0 : index
    %c0_5 = arith.constant 0 : index
    %c0_6 = arith.constant 0 : index
    %5 = vector.load %arg3[%c0_4, %c0_5, %c0_6] : memref<1x2x32xf32, #tpu.memory_space<vmem>>, vector<1x1x32xf32>
    %6 = vector.shape_cast %5 : vector<1x1x32xf32> to vector<1x32xf32>
    %7 = vector.shape_cast %4 : vector<1x32xf32> to vector<1x1x32xf32>
    tpu.vector_store %arg3[%c0_4, %c0_5, %c0_6], %7 {strides = array<i32>} : memref<1x2x32xf32, #tpu.memory_space<vmem>>, vector<1x1x32xf32>,
    %8 = arith.mulf %2, %2 : vector<16x32xf32>
    %cst_7 = arith.constant dense<0.000000e+00> : vector<32xf32>
    %9 = vector.multi_reduction <add>, %8, %cst_7 [0] : vector<16x32xf32> to vector<32xf32>
    %10 = vector.shape_cast %9 : vector<32xf32> to vector<1x32xf32>
    %c0_8 = arith.constant 0 : index
    %c1 = arith.constant 1 : index
    %c0_9 = arith.constant 0 : index
    %11 = vector.load %arg3[%c0_8, %c1, %c0_9] : memref<1x2x32xf32, #tpu.memory_space<vmem>>, vector<1x1x32xf32>
    %12 = vector.shape_cast %11 : vector<1x1x32xf32> to vector<1x32xf32>
    %13 = vector.shape_cast %10 : vector<1x32xf32> to vector<1x1x32xf32>
    tpu.vector_store %arg3[%c0_8, %c1, %c0_9], %13 {strides = array<i32>} : memref<1x2x32xf32, #tpu.memory_space<vmem>>, vector<1x1x32xf32>,
    return
  }
  func.func @transform_0(%arg0: i32) -> (i32, i32) {
    %c0_i32 = arith.constant 0 : i32
    %c0_i32_0 = arith.constant 0 : i32
    return %arg0, %c0_i32 : i32, i32
  }
  func.func @transform_1(%arg0: i32) -> (i32, i32) {
    %c0_i32 = arith.constant 0 : i32
    %c0_i32_0 = arith.constant 0 : i32
    %c0_i32_1 = arith.constant 0 : i32
    return %c0_i32, %c0_i32_0 : i32, i32
  }
  func.func @transform_2(%arg0: i32) -> (i32, i32, i32) {
    %c0_i32 = arith.constant 0 : i32
    %c0_i32_0 = arith.constant 0 : i32
    %c0_i32_1 = arith.constant 0 : i32
    return %arg0, %c0_i32, %c0_i32_0 : i32, i32, i32
  }
}

module attributes {stable_mosaic.version = 11 : i64} {
  func.func @_deconv_bn_act_kernel(%arg0: i32, %arg1: memref<16x16xbf16, #tpu.memory_space<vmem>>, %arg2: memref<16x16xbf16, #tpu.memory_space<vmem>>, %arg3: memref<16x16xbf16, #tpu.memory_space<vmem>>, %arg4: memref<1x16xf32, #tpu.memory_space<vmem>>, %arg5: memref<1x16xf32, #tpu.memory_space<vmem>>, %arg6: memref<2x16x16xbf16, #tpu.memory_space<vmem>>) attributes {dimension_semantics = [#tpu.dimension_semantics<parallel>], iteration_bounds = array<i64: 2>, scalar_prefetch = 0 : i64, scratch_operands = 0 : i64, tpu.core_type = #tpu.core_type<tc>, window_params = [{transform_indices = @transform_0, window_bounds = array<i64: 16, 16>}, {pipeline_mode = #tpu.pipeline_mode<synchronous>, transform_indices = @transform_1, window_bounds = array<i64: 16, 16>}, {pipeline_mode = #tpu.pipeline_mode<synchronous>, transform_indices = @transform_2, window_bounds = array<i64: 16, 16>}, {pipeline_mode = #tpu.pipeline_mode<synchronous>, transform_indices = @transform_3, window_bounds = array<i64: 1, 16>}, {pipeline_mode = #tpu.pipeline_mode<synchronous>, transform_indices = @transform_4, window_bounds = array<i64: 1, 16>}, {transform_indices = @transform_5, window_bounds = array<i64: 2, 16, 16>}]} {
    %c0 = arith.constant 0 : index
    %c0_0 = arith.constant 0 : index
    %0 = vector.load %arg1[%c0, %c0_0] : memref<16x16xbf16, #tpu.memory_space<vmem>>, vector<16x16xbf16>
    %c0_1 = arith.constant 0 : index
    %c0_2 = arith.constant 0 : index
    %1 = vector.load %arg2[%c0_1, %c0_2] : memref<16x16xbf16, #tpu.memory_space<vmem>>, vector<16x16xbf16>
    %cst = arith.constant dense<0.000000e+00> : vector<16x16xf32>
    %2 = tpu.matmul %0, %1, %cst {dimension_numbers = #tpu.dot_dimension_numbers<[1], [0], [0], [1], [0, 0, 1, 1], [], []>} : vector<16x16xbf16>, vector<16x16xbf16>, vector<16x16xf32> -> vector<16x16xf32>
    %c0_3 = arith.constant 0 : index
    %c0_4 = arith.constant 0 : index
    %3 = vector.load %arg3[%c0_3, %c0_4] : memref<16x16xbf16, #tpu.memory_space<vmem>>, vector<16x16xbf16>
    %cst_5 = arith.constant dense<0.000000e+00> : vector<16x16xf32>
    %4 = tpu.matmul %0, %3, %cst_5 {dimension_numbers = #tpu.dot_dimension_numbers<[1], [0], [0], [1], [0, 0, 1, 1], [], []>} : vector<16x16xbf16>, vector<16x16xbf16>, vector<16x16xf32> -> vector<16x16xf32>
    %c0_6 = arith.constant 0 : index
    %c0_7 = arith.constant 0 : index
    %5 = vector.load %arg4[%c0_6, %c0_7] : memref<1x16xf32, #tpu.memory_space<vmem>>, vector<1x16xf32>
    %c0_8 = arith.constant 0 : index
    %c0_9 = arith.constant 0 : index
    %6 = vector.load %arg5[%c0_8, %c0_9] : memref<1x16xf32, #tpu.memory_space<vmem>>, vector<1x16xf32>
    %7 = vector.broadcast %5 : vector<1x16xf32> to vector<16x16xf32>
    %8 = arith.mulf %2, %7 : vector<16x16xf32>
    %9 = vector.broadcast %6 : vector<1x16xf32> to vector<16x16xf32>
    %10 = arith.addf %8, %9 : vector<16x16xf32>
    %11 = vector.broadcast %5 : vector<1x16xf32> to vector<16x16xf32>
    %12 = arith.mulf %4, %11 : vector<16x16xf32>
    %13 = vector.broadcast %6 : vector<1x16xf32> to vector<16x16xf32>
    %14 = arith.addf %12, %13 : vector<16x16xf32>
    %cst_10 = arith.constant 0.000000e+00 : f32
    %15 = vector.broadcast %cst_10 : f32 to vector<16x16xf32>
    %16 = arith.maximumf %10, %15 : vector<16x16xf32>
    %cst_11 = arith.constant 0.000000e+00 : f32
    %17 = vector.broadcast %cst_11 : f32 to vector<16x16xf32>
    %18 = arith.maximumf %14, %17 : vector<16x16xf32>
    %19 = arith.truncf %16 : vector<16x16xf32> to vector<16x16xbf16>
    %c0_12 = arith.constant 0 : index
    %c0_13 = arith.constant 0 : index
    %c0_14 = arith.constant 0 : index
    %20 = vector.load %arg6[%c0_12, %c0_13, %c0_14] : memref<2x16x16xbf16, #tpu.memory_space<vmem>>, vector<1x16x16xbf16>
    %21 = vector.shape_cast %20 : vector<1x16x16xbf16> to vector<16x16xbf16>
    %22 = vector.shape_cast %19 : vector<16x16xbf16> to vector<1x16x16xbf16>
    tpu.vector_store %arg6[%c0_12, %c0_13, %c0_14], %22 {strides = array<i32>} : memref<2x16x16xbf16, #tpu.memory_space<vmem>>, vector<1x16x16xbf16>,
    %23 = arith.truncf %18 : vector<16x16xf32> to vector<16x16xbf16>
    %c1 = arith.constant 1 : index
    %c0_15 = arith.constant 0 : index
    %c0_16 = arith.constant 0 : index
    %24 = vector.load %arg6[%c1, %c0_15, %c0_16] : memref<2x16x16xbf16, #tpu.memory_space<vmem>>, vector<1x16x16xbf16>
    %25 = vector.shape_cast %24 : vector<1x16x16xbf16> to vector<16x16xbf16>
    %26 = vector.shape_cast %23 : vector<16x16xbf16> to vector<1x16x16xbf16>
    tpu.vector_store %arg6[%c1, %c0_15, %c0_16], %26 {strides = array<i32>} : memref<2x16x16xbf16, #tpu.memory_space<vmem>>, vector<1x16x16xbf16>,
    return
  }
  func.func @transform_0(%arg0: i32) -> (i32, i32) {
    %c0_i32 = arith.constant 0 : i32
    %c0_i32_0 = arith.constant 0 : i32
    return %arg0, %c0_i32 : i32, i32
  }
  func.func @transform_1(%arg0: i32) -> (i32, i32) {
    %c0_i32 = arith.constant 0 : i32
    %c0_i32_0 = arith.constant 0 : i32
    %c0_i32_1 = arith.constant 0 : i32
    return %c0_i32, %c0_i32_0 : i32, i32
  }
  func.func @transform_2(%arg0: i32) -> (i32, i32) {
    %c0_i32 = arith.constant 0 : i32
    %c0_i32_0 = arith.constant 0 : i32
    %c0_i32_1 = arith.constant 0 : i32
    return %c0_i32, %c0_i32_0 : i32, i32
  }
  func.func @transform_3(%arg0: i32) -> (i32, i32) {
    %c0_i32 = arith.constant 0 : i32
    %c0_i32_0 = arith.constant 0 : i32
    %c0_i32_1 = arith.constant 0 : i32
    return %c0_i32, %c0_i32_0 : i32, i32
  }
  func.func @transform_4(%arg0: i32) -> (i32, i32) {
    %c0_i32 = arith.constant 0 : i32
    %c0_i32_0 = arith.constant 0 : i32
    %c0_i32_1 = arith.constant 0 : i32
    return %c0_i32, %c0_i32_0 : i32, i32
  }
  func.func @transform_5(%arg0: i32) -> (i32, i32, i32) {
    %c0_i32 = arith.constant 0 : i32
    %c0_i32_0 = arith.constant 0 : i32
    %c0_i32_1 = arith.constant 0 : i32
    return %c0_i32, %arg0, %c0_i32_0 : i32, i32, i32
  }
}

module attributes {stable_mosaic.version = 11 : i64} {
  func.func @_stats_kernel(%arg0: i32, %arg1: memref<64x8xbf16, #tpu.memory_space<vmem>>, %arg2: memref<8x16xbf16, #tpu.memory_space<vmem>>, %arg3: memref<1x2x16xf32, #tpu.memory_space<vmem>>) attributes {dimension_semantics = [#tpu.dimension_semantics<parallel>], iteration_bounds = array<i64: 2>, scalar_prefetch = 0 : i64, scratch_operands = 0 : i64, tpu.core_type = #tpu.core_type<tc>, window_params = [{transform_indices = @transform_0, window_bounds = array<i64: 64, 8>}, {pipeline_mode = #tpu.pipeline_mode<synchronous>, transform_indices = @transform_1, window_bounds = array<i64: 8, 16>}, {transform_indices = @transform_2, window_bounds = array<i64: 1, 2, 16>}]} {
    %c0 = arith.constant 0 : index
    %c0_0 = arith.constant 0 : index
    %0 = vector.load %arg1[%c0, %c0_0] : memref<64x8xbf16, #tpu.memory_space<vmem>>, vector<64x8xbf16>
    %c0_1 = arith.constant 0 : index
    %c0_2 = arith.constant 0 : index
    %1 = vector.load %arg2[%c0_1, %c0_2] : memref<8x16xbf16, #tpu.memory_space<vmem>>, vector<8x16xbf16>
    %cst = arith.constant dense<0.000000e+00> : vector<64x16xf32>
    %2 = tpu.matmul %0, %1, %cst {dimension_numbers = #tpu.dot_dimension_numbers<[1], [0], [0], [1], [0, 0, 1, 1], [], []>} : vector<64x8xbf16>, vector<8x16xbf16>, vector<64x16xf32> -> vector<64x16xf32>
    %cst_3 = arith.constant dense<0.000000e+00> : vector<16xf32>
    %3 = vector.multi_reduction <add>, %2, %cst_3 [0] : vector<64x16xf32> to vector<16xf32>
    %4 = vector.shape_cast %3 : vector<16xf32> to vector<1x16xf32>
    %c0_4 = arith.constant 0 : index
    %c0_5 = arith.constant 0 : index
    %c0_6 = arith.constant 0 : index
    %5 = vector.load %arg3[%c0_4, %c0_5, %c0_6] : memref<1x2x16xf32, #tpu.memory_space<vmem>>, vector<1x1x16xf32>
    %6 = vector.shape_cast %5 : vector<1x1x16xf32> to vector<1x16xf32>
    %7 = vector.shape_cast %4 : vector<1x16xf32> to vector<1x1x16xf32>
    tpu.vector_store %arg3[%c0_4, %c0_5, %c0_6], %7 {strides = array<i32>} : memref<1x2x16xf32, #tpu.memory_space<vmem>>, vector<1x1x16xf32>,
    %8 = arith.mulf %2, %2 : vector<64x16xf32>
    %cst_7 = arith.constant dense<0.000000e+00> : vector<16xf32>
    %9 = vector.multi_reduction <add>, %8, %cst_7 [0] : vector<64x16xf32> to vector<16xf32>
    %10 = vector.shape_cast %9 : vector<16xf32> to vector<1x16xf32>
    %c0_8 = arith.constant 0 : index
    %c1 = arith.constant 1 : index
    %c0_9 = arith.constant 0 : index
    %11 = vector.load %arg3[%c0_8, %c1, %c0_9] : memref<1x2x16xf32, #tpu.memory_space<vmem>>, vector<1x1x16xf32>
    %12 = vector.shape_cast %11 : vector<1x1x16xf32> to vector<1x16xf32>
    %13 = vector.shape_cast %10 : vector<1x16xf32> to vector<1x1x16xf32>
    tpu.vector_store %arg3[%c0_8, %c1, %c0_9], %13 {strides = array<i32>} : memref<1x2x16xf32, #tpu.memory_space<vmem>>, vector<1x1x16xf32>,
    return
  }
  func.func @transform_0(%arg0: i32) -> (i32, i32) {
    %c0_i32 = arith.constant 0 : i32
    %c0_i32_0 = arith.constant 0 : i32
    return %arg0, %c0_i32 : i32, i32
  }
  func.func @transform_1(%arg0: i32) -> (i32, i32) {
    %c0_i32 = arith.constant 0 : i32
    %c0_i32_0 = arith.constant 0 : i32
    %c0_i32_1 = arith.constant 0 : i32
    return %c0_i32, %c0_i32_0 : i32, i32
  }
  func.func @transform_2(%arg0: i32) -> (i32, i32, i32) {
    %c0_i32 = arith.constant 0 : i32
    %c0_i32_0 = arith.constant 0 : i32
    %c0_i32_1 = arith.constant 0 : i32
    return %arg0, %c0_i32, %c0_i32_0 : i32, i32, i32
  }
}

module attributes {stable_mosaic.version = 11 : i64} {
  func.func @_deconv_bn_act_kernel(%arg0: i32, %arg1: memref<64x8xbf16, #tpu.memory_space<vmem>>, %arg2: memref<8x8xbf16, #tpu.memory_space<vmem>>, %arg3: memref<8x8xbf16, #tpu.memory_space<vmem>>, %arg4: memref<1x8xf32, #tpu.memory_space<vmem>>, %arg5: memref<1x8xf32, #tpu.memory_space<vmem>>, %arg6: memref<2x64x8xbf16, #tpu.memory_space<vmem>>) attributes {dimension_semantics = [#tpu.dimension_semantics<parallel>], iteration_bounds = array<i64: 2>, scalar_prefetch = 0 : i64, scratch_operands = 0 : i64, tpu.core_type = #tpu.core_type<tc>, window_params = [{transform_indices = @transform_0, window_bounds = array<i64: 64, 8>}, {pipeline_mode = #tpu.pipeline_mode<synchronous>, transform_indices = @transform_1, window_bounds = array<i64: 8, 8>}, {pipeline_mode = #tpu.pipeline_mode<synchronous>, transform_indices = @transform_2, window_bounds = array<i64: 8, 8>}, {pipeline_mode = #tpu.pipeline_mode<synchronous>, transform_indices = @transform_3, window_bounds = array<i64: 1, 8>}, {pipeline_mode = #tpu.pipeline_mode<synchronous>, transform_indices = @transform_4, window_bounds = array<i64: 1, 8>}, {transform_indices = @transform_5, window_bounds = array<i64: 2, 64, 8>}]} {
    %c0 = arith.constant 0 : index
    %c0_0 = arith.constant 0 : index
    %0 = vector.load %arg1[%c0, %c0_0] : memref<64x8xbf16, #tpu.memory_space<vmem>>, vector<64x8xbf16>
    %c0_1 = arith.constant 0 : index
    %c0_2 = arith.constant 0 : index
    %1 = vector.load %arg2[%c0_1, %c0_2] : memref<8x8xbf16, #tpu.memory_space<vmem>>, vector<8x8xbf16>
    %cst = arith.constant dense<0.000000e+00> : vector<64x8xf32>
    %2 = tpu.matmul %0, %1, %cst {dimension_numbers = #tpu.dot_dimension_numbers<[1], [0], [0], [1], [0, 0, 1, 1], [], []>} : vector<64x8xbf16>, vector<8x8xbf16>, vector<64x8xf32> -> vector<64x8xf32>
    %c0_3 = arith.constant 0 : index
    %c0_4 = arith.constant 0 : index
    %3 = vector.load %arg3[%c0_3, %c0_4] : memref<8x8xbf16, #tpu.memory_space<vmem>>, vector<8x8xbf16>
    %cst_5 = arith.constant dense<0.000000e+00> : vector<64x8xf32>
    %4 = tpu.matmul %0, %3, %cst_5 {dimension_numbers = #tpu.dot_dimension_numbers<[1], [0], [0], [1], [0, 0, 1, 1], [], []>} : vector<64x8xbf16>, vector<8x8xbf16>, vector<64x8xf32> -> vector<64x8xf32>
    %c0_6 = arith.constant 0 : index
    %c0_7 = arith.constant 0 : index
    %5 = vector.load %arg4[%c0_6, %c0_7] : memref<1x8xf32, #tpu.memory_space<vmem>>, vector<1x8xf32>
    %c0_8 = arith.constant 0 : index
    %c0_9 = arith.constant 0 : index
    %6 = vector.load %arg5[%c0_8, %c0_9] : memref<1x8xf32, #tpu.memory_space<vmem>>, vector<1x8xf32>
    %7 = vector.broadcast %5 : vector<1x8xf32> to vector<64x8xf32>
    %8 = arith.mulf %2, %7 : vector<64x8xf32>
    %9 = vector.broadcast %6 : vector<1x8xf32> to vector<64x8xf32>
    %10 = arith.addf %8, %9 : vector<64x8xf32>
    %11 = vector.broadcast %5 : vector<1x8xf32> to vector<64x8xf32>
    %12 = arith.mulf %4, %11 : vector<64x8xf32>
    %13 = vector.broadcast %6 : vector<1x8xf32> to vector<64x8xf32>
    %14 = arith.addf %12, %13 : vector<64x8xf32>
    %cst_10 = arith.constant 0.000000e+00 : f32
    %15 = vector.broadcast %cst_10 : f32 to vector<64x8xf32>
    %16 = arith.maximumf %10, %15 : vector<64x8xf32>
    %cst_11 = arith.constant 0.000000e+00 : f32
    %17 = vector.broadcast %cst_11 : f32 to vector<64x8xf32>
    %18 = arith.maximumf %14, %17 : vector<64x8xf32>
    %19 = arith.truncf %16 : vector<64x8xf32> to vector<64x8xbf16>
    %c0_12 = arith.constant 0 : index
    %c0_13 = arith.constant 0 : index
    %c0_14 = arith.constant 0 : index
    %20 = vector.load %arg6[%c0_12, %c0_13, %c0_14] : memref<2x64x8xbf16, #tpu.memory_space<vmem>>, vector<1x64x8xbf16>
    %21 = vector.shape_cast %20 : vector<1x64x8xbf16> to vector<64x8xbf16>
    %22 = vector.shape_cast %19 : vector<64x8xbf16> to vector<1x64x8xbf16>
    tpu.vector_store %arg6[%c0_12, %c0_13, %c0_14], %22 {strides = array<i32>} : memref<2x64x8xbf16, #tpu.memory_space<vmem>>, vector<1x64x8xbf16>,
    %23 = arith.truncf %18 : vector<64x8xf32> to vector<64x8xbf16>
    %c1 = arith.constant 1 : index
    %c0_15 = arith.constant 0 : index
    %c0_16 = arith.constant 0 : index
    %24 = vector.load %arg6[%c1, %c0_15, %c0_16] : memref<2x64x8xbf16, #tpu.memory_space<vmem>>, vector<1x64x8xbf16>
    %25 = vector.shape_cast %24 : vector<1x64x8xbf16> to vector<64x8xbf16>
    %26 = vector.shape_cast %23 : vector<64x8xbf16> to vector<1x64x8xbf16>
    tpu.vector_store %arg6[%c1, %c0_15, %c0_16], %26 {strides = array<i32>} : memref<2x64x8xbf16, #tpu.memory_space<vmem>>, vector<1x64x8xbf16>,
    return
  }
  func.func @transform_0(%arg0: i32) -> (i32, i32) {
    %c0_i32 = arith.constant 0 : i32
    %c0_i32_0 = arith.constant 0 : i32
    return %arg0, %c0_i32 : i32, i32
  }
  func.func @transform_1(%arg0: i32) -> (i32, i32) {
    %c0_i32 = arith.constant 0 : i32
    %c0_i32_0 = arith.constant 0 : i32
    %c0_i32_1 = arith.constant 0 : i32
    return %c0_i32, %c0_i32_0 : i32, i32
  }
  func.func @transform_2(%arg0: i32) -> (i32, i32) {
    %c0_i32 = arith.constant 0 : i32
    %c0_i32_0 = arith.constant 0 : i32
    %c0_i32_1 = arith.constant 0 : i32
    return %c0_i32, %c0_i32_0 : i32, i32
  }
  func.func @transform_3(%arg0: i32) -> (i32, i32) {
    %c0_i32 = arith.constant 0 : i32
    %c0_i32_0 = arith.constant 0 : i32
    %c0_i32_1 = arith.constant 0 : i32
    return %c0_i32, %c0_i32_0 : i32, i32
  }
  func.func @transform_4(%arg0: i32) -> (i32, i32) {
    %c0_i32 = arith.constant 0 : i32
    %c0_i32_0 = arith.constant 0 : i32
    %c0_i32_1 = arith.constant 0 : i32
    return %c0_i32, %c0_i32_0 : i32, i32
  }
  func.func @transform_5(%arg0: i32) -> (i32, i32, i32) {
    %c0_i32 = arith.constant 0 : i32
    %c0_i32_0 = arith.constant 0 : i32
    %c0_i32_1 = arith.constant 0 : i32
    return %c0_i32, %arg0, %c0_i32_0 : i32, i32, i32
  }
}

module attributes {stable_mosaic.version = 11 : i64} {
  func.func @_stats_kernel(%arg0: i32, %arg1: memref<256x4xbf16, #tpu.memory_space<vmem>>, %arg2: memref<4x12xbf16, #tpu.memory_space<vmem>>, %arg3: memref<1x2x12xf32, #tpu.memory_space<vmem>>) attributes {dimension_semantics = [#tpu.dimension_semantics<parallel>], iteration_bounds = array<i64: 2>, scalar_prefetch = 0 : i64, scratch_operands = 0 : i64, tpu.core_type = #tpu.core_type<tc>, window_params = [{transform_indices = @transform_0, window_bounds = array<i64: 256, 4>}, {pipeline_mode = #tpu.pipeline_mode<synchronous>, transform_indices = @transform_1, window_bounds = array<i64: 4, 12>}, {transform_indices = @transform_2, window_bounds = array<i64: 1, 2, 12>}]} {
    %c0 = arith.constant 0 : index
    %c0_0 = arith.constant 0 : index
    %0 = vector.load %arg1[%c0, %c0_0] : memref<256x4xbf16, #tpu.memory_space<vmem>>, vector<256x4xbf16>
    %c0_1 = arith.constant 0 : index
    %c0_2 = arith.constant 0 : index
    %1 = vector.load %arg2[%c0_1, %c0_2] : memref<4x12xbf16, #tpu.memory_space<vmem>>, vector<4x12xbf16>
    %cst = arith.constant dense<0.000000e+00> : vector<256x12xf32>
    %2 = tpu.matmul %0, %1, %cst {dimension_numbers = #tpu.dot_dimension_numbers<[1], [0], [0], [1], [0, 0, 1, 1], [], []>} : vector<256x4xbf16>, vector<4x12xbf16>, vector<256x12xf32> -> vector<256x12xf32>
    %cst_3 = arith.constant dense<0.000000e+00> : vector<12xf32>
    %3 = vector.multi_reduction <add>, %2, %cst_3 [0] : vector<256x12xf32> to vector<12xf32>
    %4 = vector.shape_cast %3 : vector<12xf32> to vector<1x12xf32>
    %c0_4 = arith.constant 0 : index
    %c0_5 = arith.constant 0 : index
    %c0_6 = arith.constant 0 : index
    %5 = vector.load %arg3[%c0_4, %c0_5, %c0_6] : memref<1x2x12xf32, #tpu.memory_space<vmem>>, vector<1x1x12xf32>
    %6 = vector.shape_cast %5 : vector<1x1x12xf32> to vector<1x12xf32>
    %7 = vector.shape_cast %4 : vector<1x12xf32> to vector<1x1x12xf32>
    tpu.vector_store %arg3[%c0_4, %c0_5, %c0_6], %7 {strides = array<i32>} : memref<1x2x12xf32, #tpu.memory_space<vmem>>, vector<1x1x12xf32>,
    %8 = arith.mulf %2, %2 : vector<256x12xf32>
    %cst_7 = arith.constant dense<0.000000e+00> : vector<12xf32>
    %9 = vector.multi_reduction <add>, %8, %cst_7 [0] : vector<256x12xf32> to vector<12xf32>
    %10 = vector.shape_cast %9 : vector<12xf32> to vector<1x12xf32>
    %c0_8 = arith.constant 0 : index
    %c1 = arith.constant 1 : index
    %c0_9 = arith.constant 0 : index
    %11 = vector.load %arg3[%c0_8, %c1, %c0_9] : memref<1x2x12xf32, #tpu.memory_space<vmem>>, vector<1x1x12xf32>
    %12 = vector.shape_cast %11 : vector<1x1x12xf32> to vector<1x12xf32>
    %13 = vector.shape_cast %10 : vector<1x12xf32> to vector<1x1x12xf32>
    tpu.vector_store %arg3[%c0_8, %c1, %c0_9], %13 {strides = array<i32>} : memref<1x2x12xf32, #tpu.memory_space<vmem>>, vector<1x1x12xf32>,
    return
  }
  func.func @transform_0(%arg0: i32) -> (i32, i32) {
    %c0_i32 = arith.constant 0 : i32
    %c0_i32_0 = arith.constant 0 : i32
    return %arg0, %c0_i32 : i32, i32
  }
  func.func @transform_1(%arg0: i32) -> (i32, i32) {
    %c0_i32 = arith.constant 0 : i32
    %c0_i32_0 = arith.constant 0 : i32
    %c0_i32_1 = arith.constant 0 : i32
    return %c0_i32, %c0_i32_0 : i32, i32
  }
  func.func @transform_2(%arg0: i32) -> (i32, i32, i32) {
    %c0_i32 = arith.constant 0 : i32
    %c0_i32_0 = arith.constant 0 : i32
    %c0_i32_1 = arith.constant 0 : i32
    return %arg0, %c0_i32, %c0_i32_0 : i32, i32, i32
  }
}

module attributes {stable_mosaic.version = 11 : i64} {
  func.func @_deconv_bn_act_kernel(%arg0: i32, %arg1: memref<256x4xbf16, #tpu.memory_space<vmem>>, %arg2: memref<4x6xbf16, #tpu.memory_space<vmem>>, %arg3: memref<4x6xbf16, #tpu.memory_space<vmem>>, %arg4: memref<1x6xf32, #tpu.memory_space<vmem>>, %arg5: memref<1x6xf32, #tpu.memory_space<vmem>>, %arg6: memref<2x256x6xf32, #tpu.memory_space<vmem>>) attributes {dimension_semantics = [#tpu.dimension_semantics<parallel>], iteration_bounds = array<i64: 2>, scalar_prefetch = 0 : i64, scratch_operands = 0 : i64, tpu.core_type = #tpu.core_type<tc>, window_params = [{transform_indices = @transform_0, window_bounds = array<i64: 256, 4>}, {pipeline_mode = #tpu.pipeline_mode<synchronous>, transform_indices = @transform_1, window_bounds = array<i64: 4, 6>}, {pipeline_mode = #tpu.pipeline_mode<synchronous>, transform_indices = @transform_2, window_bounds = array<i64: 4, 6>}, {pipeline_mode = #tpu.pipeline_mode<synchronous>, transform_indices = @transform_3, window_bounds = array<i64: 1, 6>}, {pipeline_mode = #tpu.pipeline_mode<synchronous>, transform_indices = @transform_4, window_bounds = array<i64: 1, 6>}, {transform_indices = @transform_5, window_bounds = array<i64: 2, 256, 6>}]} {
    %c0 = arith.constant 0 : index
    %c0_0 = arith.constant 0 : index
    %0 = vector.load %arg1[%c0, %c0_0] : memref<256x4xbf16, #tpu.memory_space<vmem>>, vector<256x4xbf16>
    %c0_1 = arith.constant 0 : index
    %c0_2 = arith.constant 0 : index
    %1 = vector.load %arg2[%c0_1, %c0_2] : memref<4x6xbf16, #tpu.memory_space<vmem>>, vector<4x6xbf16>
    %cst = arith.constant dense<0.000000e+00> : vector<256x6xf32>
    %2 = tpu.matmul %0, %1, %cst {dimension_numbers = #tpu.dot_dimension_numbers<[1], [0], [0], [1], [0, 0, 1, 1], [], []>} : vector<256x4xbf16>, vector<4x6xbf16>, vector<256x6xf32> -> vector<256x6xf32>
    %c0_3 = arith.constant 0 : index
    %c0_4 = arith.constant 0 : index
    %3 = vector.load %arg3[%c0_3, %c0_4] : memref<4x6xbf16, #tpu.memory_space<vmem>>, vector<4x6xbf16>
    %cst_5 = arith.constant dense<0.000000e+00> : vector<256x6xf32>
    %4 = tpu.matmul %0, %3, %cst_5 {dimension_numbers = #tpu.dot_dimension_numbers<[1], [0], [0], [1], [0, 0, 1, 1], [], []>} : vector<256x4xbf16>, vector<4x6xbf16>, vector<256x6xf32> -> vector<256x6xf32>
    %c0_6 = arith.constant 0 : index
    %c0_7 = arith.constant 0 : index
    %5 = vector.load %arg4[%c0_6, %c0_7] : memref<1x6xf32, #tpu.memory_space<vmem>>, vector<1x6xf32>
    %c0_8 = arith.constant 0 : index
    %c0_9 = arith.constant 0 : index
    %6 = vector.load %arg5[%c0_8, %c0_9] : memref<1x6xf32, #tpu.memory_space<vmem>>, vector<1x6xf32>
    %7 = vector.broadcast %5 : vector<1x6xf32> to vector<256x6xf32>
    %8 = arith.mulf %2, %7 : vector<256x6xf32>
    %9 = vector.broadcast %6 : vector<1x6xf32> to vector<256x6xf32>
    %10 = arith.addf %8, %9 : vector<256x6xf32>
    %11 = vector.broadcast %5 : vector<1x6xf32> to vector<256x6xf32>
    %12 = arith.mulf %4, %11 : vector<256x6xf32>
    %13 = vector.broadcast %6 : vector<1x6xf32> to vector<256x6xf32>
    %14 = arith.addf %12, %13 : vector<256x6xf32>
    %15 = arith.negf %10 : vector<256x6xf32>
    %16 = math.exp %15 : vector<256x6xf32>
    %cst_10 = arith.constant 1.000000e+00 : f32
    %17 = vector.broadcast %cst_10 : f32 to vector<256x6xf32>
    %18 = arith.addf %17, %16 : vector<256x6xf32>
    %19 = arith.divf %17, %18 : vector<256x6xf32>
    %20 = arith.negf %14 : vector<256x6xf32>
    %21 = math.exp %20 : vector<256x6xf32>
    %cst_11 = arith.constant 1.000000e+00 : f32
    %22 = vector.broadcast %cst_11 : f32 to vector<256x6xf32>
    %23 = arith.addf %22, %21 : vector<256x6xf32>
    %24 = arith.divf %22, %23 : vector<256x6xf32>
    %c0_12 = arith.constant 0 : index
    %c0_13 = arith.constant 0 : index
    %c0_14 = arith.constant 0 : index
    %25 = vector.load %arg6[%c0_12, %c0_13, %c0_14] : memref<2x256x6xf32, #tpu.memory_space<vmem>>, vector<1x256x6xf32>
    %26 = vector.shape_cast %25 : vector<1x256x6xf32> to vector<256x6xf32>
    %27 = vector.shape_cast %19 : vector<256x6xf32> to vector<1x256x6xf32>
    tpu.vector_store %arg6[%c0_12, %c0_13, %c0_14], %27 {strides = array<i32>} : memref<2x256x6xf32, #tpu.memory_space<vmem>>, vector<1x256x6xf32>,
    %c1 = arith.constant 1 : index
    %c0_15 = arith.constant 0 : index
    %c0_16 = arith.constant 0 : index
    %28 = vector.load %arg6[%c1, %c0_15, %c0_16] : memref<2x256x6xf32, #tpu.memory_space<vmem>>, vector<1x256x6xf32>
    %29 = vector.shape_cast %28 : vector<1x256x6xf32> to vector<256x6xf32>
    %30 = vector.shape_cast %24 : vector<256x6xf32> to vector<1x256x6xf32>
    tpu.vector_store %arg6[%c1, %c0_15, %c0_16], %30 {strides = array<i32>} : memref<2x256x6xf32, #tpu.memory_space<vmem>>, vector<1x256x6xf32>,
    return
  }
  func.func @transform_0(%arg0: i32) -> (i32, i32) {
    %c0_i32 = arith.constant 0 : i32
    %c0_i32_0 = arith.constant 0 : i32
    return %arg0, %c0_i32 : i32, i32
  }
  func.func @transform_1(%arg0: i32) -> (i32, i32) {
    %c0_i32 = arith.constant 0 : i32
    %c0_i32_0 = arith.constant 0 : i32
    %c0_i32_1 = arith.constant 0 : i32
    return %c0_i32, %c0_i32_0 : i32, i32
  }
  func.func @transform_2(%arg0: i32) -> (i32, i32) {
    %c0_i32 = arith.constant 0 : i32
    %c0_i32_0 = arith.constant 0 : i32
    %c0_i32_1 = arith.constant 0 : i32
    return %c0_i32, %c0_i32_0 : i32, i32
  }
  func.func @transform_3(%arg0: i32) -> (i32, i32) {
    %c0_i32 = arith.constant 0 : i32
    %c0_i32_0 = arith.constant 0 : i32
    %c0_i32_1 = arith.constant 0 : i32
    return %c0_i32, %c0_i32_0 : i32, i32
  }
  func.func @transform_4(%arg0: i32) -> (i32, i32) {
    %c0_i32 = arith.constant 0 : i32
    %c0_i32_0 = arith.constant 0 : i32
    %c0_i32_1 = arith.constant 0 : i32
    return %c0_i32, %c0_i32_0 : i32, i32
  }
  func.func @transform_5(%arg0: i32) -> (i32, i32, i32) {
    %c0_i32 = arith.constant 0 : i32
    %c0_i32_0 = arith.constant 0 : i32
    %c0_i32_1 = arith.constant 0 : i32
    return %c0_i32, %arg0, %c0_i32_0 : i32, i32, i32
  }
}

</mosaic_0001>

<bundles_post_ra>
// kernel: tile.48
= control target key start
LH: loop header
LB: loop body
LE: loop exit
PB: predicated region body
PF: predicated region fallthrough
CT: control target
= control target key end

     0   :  { %s22_s0 = inlined_call_operand.vmem [shape: f32[16], index: 0, kind: input, shape index: {}]   ;;  %s23_s1 = inlined_call_operand.vmem [shape: f32[2,16], index: 1, kind: output, shape index: {}]  }
   0x1   :  { %v4_v0 = vld [vmem:[%s22_s0] ss:$0 sm:$0xff] }
   0x2   :  { %5 = vst [vmem:[%s23_s1] sm:$0x3] %v4_v0 }

// kernel: tile.49
= control target key start
LH: loop header
LB: loop body
LE: loop exit
PB: predicated region body
PF: predicated region fallthrough
CT: control target
= control target key end

     0   :  { %vm7_vm0 = vcmask 130048   ;;  %vm13_vm1 = vcmask 261248   ;;  %s39_s0 = inlined_call_operand.vmem [shape: f32[2,16], index: 0, kind: input, shape index: {}]   ;;  %s40_s1 = inlined_call_operand.vmem [shape: f32[1,32], index: 1, kind: output, shape index: {}]  }
   0x1   :  { %v4_v0 = vld [vmem:[%s39_s0] sm:$0x3]  ;;  %s22_s0 = smov 16  }
   0x2   :  { %5 = vst [vmem:[#allocation1] sm:$0x3] %v4_v0 }
   0x9   :  { %v10_v1 = vld [vmem:[#allocation1 + $0x1] sm:$0x1]   ;;  %v6_v2 = vld [vmem:[#allocation1] sm:$0x1]  }
   0xa   :  { %11 = vrot.lane.b32.xlu0 %v10_v1, %s22_s0  ;;  %8 = vst.msk [vmem:[#allocation0] sm:$0x1] %vm7_vm0, %v6_v2  }
  0x7c   :  { %v12_v3 = vpop.permute.xlu0 %11  }
  0x7d   :  { %14 = vst.msk [vmem:[#allocation0] sm:$0x1] %vm13_vm1, %v12_v3  }
  0x84   :  { %v17_v4 = vld [vmem:[#allocation0] sm:$0x1] }
  0x85   :  { %20 = vst [vmem:[%s40_s1] sm:$0x1] %v17_v4 }

// kernel: decoder_forward.10
= control target key start
LH: loop header
LB: loop body
LE: loop exit
PB: predicated region body
PF: predicated region fallthrough
CT: control target
= control target key end

     0   :  { %vm29_vm0 = vcmask 261120   ;;  %vm46_vm1 = vcmask 523264   ;;  %vm54_vm2 = vcmask 516096   ;;  %s110_s1 = inlined_call_operand.vmem [shape: bf16[32,64], index: 1, kind: input, shape index: {}]   ;;  %s111_s0 = inlined_call_operand.vmem [shape: bf16[8,32], index: 0, kind: input, shape index: {}]   ;;  %s112_s2 = inlined_call_operand.vmem [shape: f32[1,2,64], index: 2, kind: output, shape index: {}]  }
   0x1   :  { %v79_v0 = vld [vmem:[%s110_s1 + $0x8] sm:$0xff]  ;;  %v78_v1 = vld [vmem:[%s110_s1] sm:$0xff] }
   0x2   :  { %39 = vmatpush.bf16.msra.mxu0 %v79_v0  ;;  %v12_v2 = vld [vmem:[%s111_s0] sm:$0xf] }
   0x6   :  { %40 = vmatpush.bf16.msra.mxu0 %v78_v1 }
   0x9   :  { %77 = vmatmul.msk.bf16.vlgmr.msra.gmra.mxu0 %vm29_vm0, %v12_v2 }
  0x86   :  { %v42_v3 = vpop.f32.mrf.mxu0 }
  0x87   :  { %v47_v4 = vsel %vm46_vm1, %v42_v3, 0.0  ;;  %v56_v5 = vmul.f32 %v42_v3, %v42_v3 }
  0x88   :  { %v48_v6 = vrot.slane %v47_v4, 4 }
  0x89   :  { %v57_v7 = vsel %vm46_vm1, %v56_v5, 0.0 }
  0x8a   :  { %v49_v8 = vadd.f32 %v48_v6, %v47_v4  ;;  %v58_v9 = vrot.slane %v57_v7, 4 }
  0x8c   :  { %v50_v10 = vrot.slane %v49_v8, 2  ;;  %v59_v11 = vadd.f32 %v58_v9, %v57_v7 }
  0x8e   :  { %v51_v12 = vadd.f32 %v50_v10, %v49_v8  ;;  %v60_v13 = vrot.slane %v59_v11, 2  ;;  %v44_v14 = vpop.f32.mrf.mxu0 }
  0x90   :  { %v52_v15 = vrot.slane %v51_v12, 1  ;;  %v61_v16 = vadd.f32 %v60_v13, %v59_v11 }
  0x92   :  { %v53_v17 = vadd.f32 %v52_v15, %v51_v12  ;;  %v62_v18 = vrot.slane %v61_v16, 1 }
  0x94   :  { %55 = vst.msk [vmem:[%s112_s2] sm:$0x1] %vm54_vm2, %v53_v17  ;;  %v63_v19 = vadd.f32 %v62_v18, %v61_v16 }
  0x96   :  { %64 = vst.msk [vmem:[%s112_s2 + $0x1] sm:$0x1] %vm54_vm2, %v63_v19 }

// kernel: decoder_forward.11
= control target key start
LH: loop header
LB: loop body
LE: loop exit
PB: predicated region body
PF: predicated region fallthrough
CT: control target
= control target key end

     0   :  { %vm38_vm0 = vcmask 261120   ;;  %vm99_vm1 = vcmask 257024   ;;  %s190_s1 = inlined_call_operand.vmem [shape: bf16[32,32], index: 1, kind: input, shape index: {}]   ;;  %s191_s2 = inlined_call_operand.vmem [shape: bf16[32,32], index: 2, kind: input, shape index: {}]   ;;  %s192_s3 = inlined_call_operand.vmem [shape: f32[1,32], index: 3, kind: input, shape index: {}]   ;;  %s193_s4 = inlined_call_operand.vmem [shape: f32[1,32], index: 4, kind: input, shape index: {}]   ;;  %s194_s0 = inlined_call_operand.vmem [shape: bf16[8,32], index: 0, kind: input, shape index: {}]   ;;  %s195_s5 = inlined_call_operand.vmem [shape: bf16[2,8,32], index: 5, kind: output, shape index: {}]  }
   0x1   :  { %v128_v0 = vld [vmem:[%s190_s1 + $0x8] sm:$0xff]  ;;  %v127_v2 = vld [vmem:[%s190_s1] sm:$0xff] }
   0x2   :  { %v130_v1 = vld [vmem:[%s191_s2 + $0x8] sm:$0xff]  ;;  %48 = vmatpush.bf16.msra.mxu0 %v128_v0  ;;  %v129_v3 = vld [vmem:[%s191_s2] sm:$0xff] }
   0x3   :  { %77 = vmatpush.bf16.msra.mxu1 %v130_v1  ;;  %v21_v4 = vld [vmem:[%s194_s0] sm:$0xf] }
   0x4   :  { %v131_v5 = vld [vmem:[%s192_s3] ss:$0 sm:$0xff] }
   0x5   :  { %v132_v6 = vld [vmem:[%s193_s4] ss:$0 sm:$0xff] }
   0x6   :  { %49 = vmatpush.bf16.msra.mxu0 %v127_v2 }
   0x7   :  { %78 = vmatpush.bf16.msra.mxu1 %v129_v3 }
   0x9   :  { %116 = vmatmul.msk.bf16.vlgmr.msra.gmra.mxu0 %vm38_vm0, %v21_v4 }
   0xa   :  { %125 = vmatmul.msk.bf16.vlgmr.msra.gmra.mxu1 %vm38_vm0, %v21_v4 }
  0x86   :  { %v51_v7 = vpop.f32.mrf.mxu0 }
  0x87   :  { %v80_v8 = vpop.f32.mrf.mxu1  ;;  %v89_v9 = vmul.f32 %v131_v5, %v51_v7 }
  0x88   :  { %v94_v10 = vmul.f32 %v131_v5, %v80_v8 }
  0x89   :  { %v93_v11 = vadd.f32 %v132_v6, %v89_v9 }
  0x8a   :  { %v95_v12 = vadd.f32 %v132_v6, %v94_v10 }
  0x8b   :  { %v96_v13 = vmax.f32 %v93_v11, 0.0 }
  0x8c   :  { %v97_v14 = vmax.f32 %v95_v12, 0.0 }
  0x8d   :  { %v98_v15 = vpack.c.bf16 %v96_v13, %v96_v13 }
  0x8e   :  { %v101_v16 = vpack.c.bf16 %v97_v14, %v97_v14  ;;  %v53_v17 = vpop.f32.mrf.mxu0 }
  0x8f   :  { %v82_v18 = vpop.f32.mrf.mxu1  ;;  %100 = vst.msk [vmem:[%s195_s5] sm:$0xf] %vm99_vm1, %v98_v15 }
  0x90   :  { %126 = vst.msk [vmem:[%s195_s5 + $0x4] sm:$0xf] %vm99_vm1, %v101_v16 }

// kernel: decoder_forward.12
= control target key start
LH: loop header
LB: loop body
LE: loop exit
PB: predicated region body
PF: predicated region fallthrough
CT: control target
= control target key end

     0   :  { %s307_s9 = smov 0   ;;  %s327_s0 = inlined_call_operand.vmem [shape: bf16[32,16], index: 0, kind: input, shape index: {}]   ;;  %s328_s1 = inlined_call_operand.vmem [shape: bf16[16,32], index: 1, kind: input, shape index: {}]   ;;  %s329_s2 = inlined_call_operand.vmem [shape: f32[2,2,32], index: 2, kind: output, shape index: {}]  }
   0x1 LB: > { %s255_s10 = sadd.s32 4294967295, %s290_s9   ;;  %p259_p0 = scmp.ge.s32.totalorder %s290_s9, 1  ;;  %s290_s9 = sphi %s307_s9, %s12_s9  }
   0x2   : > { %p113_p1 = scmp.lt.s32.totalorder %s290_s9, 3 }
   0x4   : > { %p114_p2 = pnand %p259_p0, %p113_p1 }
   0x5   : > { %s260_s13 = sshll.u32 (!%p114_p2), %s255_s10, 1  ;;  %p140_p4 = scmp.lt.s32.totalorder (!%p114_p2), %s255_s10, 1 }
   0x6   : > { %117 = sbr.rel (%p114_p2) target bundleno = 167 (0xa7), region = 28  ;;  %p135_p3 = scmp.lt.s32.totalorder (!%p114_p2), %s260_s13, 3 }
   0xb   : > { %v275_v0 = vld [vmem:[%s328_s1] sm:$0xff]  ;;  %s331_s13 = smov (!%p135_p3, %s260_s13), 3  ;;  %vm160_vm0 = vcmask 130048   ;;  %vm178_vm1 = vcmask 261120   ;;  %s333_s10 = smov (!%p140_p4, %s255_s10), 1  ;;  %vm188_vm2 = vcmask 253952  }
   0xc   : > { %171 = vmatpush.bf16.msra.mxu0 %v275_v0  ;;  %s261_s14 = sshll.u32 %s331_s13, 2  ;;  %s262_s18 = sshll.u32 %s333_s10, 1 }
   0xd   : > { %s138_s17 = scalar_lea.vmem %s327_s0, %s261_s14  ;;  %s143_s21 = scalar_lea.vmem %s329_s2, %s262_s18 }
   0xe   : > { %v274_v1 = vld [vmem:[%s138_s17] sm:$0xff] }
   0xf   : > { %271 = vmatmul.msk.bf16.vlgmr.msra.gmra.mxu0 %vm160_vm0, %v274_v1 }
  0x8c   : > { %v173_v2 = vpop.f32.mrf.mxu0 }
  0x8d   : > { %v190_v3 = vmul.f32 %v173_v2, %v173_v2  ;;  %v179_v5 = vsel %vm178_vm1, %v173_v2, 0.0 }
  0x8f   : > { %v192_v9 = vsel %vm178_vm1, %v190_v3, 0.0 }
  0x94   : > { %v175_v4 = vpop.f32.mrf.mxu0 }
  0x95   : > { %v180_v6 = vsel %vm178_vm1, %v175_v4, 0.0  ;;  %v191_v7 = vmul.f32 %v175_v4, %v175_v4 }
  0x96   : > { %v181_v8 = vadd.f32 %v180_v6, %v179_v5 }
  0x97   : > { %v193_v10 = vsel %vm178_vm1, %v191_v7, 0.0 }
  0x98   : > { %v182_v11 = vrot.slane %v181_v8, 4  ;;  %v194_v12 = vadd.f32 %v193_v10, %v192_v9 }
  0x9a   : > { %v183_v13 = vadd.f32 %v182_v11, %v181_v8  ;;  %v195_v14 = vrot.slane %v194_v12, 4 }
  0x9c   : > { %v184_v15 = vrot.slane %v183_v13, 2  ;;  %v196_v16 = vadd.f32 %v195_v14, %v194_v12 }
  0x9e   : > { %v185_v17 = vadd.f32 %v184_v15, %v183_v13  ;;  %v197_v18 = vrot.slane %v196_v16, 2 }
  0xa0   : > { %v186_v19 = vrot.slane %v185_v17, 1  ;;  %v198_v20 = vadd.f32 %v197_v18, %v196_v16 }
  0xa2   : > { %v187_v21 = vadd.f32 %v186_v19, %v185_v17  ;;  %v199_v22 = vrot.slane %v198_v20, 1 }
  0xa4   : > { %189 = vst.msk [vmem:[%s143_s21] sm:$0x1] %vm188_vm2, %v187_v21  ;;  %v200_v23 = vadd.f32 %v199_v22, %v198_v20 }
  0xa6   : > { %201 = vst.msk [vmem:[%s143_s21 + $0x1] sm:$0x1] %vm188_vm2, %v200_v23 }
  0xa7 PF: > { %s12_s9 = sadd.s32 1, %s290_s9  }
  0xa8   : > { %p9_p5 = scmp.ge.s32.totalorder %s12_s9, 4  }
  0xaa   :  { %11 = sbr.rel (!%p9_p5) target bundleno = 1 (0x1), region = 58 }

// kernel: decoder_forward.9
= control target key start
LH: loop header
LB: loop body
LE: loop exit
PB: predicated region body
PF: predicated region fallthrough
CT: control target
= control target key end

     0   :  { %vm21_vm0 = vcmask 130048   ;;  %s88_s1 = inlined_call_operand.vmem [shape: f32[16,128], index: 1, kind: input, shape index: {}]   ;;  %s89_s0 = inlined_call_operand.vmem [shape: f32[2,16], index: 0, kind: input, shape index: {}]   ;;  %s90_s2 = inlined_call_operand.vmem [shape: f32[1,128], index: 2, kind: input, shape index: {}]   ;;  %s91_s3 = inlined_call_operand.vmem [shape: bf16[2,128], index: 3, kind: output, shape index: {}]  }
   0x1   :  { %v16_v0 = vld [vmem:[%s88_s1 + $0x8] sm:$0xff]  ;;  %v15_v1 = vld [vmem:[%s88_s1] sm:$0xff] }
   0x2   :  { %39 = vmatpush.msra.mxu0 %v16_v0  ;;  %v14_v2 = vld [vmem:[%s89_s0] sm:$0x3] }
   0x3   :  { %v52_v3 = vld [vmem:[%s90_s2] ss:$0 sm:$0xff] }
   0x4   :  { %40 = vmatpush.msra.mxu0 %v15_v1 }
   0x5   :  { %51 = vmatmul.msk.f32.vlgmr.msra.gmra.mxu0 %vm21_vm0, %v14_v2 }
  0x82   :  { %v42_v4 = vpop.f32.mrf.mxu0 }
  0x83   :  { %v43_v5 = vadd.f32 %v52_v3, %v42_v4 }
  0x85   :  { %v45_v6 = vpack.c.bf16 %v43_v5, %v43_v5 }
  0x87   :  { %46 = vst [vmem:[%s91_s3] sm:$0x1] %v45_v6 }

// kernel: tile.58
= control target key start
LH: loop header
LB: loop body
LE: loop exit
PB: predicated region body
PF: predicated region fallthrough
CT: control target
= control target key end

     0   :  { %s22_s0 = inlined_call_operand.vmem [shape: f32[8], index: 0, kind: input, shape index: {}]   ;;  %s23_s1 = inlined_call_operand.vmem [shape: f32[2,8], index: 1, kind: output, shape index: {}]  }
   0x1   :  { %v4_v0 = vld [vmem:[%s22_s0] ss:$0 sm:$0xff] }
   0x2   :  { %5 = vst [vmem:[%s23_s1] sm:$0x3] %v4_v0 }

// kernel: tile.59
= control target key start
LH: loop header
LB: loop body
LE: loop exit
PB: predicated region body
PF: predicated region fallthrough
CT: control target
= control target key end

     0   :  { %vm7_vm0 = vcmask 64512   ;;  %vm13_vm1 = vcmask 130112   ;;  %s39_s0 = inlined_call_operand.vmem [shape: f32[2,8], index: 0, kind: input, shape index: {}]   ;;  %s40_s1 = inlined_call_operand.vmem [shape: f32[1,16], index: 1, kind: output, shape index: {}]  }
   0x1   :  { %v4_v0 = vld [vmem:[%s39_s0] sm:$0x3]  ;;  %s22_s0 = smov 8  }
   0x2   :  { %5 = vst [vmem:[#allocation1] sm:$0x3] %v4_v0 }
   0x9   :  { %v10_v1 = vld [vmem:[#allocation1 + $0x1] sm:$0x1]   ;;  %v6_v2 = vld [vmem:[#allocation1] sm:$0x1]  }
   0xa   :  { %11 = vrot.lane.b32.xlu0 %v10_v1, %s22_s0  ;;  %8 = vst.msk [vmem:[#allocation0] sm:$0x1] %vm7_vm0, %v6_v2  }
  0x7c   :  { %v12_v3 = vpop.permute.xlu0 %11  }
  0x7d   :  { %14 = vst.msk [vmem:[#allocation0] sm:$0x1] %vm13_vm1, %v12_v3  }
  0x84   :  { %v17_v4 = vld [vmem:[#allocation0] sm:$0x1] }
  0x85   :  { %20 = vst [vmem:[%s40_s1] sm:$0x1] %v17_v4 }

// kernel: tile.68
= control target key start
LH: loop header
LB: loop body
LE: loop exit
PB: predicated region body
PF: predicated region fallthrough
CT: control target
= control target key end

     0   :  { %s22_s0 = inlined_call_operand.vmem [shape: f32[4], index: 0, kind: input, shape index: {}]   ;;  %s23_s1 = inlined_call_operand.vmem [shape: f32[2,4], index: 1, kind: output, shape index: {}]  }
   0x1   :  { %v4_v0 = vld [vmem:[%s22_s0] ss:$0 sm:$0xff] }
   0x2   :  { %5 = vst [vmem:[%s23_s1] sm:$0x3] %v4_v0 }

// kernel: tile.69
= control target key start
LH: loop header
LB: loop body
LE: loop exit
PB: predicated region body
PF: predicated region fallthrough
CT: control target
= control target key end

     0   :  { %vm7_vm0 = vcmask 31744   ;;  %vm13_vm1 = vcmask 64544   ;;  %s39_s0 = inlined_call_operand.vmem [shape: f32[2,4], index: 0, kind: input, shape index: {}]   ;;  %s40_s1 = inlined_call_operand.vmem [shape: f32[1,8], index: 1, kind: output, shape index: {}]  }
   0x1   :  { %v4_v0 = vld [vmem:[%s39_s0] sm:$0x3]  ;;  %s22_s0 = smov 4  }
   0x2   :  { %5 = vst [vmem:[#allocation1] sm:$0x3] %v4_v0 }
   0x9   :  { %v10_v1 = vld [vmem:[#allocation1 + $0x1] sm:$0x1]   ;;  %v6_v2 = vld [vmem:[#allocation1] sm:$0x1]  }
   0xa   :  { %11 = vrot.lane.b32.xlu0 %v10_v1, %s22_s0  ;;  %8 = vst.msk [vmem:[#allocation0] sm:$0x1] %vm7_vm0, %v6_v2  }
  0x7c   :  { %v12_v3 = vpop.permute.xlu0 %11  }
  0x7d   :  { %14 = vst.msk [vmem:[#allocation0] sm:$0x1] %vm13_vm1, %v12_v3  }
  0x84   :  { %v17_v4 = vld [vmem:[#allocation0] sm:$0x1] }
  0x85   :  { %20 = vst [vmem:[%s40_s1] sm:$0x1] %v17_v4 }

// kernel: decoder_forward.13
= control target key start
LH: loop header
LB: loop body
LE: loop exit
PB: predicated region body
PF: predicated region fallthrough
CT: control target
= control target key end

     0   :  { %s534_s18 = smov 0   ;;  %s536_s19 = smov 0   ;;  %s600_s0 = inlined_call_operand.vmem [shape: bf16[32,16], index: 0, kind: input, shape index: {}]   ;;  %s601_s1 = inlined_call_operand.vmem [shape: bf16[16,16], index: 1, kind: input, shape index: {}]   ;;  %s602_s2 = inlined_call_operand.vmem [shape: bf16[16,16], index: 2, kind: input, shape index: {}]   ;;  %s603_s3 = inlined_call_operand.vmem [shape: f32[1,16], index: 3, kind: input, shape index: {}]   ;;  %s604_s4 = inlined_call_operand.vmem [shape: f32[1,16], index: 4, kind: input, shape index: {}]   ;;  %s605_s5 = inlined_call_operand.vmem [shape: bf16[2,32,16], index: 5, kind: output, shape index: {}]  }
   0x1   :  { %s538_s20 = smov 0  }
   0x2 LB: > { %s547_s21 = sadd.s32 4294967295, %s502_s20   ;;  %s549_s22 = sadd.s32 1, %s502_s20   ;;  %s502_s20 = sphi %s538_s20, %s609_s20   ;;  %s498_s19 = sphi %s536_s19, %s608_s19   ;;  %s494_s18 = sphi %s534_s18, %s607_s18  }
   0x3   : > { %s129_s23 = ssub.s32 %s502_s20, %s549_s22  ;;  %s132_s24 = sadd.s32 1, %s498_s19 }
   0x4   : > { %p130_p0 = scmp.eq.s32.totalorder %s129_s23, 0  ;;  %p142_p1 = scmp.ne.s32.totalorder %s498_s19, %s494_s18 }
   0x5   : > { %p143_p2 = scmp.eq.s32.totalorder %s547_s21, 1  ;;  %p425_p3 = scmp.ge.s32.totalorder %s502_s20, 1 }
   0x6   : > { %s557_s25 = scalar_select %p130_p0, %s498_s19, %s132_s24  }
   0x7   : > { %p559_p4 = por %p143_p2, %p142_p1  ;;  %p188_p5 = scmp.lt.s32.totalorder %s502_s20, 3 }
   0x9   : > { %p189_p6 = pnand %p425_p3, %p188_p5 }
   0xa   : > { %s427_s6 = sshll.u32 (!%p189_p6), %s547_s21, 1  ;;  %s212_s15 = sand.u32 (!%p189_p6), 1, %s494_s18  }
   0xb   : > { %192 = sbr.rel (%p189_p6) target bundleno = 172 (0xac), region = 40  ;;  %p216_p7 = scmp.lt.s32.totalorder (!%p189_p6), %s427_s6, 3 }
   0xc   : > { %s426_s16 = sshll.u32 (!%p189_p6), %s212_s15, 4 }
   0xd   : > { %s214_s17 = scalar_lea.vmem (!%p189_p6), [#allocation2], %s426_s16 }
  0x10   : > { %v451_v0 = vld [vmem:[%s601_s1] sm:$0xff]  ;;  %s611_s6 = smov (!%p216_p7, %s427_s6), 3  ;;  %vm238_vm0 = vcmask 130048   ;;  %vm300_vm1 = vcmask 125952   ;;  %s453_s18 = sshll.u32 (%p559_p4), %s547_s21, 3 }
  0x11   : > { %v452_v1 = vld [vmem:[%s602_s2] sm:$0xff]  ;;  %249 = vmatpush.bf16.msra.mxu0 %v451_v0  ;;  %s428_s7 = sshll.u32 %s611_s6, 2  ;;  %s317_s24 = scalar_lea.vmem (%p559_p4), %s605_s5, %s453_s18 }
  0x12   : > { %271 = vmatpush.bf16.msra.mxu1 %v452_v1  ;;  %s219_s10 = scalar_lea.vmem %s600_s0, %s428_s7  ;;  %v478_v3 = vld [vmem:[%s603_s3] ss:$0 sm:$0xff] }
  0x13   : > { %v450_v2 = vld [vmem:[%s219_s10] sm:$0xff] }
  0x14   : > { %437 = vmatmul.msk.bf16.vlgmr.msra.gmra.mxu0 %vm238_vm0, %v450_v2  ;;  %v479_v4 = vld [vmem:[%s604_s4] ss:$0 sm:$0xff] }
  0x15   : > { %442 = vmatmul.msk.bf16.vlgmr.msra.gmra.mxu1 %vm238_vm0, %v450_v2 }
  0x91   : > { %v251_v5 = vpop.f32.mrf.mxu0 }
  0x92   : > { %v273_v6 = vpop.f32.mrf.mxu1  ;;  %v283_v7 = vmul.f32 %v478_v3, %v251_v5 }
  0x93   : > { %v290_v8 = vmul.f32 %v478_v3, %v273_v6 }
  0x94   : > { %v288_v9 = vadd.f32 %v479_v4, %v283_v7 }
  0x95   : > { %v292_v10 = vadd.f32 %v479_v4, %v290_v8 }
  0x96   : > { %v294_v11 = vmax.f32 %v288_v9, 0.0 }
  0x97   : > { %v296_v12 = vmax.f32 %v292_v10, 0.0 }
  0x98   : > { %v298_v13 = vpack.c.bf16 %v294_v11, %v294_v11 }
  0x99   : > { %v303_v14 = vpack.c.bf16 %v296_v12, %v296_v12  ;;  %v253_v15 = vpop.f32.mrf.mxu0 }
  0x9a   : > { %v275_v16 = vpop.f32.mrf.mxu1  ;;  %301 = vst.msk [vmem:[%s214_s17] sm:$0xf] %vm300_vm1, %v298_v13  ;;  %v284_v17 = vmul.f32 %v478_v3, %v253_v15 }
  0x9b   : > { %v291_v18 = vmul.f32 %v478_v3, %v275_v16  ;;  %443 = vst.msk [vmem:[%s214_s17 + $0x8] sm:$0xf] %vm300_vm1, %v303_v14 }
  0x9c   : > { %v289_v19 = vadd.f32 %v479_v4, %v284_v17 }
  0x9d   : > { %v293_v20 = vadd.f32 %v479_v4, %v291_v18 }
  0x9e   : > { %v295_v21 = vmax.f32 %v289_v19, 0.0 }
  0x9f   : > { %v297_v22 = vmax.f32 %v293_v20, 0.0  ;;  %314 = sbr.rel (!%p559_p4) target bundleno = 172 (0xac), region = 44 }
  0xa0   : > { %v299_v23 = vpack.c.bf16 %v295_v21, %v295_v21 }
  0xa1   : > { %v304_v24 = vpack.c.bf16 %v297_v22, %v297_v22 }
  0xa2   : > { %302 = vst.msk [vmem:[%s214_s17 + $0x4] sm:$0xf] %vm300_vm1, %v299_v23 }
  0xa3   : > { %444 = vst.msk [vmem:[%s214_s17 + $0xc] sm:$0xf] %vm300_vm1, %v304_v24 }
  0xa9   : > { %v334_v25 = vld [vmem:[%s214_s17] sm:$0xff]  }
  0xaa   : > { %v338_v26 = vld [vmem:[%s214_s17 + $0x8] sm:$0xff]   ;;  %335 = vst [vmem:[%s317_s24] sm:$0xff] %v334_v25  }
  0xab   : > { %339 = vst [vmem:[%s317_s24 + $0x10] sm:$0xff] %v338_v26  }
  0xac PF: > { %p12_p8 = scmp.ge.s32.totalorder %s549_s22, 4   ;;  %s607_s18 = smov %s498_s19 }
  0xad   : > { %s608_s19 = smov %s557_s25  ;;  %s609_s20 = smov %s549_s22 }
  0xae   :  { %14 = sbr.rel (!%p12_p8) target bundleno = 2 (0x2), region = 112 }

// kernel: decoder_forward.14
= control target key start
LH: loop header
LB: loop body
LE: loop exit
PB: predicated region body
PF: predicated region fallthrough
CT: control target
= control target key end

     0   :  { %s395_s9 = smov 0   ;;  %s436_s0 = inlined_call_operand.vmem [shape: bf16[128,8], index: 0, kind: input, shape index: {}]   ;;  %s437_s1 = inlined_call_operand.vmem [shape: bf16[8,16], index: 1, kind: input, shape index: {}]   ;;  %s438_s2 = inlined_call_operand.vmem [shape: f32[2,2,16], index: 2, kind: output, shape index: {}]  }
   0x1 LB: > { %s401_s10 = sadd.s32 4294967295, %s378_s9   ;;  %p331_p0 = scmp.ge.s32.totalorder %s378_s9, 1  ;;  %s378_s9 = sphi %s395_s9, %s12_s9  }
   0x2   : > { %p113_p1 = scmp.lt.s32.totalorder %s378_s9, 3 }
   0x4   : > { %p114_p2 = pnand %p331_p0, %p113_p1 }
   0x5   : > { %s332_s13 = sshll.u32 (!%p114_p2), %s401_s10, 3  ;;  %p140_p4 = scmp.lt.s32.totalorder (!%p114_p2), %s401_s10, 1 }
   0x6   : > { %117 = sbr.rel (%p114_p2) target bundleno = 180 (0xb4), region = 28  ;;  %p135_p3 = scmp.lt.s32.totalorder (!%p114_p2), %s332_s13, 15 }
   0xb   : > { %v153_v0 = vld [vmem:[%s437_s1] sm:$0xf]  ;;  %vm187_vm0 = vcmask 1043456   ;;  %s440_s13 = smov (!%p135_p3, %s332_s13), 15  ;;  %vm174_vm1 = vcmask 64512   ;;  %vm220_vm2 = vcmask 130048  }
   0xc   : > { %v189_v1 = vsel %vm187_vm0, %v153_v0, 0  ;;  %s333_s14 = sshll.u32 %s440_s13, 2  ;;  %s442_s10 = smov (!%p140_p4, %s401_s10), 1  ;;  %vm242_vm3 = vcmask 122880  }
   0xd   : > { %198 = vmatpush.bf16.msra.mxu0 %v189_v1  ;;  %361 = vmatpush.bf16.msra.mxu1 %v189_v1  ;;  %s138_s17 = scalar_lea.vmem %s436_s0, %s333_s14  ;;  %s334_s18 = sshll.u32 %s442_s10, 1 }
   0xe   : > { %362 = vmatpush.bf16.msra.mxu2 %v189_v1  ;;  %363 = vmatpush.bf16.msra.mxu3 %v189_v1  ;;  %v357_v2 = vld [vmem:[%s138_s17] sm:$0xff]  ;;  %v358_v3 = vld [vmem:[%s138_s17 + $0x8] sm:$0xff]  ;;  %v359_v4 = vld [vmem:[%s138_s17 + $0x10] sm:$0xff]  ;;  %s143_s21 = scalar_lea.vmem %s438_s2, %s334_s18 }
   0xf   : > { %v360_v5 = vld [vmem:[%s138_s17 + $0x18] sm:$0xff] }
  0x10   : > { %351 = vmatmul.msk.bf16.vlgmr.msra.gmra.mxu0 %vm174_vm1, %v357_v2  ;;  %352 = vmatmul.msk.bf16.vlgmr.msra.gmra.mxu1 %vm174_vm1, %v358_v3 }
  0x11   : > { %353 = vmatmul.msk.bf16.vlgmr.msra.gmra.mxu2 %vm174_vm1, %v359_v4  ;;  %354 = vmatmul.msk.bf16.vlgmr.msra.gmra.mxu3 %vm174_vm1, %v360_v5 }
  0x8d   : > { %v200_v6 = vpop.f32.mrf.mxu0  ;;  %v205_v7 = vpop.f32.mrf.mxu1 }
  0x8e   : > { %v244_v8 = vmul.f32 %v200_v6, %v200_v6  ;;  %v221_v13 = vsel %vm220_vm2, %v200_v6, 0.0  ;;  %v246_v14 = vmul.f32 %v205_v7, %v205_v7  ;;  %v224_v19 = vsel %vm220_vm2, %v205_v7, 0.0 }
  0x90   : > { %v252_v18 = vsel %vm220_vm2, %v244_v8, 0.0  ;;  %v255_v24 = vsel %vm220_vm2, %v246_v14, 0.0 }
  0x94   : > { %v210_v9 = vpop.f32.mrf.mxu2  ;;  %v215_v10 = vpop.f32.mrf.mxu3 }
  0x95   : > { %v202_v11 = vpop.f32.mrf.mxu0  ;;  %v207_v12 = vpop.f32.mrf.mxu1  ;;  %v248_v25 = vmul.f32 %v210_v9, %v210_v9  ;;  %v228_v29 = vsel %vm220_vm2, %v210_v9, 0.0  ;;  %v250_v37 = vmul.f32 %v215_v10, %v215_v10  ;;  %v232_v41 = vsel %vm220_vm2, %v215_v10, 0.0 }
  0x96   : > { %v222_v15 = vsel %vm220_vm2, %v202_v11, 0.0  ;;  %v245_v16 = vmul.f32 %v202_v11, %v202_v11  ;;  %v247_v21 = vmul.f32 %v207_v12, %v207_v12  ;;  %v226_v26 = vsel %vm220_vm2, %v207_v12, 0.0 }
  0x97   : > { %v223_v17 = vadd.f32 %v222_v15, %v221_v13  ;;  %v259_v36 = vsel %vm220_vm2, %v248_v25, 0.0  ;;  %v263_v46 = vsel %vm220_vm2, %v250_v37, 0.0 }
  0x98   : > { %v253_v20 = vsel %vm220_vm2, %v245_v16, 0.0  ;;  %v257_v30 = vsel %vm220_vm2, %v247_v21, 0.0 }
  0x99   : > { %v254_v22 = vadd.f32 %v253_v20, %v252_v18  ;;  %v225_v23 = vadd.f32 %v224_v19, %v223_v17 }
  0x9b   : > { %v227_v27 = vadd.f32 %v226_v26, %v225_v23  ;;  %v256_v28 = vadd.f32 %v255_v24, %v254_v22 }
  0x9c   : > { %v212_v31 = vpop.f32.mrf.mxu2  ;;  %v217_v35 = vpop.f32.mrf.mxu3 }
  0x9d   : > { %v258_v32 = vadd.f32 %v257_v30, %v256_v28  ;;  %v229_v33 = vadd.f32 %v228_v29, %v227_v27  ;;  %v249_v34 = vmul.f32 %v212_v31, %v212_v31  ;;  %v230_v38 = vsel %vm220_vm2, %v212_v31, 0.0 }
  0x9e   : > { %v251_v43 = vmul.f32 %v217_v35, %v217_v35  ;;  %v234_v47 = vsel %vm220_vm2, %v217_v35, 0.0 }
  0x9f   : > { %v231_v39 = vadd.f32 %v230_v38, %v229_v33  ;;  %v260_v40 = vadd.f32 %v259_v36, %v258_v32  ;;  %v261_v42 = vsel %vm220_vm2, %v249_v34, 0.0 }
  0xa0   : > { %v265_v50 = vsel %vm220_vm2, %v251_v43, 0.0 }
  0xa1   : > { %v262_v44 = vadd.f32 %v261_v42, %v260_v40  ;;  %v233_v45 = vadd.f32 %v232_v41, %v231_v39 }
  0xa3   : > { %v235_v48 = vadd.f32 %v234_v47, %v233_v45  ;;  %v264_v49 = vadd.f32 %v263_v46, %v262_v44 }
  0xa5   : > { %v236_v51 = vrot.slane %v235_v48, 4  ;;  %v266_v52 = vadd.f32 %v265_v50, %v264_v49 }
  0xa7   : > { %v237_v53 = vadd.f32 %v236_v51, %v235_v48  ;;  %v267_v54 = vrot.slane %v266_v52, 4 }
  0xa9   : > { %v238_v55 = vrot.slane %v237_v53, 2  ;;  %v268_v56 = vadd.f32 %v267_v54, %v266_v52 }
  0xab   : > { %v239_v57 = vadd.f32 %v238_v55, %v237_v53  ;;  %v269_v58 = vrot.slane %v268_v56, 2 }
  0xad   : > { %v240_v59 = vrot.slane %v239_v57, 1  ;;  %v270_v60 = vadd.f32 %v269_v58, %v268_v56 }
  0xaf   : > { %v241_v61 = vadd.f32 %v240_v59, %v239_v57  ;;  %v271_v62 = vrot.slane %v270_v60, 1 }
  0xb1   : > { %243 = vst.msk [vmem:[%s143_s21] sm:$0x1] %vm242_vm3, %v241_v61  ;;  %v272_v63 = vadd.f32 %v271_v62, %v270_v60 }
  0xb3   : > { %273 = vst.msk [vmem:[%s143_s21 + $0x1] sm:$0x1] %vm242_vm3, %v272_v63 }
  0xb4 PF: > { %s12_s9 = sadd.s32 1, %s378_s9  }
  0xb5   : > { %p9_p5 = scmp.ge.s32.totalorder %s12_s9, 4  }
  0xb7   :  { %11 = sbr.rel (!%p9_p5) target bundleno = 1 (0x1), region = 58 }

// kernel: tile.78
= control target key start
LH: loop header
LB: loop body
LE: loop exit
PB: predicated region body
PF: predicated region fallthrough
CT: control target
= control target key end

     0   :  { %s22_s0 = inlined_call_operand.vmem [shape: f32[3], index: 0, kind: input, shape index: {}]   ;;  %s23_s1 = inlined_call_operand.vmem [shape: f32[2,3], index: 1, kind: output, shape index: {}]  }
   0x1   :  { %v4_v0 = vld [vmem:[%s22_s0] ss:$0 sm:$0xff] }
   0x2   :  { %5 = vst [vmem:[%s23_s1] sm:$0x3] %v4_v0 }

// kernel: tile.79
= control target key start
LH: loop header
LB: loop body
LE: loop exit
PB: predicated region body
PF: predicated region fallthrough
CT: control target
= control target key end

     0   :  { %vm7_vm0 = vcmask 23552   ;;  %vm13_vm1 = vcmask 48152   ;;  %s39_s0 = inlined_call_operand.vmem [shape: f32[2,3], index: 0, kind: input, shape index: {}]   ;;  %s40_s1 = inlined_call_operand.vmem [shape: f32[1,6], index: 1, kind: output, shape index: {}]  }
   0x1   :  { %v4_v0 = vld [vmem:[%s39_s0] sm:$0x3]  ;;  %s22_s0 = smov 3  }
   0x2   :  { %5 = vst [vmem:[#allocation1] sm:$0x3] %v4_v0 }
   0x9   :  { %v10_v1 = vld [vmem:[#allocation1 + $0x1] sm:$0x1]   ;;  %v6_v2 = vld [vmem:[#allocation1] sm:$0x1]  }
   0xa   :  { %11 = vrot.lane.b32.xlu0 %v10_v1, %s22_s0  ;;  %8 = vst.msk [vmem:[#allocation0] sm:$0x1] %vm7_vm0, %v6_v2  }
  0x7c   :  { %v12_v3 = vpop.permute.xlu0 %11  }
  0x7d   :  { %14 = vst.msk [vmem:[#allocation0] sm:$0x1] %vm13_vm1, %v12_v3  }
  0x84   :  { %v17_v4 = vld [vmem:[#allocation0] sm:$0x1] }
  0x85   :  { %20 = vst [vmem:[%s40_s1] sm:$0x1] %v17_v4 }

// kernel: decoder_forward.15
= control target key start
LH: loop header
LB: loop body
LE: loop exit
PB: predicated region body
PF: predicated region fallthrough
CT: control target
= control target key end

     0   :  { %s714_s18 = smov 0   ;;  %s716_s19 = smov 0   ;;  %s854_s0 = inlined_call_operand.vmem [shape: bf16[128,8], index: 0, kind: input, shape index: {}]   ;;  %s855_s1 = inlined_call_operand.vmem [shape: bf16[8,8], index: 1, kind: input, shape index: {}]   ;;  %s856_s2 = inlined_call_operand.vmem [shape: bf16[8,8], index: 2, kind: input, shape index: {}]   ;;  %s857_s3 = inlined_call_operand.vmem [shape: f32[1,8], index: 3, kind: input, shape index: {}]   ;;  %s858_s4 = inlined_call_operand.vmem [shape: f32[1,8], index: 4, kind: input, shape index: {}]   ;;  %s859_s5 = inlined_call_operand.vmem [shape: bf16[2,128,8], index: 5, kind: output, shape index: {}]  }
   0x1   :  { %s718_s20 = smov 0  }
   0x2 LB: > { %s727_s21 = sadd.s32 4294967295, %s682_s20   ;;  %s729_s22 = sadd.s32 1, %s682_s20   ;;  %s682_s20 = sphi %s718_s20, %s863_s20   ;;  %s678_s19 = sphi %s716_s19, %s862_s19   ;;  %s674_s18 = sphi %s714_s18, %s861_s18  }
   0x3   : > { %s129_s23 = ssub.s32 %s682_s20, %s729_s22  ;;  %s132_s24 = sadd.s32 1, %s678_s19 }
   0x4   : > { %p130_p0 = scmp.eq.s32.totalorder %s129_s23, 0  ;;  %p142_p1 = scmp.ne.s32.totalorder %s678_s19, %s674_s18 }
   0x5   : > { %p143_p2 = scmp.eq.s32.totalorder %s727_s21, 1  ;;  %p586_p3 = scmp.ge.s32.totalorder %s682_s20, 1 }
   0x6   : > { %s737_s25 = scalar_select %p130_p0, %s678_s19, %s132_s24  }
   0x7   : > { %p739_p4 = por %p143_p2, %p142_p1  ;;  %p188_p5 = scmp.lt.s32.totalorder %s682_s20, 3 }
   0x9   : > { %p189_p6 = pnand %p586_p3, %p188_p5 }
   0xa   : > { %s588_s6 = sshll.u32 (!%p189_p6), %s727_s21, 3  ;;  %s212_s15 = sand.u32 (!%p189_p6), 1, %s674_s18  }
   0xb   : > { %192 = sbr.rel (%p189_p6) target bundleno = 195 (0xc3), region = 40  ;;  %p216_p7 = scmp.lt.s32.totalorder (!%p189_p6), %s588_s6, 15 }
   0xc   : > { %s587_s16 = sshll.u32 (!%p189_p6), %s212_s15, 6 }
   0xd   : > { %s770_s17 = scalar_lea.vmem (!%p189_p6), [#allocation2], %s587_s16 }
  0x10   : > { %v231_v0 = vld [vmem:[%s855_s1] sm:$0xf]  ;;  %vm265_vm0 = vcmask 1043456   ;;  %s865_s6 = smov (!%p216_p7, %s588_s6), 15  ;;  %vm252_vm1 = vcmask 64512   ;;  %vm395_vm2 = vcmask 60416  }
  0x11   : > { %v298_v1 = vld [vmem:[%s856_s2] sm:$0xf]  ;;  %v267_v2 = vsel %vm265_vm0, %v231_v0, 0  ;;  %s589_s7 = sshll.u32 %s865_s6, 2  ;;  %s631_s18 = sshll.u32 (%p739_p4), %s727_s21, 5 }
  0x12   : > { %v300_v3 = vsel %vm265_vm0, %v298_v1, 0  ;;  %276 = vmatpush.bf16.msra.mxu0 %v267_v2  ;;  %632 = vmatpush.bf16.msra.mxu2 %v267_v2  ;;  %s219_s10 = scalar_lea.vmem %s854_s0, %s589_s7  ;;  %v756_v8 = vld [vmem:[%s857_s3] ss:$0 sm:$0xff]  ;;  %s430_s24 = scalar_lea.vmem (%p739_p4), %s859_s5, %s631_s18 }
  0x13   : > { %309 = vmatpush.bf16.msra.mxu1 %v300_v3  ;;  %633 = vmatpush.bf16.msra.mxu3 %v300_v3  ;;  %v627_v4 = vld [vmem:[%s219_s10] sm:$0xff]  ;;  %v629_v5 = vld [vmem:[%s219_s10 + $0x10] sm:$0xff]  ;;  %v628_v6 = vld [vmem:[%s219_s10 + $0x8] sm:$0xff] }
  0x14   : > { %v630_v7 = vld [vmem:[%s219_s10 + $0x18] sm:$0xff]  ;;  %v761_v9 = vld [vmem:[%s858_s4] ss:$0 sm:$0xff] }
  0x15   : > { %606 = vmatmul.msk.bf16.vlgmr.msra.gmra.mxu0 %vm252_vm1, %v627_v4  ;;  %608 = vmatmul.msk.bf16.vlgmr.msra.gmra.mxu2 %vm252_vm1, %v629_v5 }
  0x16   : > { %610 = vmatmul.msk.bf16.vlgmr.msra.gmra.mxu1 %vm252_vm1, %v627_v4  ;;  %612 = vmatmul.msk.bf16.vlgmr.msra.gmra.mxu3 %vm252_vm1, %v629_v5 }
  0x25   : > { %607 = vmatmul.msk.bf16.gmra.mxu0 %vm252_vm1, %v628_v6  ;;  %609 = vmatmul.msk.bf16.gmra.mxu2 %vm252_vm1, %v630_v7 }
  0x26   : > { %611 = vmatmul.msk.bf16.gmra.mxu1 %vm252_vm1, %v628_v6  ;;  %613 = vmatmul.msk.bf16.gmra.mxu3 %vm252_vm1, %v630_v7 }
  0x92   : > { %v278_v10 = vpop.f32.mrf.mxu0 }
  0x93   : > { %v336_v11 = vmul.f32 %v756_v8, %v278_v10  ;;  %v311_v12 = vpop.f32.mrf.mxu1 }
  0x94   : > { %v355_v13 = vmul.f32 %v756_v8, %v311_v12 }
  0x95   : > { %v347_v14 = vadd.f32 %v761_v9, %v336_v11 }
  0x96   : > { %v363_v15 = vadd.f32 %v761_v9, %v355_v13 }
  0x97   : > { %v371_v16 = vmax.f32 %v347_v14, 0.0 }
  0x98   : > { %v379_v17 = vmax.f32 %v363_v15, 0.0  ;;  %v288_v18 = vpop.f32.mrf.mxu2 }
  0x99   : > { %v387_v19 = vpack.c.bf16 %v371_v16, %v371_v16  ;;  %v340_v20 = vmul.f32 %v756_v8, %v288_v18  ;;  %v321_v21 = vpop.f32.mrf.mxu3 }
  0x9a   : > { %v404_v22 = vpack.c.bf16 %v379_v17, %v379_v17  ;;  %v359_v23 = vmul.f32 %v756_v8, %v321_v21  ;;  %v280_v24 = vpop.f32.mrf.mxu0 }
  0x9b   : > { %396 = vst.msk [vmem:[%s770_s17] sm:$0xf] %vm395_vm2, %v387_v19  ;;  %v351_v25 = vadd.f32 %v761_v9, %v340_v20  ;;  %v337_v26 = vmul.f32 %v756_v8, %v280_v24  ;;  %v313_v27 = vpop.f32.mrf.mxu1 }
  0x9c   : > { %614 = vst.msk [vmem:[%s770_s17 + $0x20] sm:$0xf] %vm395_vm2, %v404_v22  ;;  %v367_v28 = vadd.f32 %v761_v9, %v359_v23  ;;  %v356_v29 = vmul.f32 %v756_v8, %v313_v27 }
  0x9d   : > { %v375_v30 = vmax.f32 %v351_v25, 0.0  ;;  %v348_v31 = vadd.f32 %v761_v9, %v337_v26 }
  0x9e   : > { %v383_v32 = vmax.f32 %v367_v28, 0.0  ;;  %v364_v33 = vadd.f32 %v761_v9, %v356_v29 }
  0x9f   : > { %v391_v34 = vpack.c.bf16 %v375_v30, %v375_v30  ;;  %v372_v35 = vmax.f32 %v348_v31, 0.0 }
  0xa0   : > { %v408_v36 = vpack.c.bf16 %v383_v32, %v383_v32  ;;  %v380_v37 = vmax.f32 %v364_v33, 0.0  ;;  %v290_v38 = vpop.f32.mrf.mxu2 }
  0xa1   : > { %400 = vst.msk [vmem:[%s770_s17 + $0x10] sm:$0xf] %vm395_vm2, %v391_v34  ;;  %v388_v39 = vpack.c.bf16 %v372_v35, %v372_v35  ;;  %v341_v40 = vmul.f32 %v756_v8, %v290_v38  ;;  %v323_v41 = vpop.f32.mrf.mxu3 }
  0xa2   : > { %618 = vst.msk [vmem:[%s770_s17 + $0x30] sm:$0xf] %vm395_vm2, %v408_v36  ;;  %v405_v42 = vpack.c.bf16 %v380_v37, %v380_v37  ;;  %v360_v43 = vmul.f32 %v756_v8, %v323_v41  ;;  %v283_v44 = vpop.f32.mrf.mxu0 }
  0xa3   : > { %397 = vst.msk [vmem:[%s770_s17 + $0x4] sm:$0xf] %vm395_vm2, %v388_v39  ;;  %v352_v45 = vadd.f32 %v761_v9, %v341_v40  ;;  %v338_v46 = vmul.f32 %v756_v8, %v283_v44  ;;  %v316_v47 = vpop.f32.mrf.mxu1 }
  0xa4   : > { %615 = vst.msk [vmem:[%s770_s17 + $0x24] sm:$0xf] %vm395_vm2, %v405_v42  ;;  %v368_v48 = vadd.f32 %v761_v9, %v360_v43  ;;  %v357_v49 = vmul.f32 %v756_v8, %v316_v47 }
  0xa5   : > { %v376_v50 = vmax.f32 %v352_v45, 0.0  ;;  %v349_v51 = vadd.f32 %v761_v9, %v338_v46 }
  0xa6   : > { %v384_v52 = vmax.f32 %v368_v48, 0.0  ;;  %v365_v53 = vadd.f32 %v761_v9, %v357_v49 }
  0xa7   : > { %v392_v54 = vpack.c.bf16 %v376_v50, %v376_v50  ;;  %v373_v55 = vmax.f32 %v349_v51, 0.0 }
  0xa8   : > { %v409_v56 = vpack.c.bf16 %v384_v52, %v384_v52  ;;  %v381_v57 = vmax.f32 %v365_v53, 0.0  ;;  %v293_v58 = vpop.f32.mrf.mxu2 }
  0xa9   : > { %401 = vst.msk [vmem:[%s770_s17 + $0x14] sm:$0xf] %vm395_vm2, %v392_v54  ;;  %v389_v59 = vpack.c.bf16 %v373_v55, %v373_v55  ;;  %v342_v60 = vmul.f32 %v756_v8, %v293_v58  ;;  %v326_v61 = vpop.f32.mrf.mxu3 }
  0xaa   : > { %619 = vst.msk [vmem:[%s770_s17 + $0x34] sm:$0xf] %vm395_vm2, %v409_v56  ;;  %v406_v62 = vpack.c.bf16 %v381_v57, %v381_v57  ;;  %v361_v63 = vmul.f32 %v756_v8, %v326_v61  ;;  %v285_v0 = vpop.f32.mrf.mxu0 }
  0xab   : > { %398 = vst.msk [vmem:[%s770_s17 + $0x8] sm:$0xf] %vm395_vm2, %v389_v59  ;;  %v353_v1 = vadd.f32 %v761_v9, %v342_v60  ;;  %v339_v2 = vmul.f32 %v756_v8, %v285_v0  ;;  %v318_v3 = vpop.f32.mrf.mxu1  ;;  %v463_v30 = vld [vmem:[%s770_s17 + $0x20] sm:$0xff] (%p739_p4)  }
  0xac   : > { %616 = vst.msk [vmem:[%s770_s17 + $0x28] sm:$0xf] %vm395_vm2, %v406_v62  ;;  %v369_v4 = vadd.f32 %v761_v9, %v361_v63  ;;  %v358_v5 = vmul.f32 %v756_v8, %v318_v3 }
  0xad   : > { %v377_v6 = vmax.f32 %v353_v1, 0.0  ;;  %v350_v7 = vadd.f32 %v761_v9, %v339_v2  ;;  %464 = vst [vmem:[%s430_s24 + $0x40] sm:$0xff] (%p739_p4), %v463_v30  }
  0xae   : > { %v385_v10 = vmax.f32 %v369_v4, 0.0  ;;  %v366_v11 = vadd.f32 %v761_v9, %v358_v5 }
  0xaf   : > { %v393_v12 = vpack.c.bf16 %v377_v6, %v377_v6  ;;  %v374_v13 = vmax.f32 %v350_v7, 0.0 }
  0xb0   : > { %v410_v14 = vpack.c.bf16 %v385_v10, %v385_v10  ;;  %v382_v15 = vmax.f32 %v366_v11, 0.0  ;;  %v295_v16 = vpop.f32.mrf.mxu2  ;;  %v455_v28 = vld [vmem:[%s770_s17 + $0x10] sm:$0xff] (%p739_p4)  }
  0xb1   : > { %402 = vst.msk [vmem:[%s770_s17 + $0x18] sm:$0xf] %vm395_vm2, %v393_v12  ;;  %v390_v17 = vpack.c.bf16 %v374_v13, %v374_v13  ;;  %v343_v18 = vmul.f32 %v756_v8, %v295_v16  ;;  %v328_v19 = vpop.f32.mrf.mxu3  ;;  %v471_v32 = vld [vmem:[%s770_s17 + $0x30] sm:$0xff] (%p739_p4)  }
  0xb2   : > { %620 = vst.msk [vmem:[%s770_s17 + $0x38] sm:$0xf] %vm395_vm2, %v410_v14  ;;  %v407_v20 = vpack.c.bf16 %v382_v15, %v382_v15  ;;  %v362_v21 = vmul.f32 %v756_v8, %v328_v19  ;;  %v447_v8 = vld [vmem:[%s770_s17] sm:$0xff] (%p739_p4)  }
  0xb3   : > { %399 = vst.msk [vmem:[%s770_s17 + $0xc] sm:$0xf] %vm395_vm2, %v390_v17  ;;  %v354_v22 = vadd.f32 %v761_v9, %v343_v18 }
  0xb4   : > { %617 = vst.msk [vmem:[%s770_s17 + $0x2c] sm:$0xf] %vm395_vm2, %v407_v20  ;;  %v370_v23 = vadd.f32 %v761_v9, %v362_v21 }
  0xb5   : > { %v378_v24 = vmax.f32 %v354_v22, 0.0  ;;  %448 = vst [vmem:[%s430_s24] sm:$0xff] (%p739_p4), %v447_v8  }
  0xb6   : > { %v386_v25 = vmax.f32 %v370_v23, 0.0  ;;  %427 = sbr.rel (!%p739_p4) target bundleno = 195 (0xc3), region = 44  ;;  %456 = vst [vmem:[%s430_s24 + $0x10] sm:$0xff] (%p739_p4), %v455_v28  }
  0xb7   : > { %v394_v26 = vpack.c.bf16 %v378_v24, %v378_v24  ;;  %472 = vst [vmem:[%s430_s24 + $0x50] sm:$0xff] (%p739_p4), %v471_v32  }
  0xb8   : > { %v411_v27 = vpack.c.bf16 %v386_v25, %v386_v25 }
  0xb9   : > { %403 = vst.msk [vmem:[%s770_s17 + $0x1c] sm:$0xf] %vm395_vm2, %v394_v26 }
  0xba   : > { %621 = vst.msk [vmem:[%s770_s17 + $0x3c] sm:$0xf] %vm395_vm2, %v411_v27  ;;  %v451_v9 = vld [vmem:[%s770_s17 + $0x8] sm:$0xff] (%p739_p4)  }
  0xbb   : > { %452 = vst [vmem:[%s430_s24 + $0x8] sm:$0xff] %v451_v9   ;;  %v467_v31 = vld [vmem:[%s770_s17 + $0x28] sm:$0xff]  }
  0xbc   : > { %468 = vst [vmem:[%s430_s24 + $0x48] sm:$0xff] %v467_v31  }
  0xc0   : > { %v459_v29 = vld [vmem:[%s770_s17 + $0x18] sm:$0xff]  }
  0xc1   : > { %460 = vst [vmem:[%s430_s24 + $0x18] sm:$0xff] %v459_v29   ;;  %v475_v33 = vld [vmem:[%s770_s17 + $0x38] sm:$0xff]  }
  0xc2   : > { %476 = vst [vmem:[%s430_s24 + $0x58] sm:$0xff] %v475_v33  }
  0xc3 PF: > { %p12_p8 = scmp.ge.s32.totalorder %s729_s22, 4   ;;  %s861_s18 = smov %s678_s19 }
  0xc4   : > { %s862_s19 = smov %s737_s25  ;;  %s863_s20 = smov %s729_s22 }
  0xc5   :  { %14 = sbr.rel (!%p12_p8) target bundleno = 2 (0x2), region = 112 }

// kernel: decoder_forward.16
= control target key start
LH: loop header
LB: loop body
LE: loop exit
PB: predicated region body
PF: predicated region fallthrough
CT: control target
= control target key end

     0   :  { %s767_s9 = smov 0   ;;  %s942_s0 = inlined_call_operand.vmem [shape: bf16[512,4], index: 0, kind: input, shape index: {}]   ;;  %s943_s1 = inlined_call_operand.vmem [shape: bf16[4,12], index: 1, kind: input, shape index: {}]   ;;  %s944_s2 = inlined_call_operand.vmem [shape: f32[2,2,12], index: 2, kind: output, shape index: {}]  }
   0x1 LB: > { %s773_s10 = sadd.s32 4294967295, %s750_s9   ;;  %p631_p0 = scmp.ge.s32.totalorder %s750_s9, 1  ;;  %s750_s9 = sphi %s767_s9, %s12_s9  }
   0x2   : > { %p113_p1 = scmp.lt.s32.totalorder %s750_s9, 3 }
   0x4   : > { %p114_p2 = pnand %p631_p0, %p113_p1 }
   0x5   : > { %s632_s13 = sshll.u32 (!%p114_p2), %s773_s10, 5  ;;  %p140_p4 = scmp.lt.s32.totalorder (!%p114_p2), %s773_s10, 1 }
   0x6   : > { %117 = sbr.rel (%p114_p2) target bundleno = 264 (0x108), region = 28  ;;  %p135_p3 = scmp.lt.s32.totalorder (!%p114_p2), %s632_s13, 63 }
   0xb   : > { %v177_v0 = vld [vmem:[%s943_s1] sm:$0x3]  ;;  %vm307_vm0 = vcmask 1041408   ;;  %s946_s13 = smov (!%p135_p3, %s632_s13), 63  ;;  %vm258_vm1 = vcmask 31744   ;;  %vm400_vm2 = vcmask 97280  }
   0xc   : > { %v309_v1 = vsel %vm307_vm0, %v177_v0, 0  ;;  %s633_s14 = sshll.u32 %s946_s13, 2  ;;  %s948_s10 = smov (!%p140_p4, %s773_s10), 1  ;;  %vm470_vm3 = vcmask 90112  }
   0xd   : > { %318 = vmatpush.bf16.msra.mxu0 %v309_v1  ;;  %733 = vmatpush.bf16.msra.mxu1 %v309_v1  ;;  %s138_s17 = scalar_lea.vmem %s942_s0, %s633_s14  ;;  %s634_s18 = sshll.u32 %s948_s10, 1 }
   0xe   : > { %734 = vmatpush.bf16.msra.mxu2 %v309_v1  ;;  %735 = vmatpush.bf16.msra.mxu3 %v309_v1  ;;  %v717_v2 = vld [vmem:[%s138_s17] sm:$0xff]  ;;  %v718_v6 = vld [vmem:[%s138_s17 + $0x8] sm:$0xff]  ;;  %v719_v10 = vld [vmem:[%s138_s17 + $0x10] sm:$0xff]  ;;  %s143_s21 = scalar_lea.vmem %s944_s2, %s634_s18 }
   0xf   : > { %v721_v3 = vld [vmem:[%s138_s17 + $0x20] sm:$0xff]  ;;  %v722_v7 = vld [vmem:[%s138_s17 + $0x28] sm:$0xff]  ;;  %v723_v11 = vld [vmem:[%s138_s17 + $0x30] sm:$0xff] }
  0x10   : > { %v725_v4 = vld [vmem:[%s138_s17 + $0x40] sm:$0xff]  ;;  %699 = vmatmul.msk.bf16.vlgmr.msra.gmra.mxu0 %vm258_vm1, %v717_v2  ;;  %703 = vmatmul.msk.bf16.vlgmr.msra.gmra.mxu1 %vm258_vm1, %v721_v3  ;;  %v726_v8 = vld [vmem:[%s138_s17 + $0x48] sm:$0xff]  ;;  %v727_v12 = vld [vmem:[%s138_s17 + $0x50] sm:$0xff] }
  0x11   : > { %v729_v5 = vld [vmem:[%s138_s17 + $0x60] sm:$0xff]  ;;  %707 = vmatmul.msk.bf16.vlgmr.msra.gmra.mxu2 %vm258_vm1, %v725_v4  ;;  %v730_v9 = vld [vmem:[%s138_s17 + $0x68] sm:$0xff]  ;;  %v731_v13 = vld [vmem:[%s138_s17 + $0x70] sm:$0xff] }
  0x12   : > { %711 = vmatmul.msk.bf16.vlgmr.msra.gmra.mxu3 %vm258_vm1, %v729_v5  ;;  %v720_v14 = vld [vmem:[%s138_s17 + $0x18] sm:$0xff] }
  0x13   : > { %v724_v15 = vld [vmem:[%s138_s17 + $0x38] sm:$0xff] }
  0x14   : > { %v728_v16 = vld [vmem:[%s138_s17 + $0x58] sm:$0xff] }
  0x15   : > { %v732_v17 = vld [vmem:[%s138_s17 + $0x78] sm:$0xff] }
  0x20   : > { %700 = vmatmul.msk.bf16.gmra.mxu0 %vm258_vm1, %v718_v6  ;;  %704 = vmatmul.msk.bf16.gmra.mxu1 %vm258_vm1, %v722_v7 }
  0x21   : > { %708 = vmatmul.msk.bf16.gmra.mxu2 %vm258_vm1, %v726_v8 }
  0x22   : > { %712 = vmatmul.msk.bf16.gmra.mxu3 %vm258_vm1, %v730_v9 }
  0x30   : > { %701 = vmatmul.msk.bf16.gmra.mxu0 %vm258_vm1, %v719_v10  ;;  %705 = vmatmul.msk.bf16.gmra.mxu1 %vm258_vm1, %v723_v11 }
  0x31   : > { %709 = vmatmul.msk.bf16.gmra.mxu2 %vm258_vm1, %v727_v12 }
  0x32   : > { %713 = vmatmul.msk.bf16.gmra.mxu3 %vm258_vm1, %v731_v13 }
  0x40   : > { %702 = vmatmul.msk.bf16.gmra.mxu0 %vm258_vm1, %v720_v14  ;;  %706 = vmatmul.msk.bf16.gmra.mxu1 %vm258_vm1, %v724_v15 }
  0x41   : > { %710 = vmatmul.msk.bf16.gmra.mxu2 %vm258_vm1, %v728_v16 }
  0x42   : > { %714 = vmatmul.msk.bf16.gmra.mxu3 %vm258_vm1, %v732_v17 }
  0x8d   : > { %v320_v18 = vpop.f32.mrf.mxu0  ;;  %v340_v19 = vpop.f32.mrf.mxu1 }
  0x8e   : > { %v472_v35 = vmul.f32 %v320_v18, %v320_v18  ;;  %v401_v39 = vsel %vm400_vm2, %v320_v18, 0.0  ;;  %v480_v8 = vmul.f32 %v340_v19, %v340_v19  ;;  %v416_v14 = vsel %vm400_vm2, %v340_v19, 0.0 }
  0x90   : > { %v504_v44 = vsel %vm400_vm2, %v472_v35, 0.0 }
  0x94   : > { %v802_v22 = vpop.f32.mrf.mxu2 }
  0x95   : > { %v322_v20 = vpop.f32.mrf.mxu0  ;;  %v800_v21 = vpop.f32.mrf.mxu1 }
  0x96   : > { %v810_v28 = vpop.f32.mrf.mxu3  ;;  %v473_v34 = vmul.f32 %v322_v20, %v322_v20  ;;  %v402_v36 = vsel %vm400_vm2, %v322_v20, 0.0  ;;  %v481_v15 = vmul.f32 %v800_v21, %v800_v21 }
  0x97   : > { %v403_v43 = vadd.f32 %v402_v36, %v401_v39 }
  0x98   : > { %v505_v40 = vsel %vm400_vm2, %v473_v34, 0.0  ;;  %v521_v19 = vsel %vm400_vm2, %v481_v15, 0.0 }
  0x99   : > { %v506_v48 = vadd.f32 %v505_v40, %v504_v44 }
  0x9c   : > { %v806_v26 = vpop.f32.mrf.mxu2 }
  0x9d   : > { %v325_v23 = vpop.f32.mrf.mxu0  ;;  %v804_v24 = vpop.f32.mrf.mxu1 }
  0x9e   : > { %v816_v33 = vpop.f32.mrf.mxu3  ;;  %v474_v37 = vmul.f32 %v325_v23, %v325_v23  ;;  %v404_v41 = vsel %vm400_vm2, %v325_v23, 0.0  ;;  %v519_v23 = vsel %vm400_vm2, %v480_v8, 0.0  ;;  %v420_v35 = vsel %vm400_vm2, %v804_v24, 0.0 }
  0x9f   : > { %v405_v49 = vadd.f32 %v404_v41, %v403_v43 }
  0xa0   : > { %v507_v45 = vsel %vm400_vm2, %v474_v37, 0.0 }
  0xa1   : > { %v508_v55 = vadd.f32 %v507_v45, %v506_v48 }
  0xa4   : > { %v812_v30 = vpop.f32.mrf.mxu2 }
  0xa5   : > { %v327_v25 = vpop.f32.mrf.mxu0  ;;  %v808_v27 = vpop.f32.mrf.mxu1 }
  0xa6   : > { %v475_v42 = vmul.f32 %v327_v25, %v327_v25  ;;  %v406_v46 = vsel %vm400_vm2, %v327_v25, 0.0  ;;  %v829_v57 = vpop.f32.mrf.mxu3  ;;  %v418_v25 = vsel %vm400_vm2, %v800_v21, 0.0  ;;  %v483_v36 = vmul.f32 %v808_v27, %v808_v27 }
  0xa7   : > { %v407_v56 = vadd.f32 %v406_v46, %v405_v49  ;;  %v422_v21 = vsel %vm400_vm2, %v808_v27, 0.0 }
  0xa8   : > { %v509_v52 = vsel %vm400_vm2, %v475_v42, 0.0  ;;  %v525_v45 = vsel %vm400_vm2, %v483_v36, 0.0 }
  0xa9   : > { %v510_v61 = vadd.f32 %v509_v52, %v508_v55 }
  0xac   : > { %v819_v38 = vpop.f32.mrf.mxu2 }
  0xad   : > { %v330_v29 = vpop.f32.mrf.mxu0  ;;  %v814_v31 = vpop.f32.mrf.mxu1 }
  0xae   : > { %v476_v47 = vmul.f32 %v330_v29, %v330_v29  ;;  %v408_v53 = vsel %vm400_vm2, %v330_v29, 0.0  ;;  %v843_v20 = vpop.f32.mrf.mxu3  ;;  %v482_v29 = vmul.f32 %v804_v24, %v804_v24  ;;  %v484_v42 = vmul.f32 %v814_v31, %v814_v31 }
  0xaf   : > { %v409_v62 = vadd.f32 %v408_v53, %v407_v56  ;;  %v424_v24 = vsel %vm400_vm2, %v814_v31, 0.0 }
  0xb0   : > { %v511_v58 = vsel %vm400_vm2, %v476_v47, 0.0  ;;  %v523_v41 = vsel %vm400_vm2, %v482_v29, 0.0 }
  0xb1   : > { %v512_v1 = vadd.f32 %v511_v58, %v510_v61  ;;  %v488_v61 = vmul.f32 %v802_v22, %v802_v22 }
  0xb3   : > { %v535_v8 = vsel %vm400_vm2, %v488_v61, 0.0 }
  0xb4   : > { %v835_v3 = vpop.f32.mrf.mxu2 }
  0xb5   : > { %v332_v32 = vpop.f32.mrf.mxu0  ;;  %v352_v51 = vpop.f32.mrf.mxu1 }
  0xb6   : > { %v477_v54 = vmul.f32 %v332_v32, %v332_v32  ;;  %v410_v59 = vsel %vm400_vm2, %v332_v32, 0.0  ;;  %v485_v46 = vmul.f32 %v352_v51, %v352_v51  ;;  %v426_v52 = vsel %vm400_vm2, %v352_v51, 0.0  ;;  %v865_v55 = vpop.f32.mrf.mxu3 }
  0xb7   : > { %v411_v2 = vadd.f32 %v410_v59, %v409_v62 }
  0xb8   : > { %v513_v63 = vsel %vm400_vm2, %v477_v54, 0.0  ;;  %v529_v56 = vsel %vm400_vm2, %v485_v46, 0.0 }
  0xb9   : > { %v514_v5 = vadd.f32 %v513_v63, %v512_v1 }
  0xbc   : > { %v372_v40 = vpop.f32.mrf.mxu2 }
  0xbd   : > { %v335_v50 = vpop.f32.mrf.mxu0  ;;  %v355_v13 = vpop.f32.mrf.mxu1 }
  0xbe   : > { %v478_v60 = vmul.f32 %v335_v50, %v335_v50  ;;  %v412_v0 = vsel %vm400_vm2, %v335_v50, 0.0  ;;  %v527_v50 = vsel %vm400_vm2, %v484_v42, 0.0  ;;  %v486_v53 = vmul.f32 %v355_v13, %v355_v13 }
  0xbf   : > { %v413_v6 = vadd.f32 %v412_v0, %v411_v2  ;;  %v428_v58 = vsel %vm400_vm2, %v355_v13, 0.0  ;;  %v432_v2 = vsel %vm400_vm2, %v802_v22, 0.0  ;;  %v436_v22 = vsel %vm400_vm2, %v812_v30, 0.0 }
  0xc0   : > { %v515_v4 = vsel %vm400_vm2, %v478_v60, 0.0  ;;  %v531_v62 = vsel %vm400_vm2, %v486_v53, 0.0 }
  0xc1   : > { %v516_v11 = vadd.f32 %v515_v4, %v514_v5  ;;  %v489_v4 = vmul.f32 %v806_v26, %v806_v26 }
  0xc3   : > { %v537_v13 = vsel %vm400_vm2, %v489_v4, 0.0 }
  0xc4   : > { %v375_v1 = vpop.f32.mrf.mxu2 }
  0xc5   : > { %v337_v7 = vpop.f32.mrf.mxu0  ;;  %v357_v49 = vpop.f32.mrf.mxu1 }
  0xc6   : > { %v414_v9 = vsel %vm400_vm2, %v337_v7, 0.0  ;;  %v479_v10 = vmul.f32 %v337_v7, %v337_v7  ;;  %v487_v59 = vmul.f32 %v357_v49, %v357_v49  ;;  %v430_v63 = vsel %vm400_vm2, %v357_v49, 0.0 }
  0xc7   : > { %v415_v12 = vadd.f32 %v414_v9, %v413_v6  ;;  %v434_v9 = vsel %vm400_vm2, %v806_v26, 0.0  ;;  %v438_v26 = vsel %vm400_vm2, %v819_v38, 0.0 }
  0xc8   : > { %v517_v16 = vsel %vm400_vm2, %v479_v10, 0.0  ;;  %v533_v5 = vsel %vm400_vm2, %v487_v59, 0.0  ;;  %v490_v10 = vmul.f32 %v812_v30, %v812_v30  ;;  %v440_v30 = vsel %vm400_vm2, %v835_v3, 0.0 }
  0xc9   : > { %v417_v17 = vadd.f32 %v416_v14, %v415_v12  ;;  %v518_v18 = vadd.f32 %v517_v16, %v516_v11  ;;  %v491_v14 = vmul.f32 %v819_v38, %v819_v38  ;;  %v498_v59 = vmul.f32 %v829_v57, %v829_v57 }
  0xcb   : > { %v419_v32 = vadd.f32 %v418_v25, %v417_v17  ;;  %v520_v34 = vadd.f32 %v519_v23, %v518_v18  ;;  %v392_v17 = vpop.f32.mrf.mxu3  ;;  %v539_v18 = vsel %vm400_vm2, %v490_v10, 0.0  ;;  %v492_v23 = vmul.f32 %v835_v3, %v835_v3 }
  0xcc   : > { %v377_v36 = vpop.f32.mrf.mxu2  ;;  %v496_v3 = vmul.f32 %v810_v28, %v810_v28 }
  0xcd   : > { %v421_v37 = vadd.f32 %v420_v35, %v419_v32  ;;  %v522_v39 = vadd.f32 %v521_v19, %v520_v34  ;;  %v541_v32 = vsel %vm400_vm2, %v491_v14, 0.0  ;;  %v493_v34 = vmul.f32 %v372_v40, %v372_v40 }
  0xcf   : > { %v524_v43 = vadd.f32 %v523_v41, %v522_v39  ;;  %v423_v44 = vadd.f32 %v422_v21, %v421_v37  ;;  %v543_v37 = vsel %vm400_vm2, %v492_v23, 0.0  ;;  %v442_v39 = vsel %vm400_vm2, %v372_v40, 0.0 }
  0xd0   : > { %v494_v41 = vmul.f32 %v375_v1, %v375_v1  ;;  %v545_v42 = vsel %vm400_vm2, %v493_v34, 0.0 }
  0xd1   : > { %v425_v47 = vadd.f32 %v424_v24, %v423_v44  ;;  %v526_v48 = vadd.f32 %v525_v45, %v524_v43  ;;  %v444_v43 = vsel %vm400_vm2, %v375_v1, 0.0  ;;  %v495_v44 = vmul.f32 %v377_v36, %v377_v36 }
  0xd2   : > { %v547_v46 = vsel %vm400_vm2, %v494_v41, 0.0  ;;  %v500_v1 = vmul.f32 %v865_v55, %v865_v55 }
  0xd3   : > { %v427_v27 = vadd.f32 %v426_v52, %v425_v47  ;;  %v528_v54 = vadd.f32 %v527_v50, %v526_v48  ;;  %v446_v47 = vsel %vm400_vm2, %v377_v36, 0.0  ;;  %v395_v40 = vpop.f32.mrf.mxu3  ;;  %v448_v50 = vsel %vm400_vm2, %v810_v28, 0.0 }
  0xd4   : > { %v497_v52 = vmul.f32 %v816_v33, %v816_v33  ;;  %v549_v53 = vsel %vm400_vm2, %v495_v44, 0.0  ;;  %v452_v28 = vsel %vm400_vm2, %v829_v57, 0.0  ;;  %v456_v57 = vsel %vm400_vm2, %v865_v55, 0.0 }
  0xd5   : > { %v429_v60 = vadd.f32 %v428_v58, %v427_v27  ;;  %v530_v31 = vadd.f32 %v529_v56, %v528_v54  ;;  %v551_v56 = vsel %vm400_vm2, %v496_v3, 0.0  ;;  %v450_v58 = vsel %vm400_vm2, %v816_v33, 0.0 }
  0xd6   : > { %v553_v61 = vsel %vm400_vm2, %v497_v52, 0.0  ;;  %v454_v33 = vsel %vm400_vm2, %v843_v20, 0.0  ;;  %v559_v10 = vsel %vm400_vm2, %v500_v1, 0.0  ;;  %v460_v14 = vsel %vm400_vm2, %v395_v40, 0.0 }
  0xd7   : > { %v532_v51 = vadd.f32 %v531_v62, %v530_v31  ;;  %v431_v0 = vadd.f32 %v430_v63, %v429_v60  ;;  %v499_v62 = vmul.f32 %v843_v20, %v843_v20  ;;  %v502_v20 = vmul.f32 %v395_v40, %v395_v40 }
  0xd9   : > { %v433_v6 = vadd.f32 %v432_v2, %v431_v0  ;;  %v534_v7 = vadd.f32 %v533_v5, %v532_v51  ;;  %v555_v0 = vsel %vm400_vm2, %v498_v59, 0.0  ;;  %v557_v5 = vsel %vm400_vm2, %v499_v62, 0.0 }
  0xdb   : > { %v435_v11 = vadd.f32 %v434_v9, %v433_v6  ;;  %v536_v12 = vadd.f32 %v535_v8, %v534_v7  ;;  %v501_v6 = vmul.f32 %v392_v17, %v392_v17  ;;  %v397_v9 = vpop.f32.mrf.mxu3 }
  0xdd   : > { %v437_v15 = vadd.f32 %v436_v22, %v435_v11  ;;  %v538_v16 = vadd.f32 %v537_v13, %v536_v12  ;;  %v458_v11 = vsel %vm400_vm2, %v392_v17, 0.0  ;;  %v561_v22 = vsel %vm400_vm2, %v501_v6, 0.0 }
  0xdf   : > { %v540_v25 = vadd.f32 %v539_v18, %v538_v16  ;;  %v439_v29 = vadd.f32 %v438_v26, %v437_v15  ;;  %v503_v15 = vmul.f32 %v397_v9, %v397_v9  ;;  %v563_v18 = vsel %vm400_vm2, %v502_v20, 0.0 }
  0xe0   : > { %v462_v26 = vsel %vm400_vm2, %v397_v9, 0.0 }
  0xe1   : > { %v441_v19 = vadd.f32 %v440_v30, %v439_v29  ;;  %v542_v35 = vadd.f32 %v541_v32, %v540_v25  ;;  %v565_v17 = vsel %vm400_vm2, %v503_v15, 0.0 }
  0xe3   : > { %v443_v38 = vadd.f32 %v442_v39, %v441_v19  ;;  %v544_v21 = vadd.f32 %v543_v37, %v542_v35 }
  0xe5   : > { %v546_v45 = vadd.f32 %v545_v42, %v544_v21  ;;  %v445_v24 = vadd.f32 %v444_v43, %v443_v38 }
  0xe7   : > { %v548_v48 = vadd.f32 %v547_v46, %v546_v45  ;;  %v447_v49 = vadd.f32 %v446_v47, %v445_v24 }
  0xe9   : > { %v449_v27 = vadd.f32 %v448_v50, %v447_v49  ;;  %v550_v54 = vadd.f32 %v549_v53, %v548_v48 }
  0xeb   : > { %v451_v60 = vadd.f32 %v450_v58, %v449_v27  ;;  %v552_v31 = vadd.f32 %v551_v56, %v550_v54 }
  0xed   : > { %v453_v63 = vadd.f32 %v452_v28, %v451_v60  ;;  %v554_v51 = vadd.f32 %v553_v61, %v552_v31 }
  0xef   : > { %v556_v2 = vadd.f32 %v555_v0, %v554_v51  ;;  %v455_v4 = vadd.f32 %v454_v33, %v453_v63 }
  0xf1   : > { %v457_v7 = vadd.f32 %v456_v57, %v455_v4  ;;  %v558_v8 = vadd.f32 %v557_v5, %v556_v2 }
  0xf3   : > { %v459_v12 = vadd.f32 %v458_v11, %v457_v7  ;;  %v560_v13 = vadd.f32 %v559_v10, %v558_v8 }
  0xf5   : > { %v562_v16 = vadd.f32 %v561_v22, %v560_v13  ;;  %v461_v55 = vadd.f32 %v460_v14, %v459_v12 }
  0xf7   : > { %v564_v23 = vadd.f32 %v563_v18, %v562_v16  ;;  %v463_v25 = vadd.f32 %v462_v26, %v461_v55 }
  0xf9   : > { %v464_v29 = vrot.slane %v463_v25, 4  ;;  %v566_v32 = vadd.f32 %v565_v17, %v564_v23 }
  0xfb   : > { %v465_v30 = vadd.f32 %v464_v29, %v463_v25  ;;  %v567_v34 = vrot.slane %v566_v32, 4 }
  0xfd   : > { %v466_v19 = vrot.slane %v465_v30, 2  ;;  %v568_v35 = vadd.f32 %v567_v34, %v566_v32 }
  0xff   : > { %v467_v36 = vadd.f32 %v466_v19, %v465_v30  ;;  %v569_v37 = vrot.slane %v568_v35, 2 }
 0x101   : > { %v468_v39 = vrot.slane %v467_v36, 1  ;;  %v570_v41 = vadd.f32 %v569_v37, %v568_v35 }
 0x103   : > { %v469_v38 = vadd.f32 %v468_v39, %v467_v36  ;;  %v571_v21 = vrot.slane %v570_v41, 1 }
 0x105   : > { %471 = vst.msk [vmem:[%s143_s21] sm:$0x1] %vm470_vm3, %v469_v38  ;;  %v572_v42 = vadd.f32 %v571_v21, %v570_v41 }
 0x107   : > { %573 = vst.msk [vmem:[%s143_s21 + $0x1] sm:$0x1] %vm470_vm3, %v572_v42 }
 0x108 PF: > { %s12_s9 = sadd.s32 1, %s750_s9  }
 0x109   : > { %p9_p5 = scmp.ge.s32.totalorder %s12_s9, 4  }
 0x10b   :  { %11 = sbr.rel (!%p9_p5) target bundleno = 1 (0x1), region = 58 }

// kernel: decoder_forward.17
= control target key start
LH: loop header
LB: loop body
LE: loop exit
PB: predicated region body
PF: predicated region fallthrough
CT: control target
= control target key end

     0   :  { %s2898_s18 = smov 0   ;;  %s2900_s19 = smov 0   ;;  %s4306_s0 = inlined_call_operand.vmem [shape: bf16[512,4], index: 0, kind: input, shape index: {}]   ;;  %s4307_s1 = inlined_call_operand.vmem [shape: bf16[4,6], index: 1, kind: input, shape index: {}]   ;;  %s4308_s2 = inlined_call_operand.vmem [shape: bf16[4,6], index: 2, kind: input, shape index: {}]   ;;  %s4309_s3 = inlined_call_operand.vmem [shape: f32[1,6], index: 3, kind: input, shape index: {}]   ;;  %s4310_s4 = inlined_call_operand.vmem [shape: f32[1,6], index: 4, kind: input, shape index: {}]   ;;  %s4311_s5 = inlined_call_operand.vmem [shape: f32[2,512,6], index: 5, kind: output, shape index: {}]  }
   0x1   :  { %s2902_s20 = smov 0  }
   0x2 LB: > { %s2911_s21 = sadd.s32 4294967295, %s2866_s20   ;;  %s2913_s22 = sadd.s32 1, %s2866_s20   ;;  %s2866_s20 = sphi %s2902_s20, %s4409_s20   ;;  %s2862_s19 = sphi %s2900_s19, %s4408_s19   ;;  %s2858_s18 = sphi %s2898_s18, %s4407_s18  }
   0x3   : > { %s129_s23 = ssub.s32 %s2866_s20, %s2913_s22  ;;  %s132_s24 = sadd.s32 1, %s2862_s19 }
   0x4   : > { %p130_p0 = scmp.eq.s32.totalorder %s129_s23, 0  ;;  %p142_p1 = scmp.ne.s32.totalorder %s2862_s19, %s2858_s18 }
   0x5   : > { %p143_p2 = scmp.eq.s32.totalorder %s2911_s21, 1  ;;  %p2338_p3 = scmp.ge.s32.totalorder %s2866_s20, 1 }
   0x6   : > { %s2921_s25 = scalar_select %p130_p0, %s2862_s19, %s132_s24  }
   0x7   : > { %p2923_p4 = por %p143_p2, %p142_p1  ;;  %p188_p5 = scmp.lt.s32.totalorder %s2866_s20, 3 }
   0x9   : > { %p189_p6 = pnand %p2338_p3, %p188_p5 }
   0xa   : > { %s2340_s6 = sshll.u32 (!%p189_p6), %s2911_s21, 5  ;;  %s212_s15 = sand.u32 (!%p189_p6), 1, %s2858_s18  }
   0xb   : > { %192 = sbr.rel (%p189_p6) target bundleno = 498 (0x1f2), region = 40  ;;  %p216_p7 = scmp.lt.s32.totalorder (!%p189_p6), %s2340_s6, 63 }
   0xc   : > { %s3056_s16 = sshll.u32 (!%p189_p6), %s212_s15, 9 }
   0xd   : > { %s3085_s17 = scalar_lea.vmem (!%p189_p6), [#allocation2], %s3056_s16 }
  0x10   : > { %v255_v0 = vld [vmem:[%s4307_s1] sm:$0x3]  ;;  %vm385_vm0 = vcmask 1041408   ;;  %s4411_s6 = smov (!%p216_p7, %s2340_s6), 63  ;;  %vm336_vm1 = vcmask 31744   ;;  %vm1923_vm3 = vcmask 48128  }
  0x11   : > { %v478_v1 = vld [vmem:[%s4308_s2] sm:$0x3]  ;;  %v387_v2 = vsel %vm385_vm0, %v255_v0, 0  ;;  %s2341_s7 = sshll.u32 %s4411_s6, 2  ;;  %s2555_s6 = sshll.u32 (%p2923_p4), %s2911_s21, 8 }
  0x12   : > { %v480_v3 = vsel %vm385_vm0, %v478_v1, 0  ;;  %396 = vmatpush.bf16.msra.mxu0 %v387_v2  ;;  %2556 = vmatpush.bf16.msra.mxu2 %v387_v2  ;;  %s2937_s10 = scalar_lea.vmem %s4306_s0, %s2341_s7  ;;  %v2990_v20 = vld [vmem:[%s4309_s3] ss:$0 sm:$0xff]  ;;  %s4168_s9 = scalar_lea.vmem (%p2923_p4), %s4311_s5, %s2555_s6 }
  0x13   : > { %489 = vmatpush.bf16.msra.mxu1 %v480_v3  ;;  %2557 = vmatpush.bf16.msra.mxu3 %v480_v3  ;;  %v2539_v4 = vld [vmem:[%s2937_s10] sm:$0xff]  ;;  %v2540_v6 = vld [vmem:[%s2937_s10 + $0x8] sm:$0xff]  ;;  %v2541_v8 = vld [vmem:[%s2937_s10 + $0x10] sm:$0xff] }
  0x14   : > { %v2547_v5 = vld [vmem:[%s2937_s10 + $0x40] sm:$0xff]  ;;  %v2548_v7 = vld [vmem:[%s2937_s10 + $0x48] sm:$0xff]  ;;  %v2549_v9 = vld [vmem:[%s2937_s10 + $0x50] sm:$0xff] }
  0x15   : > { %2406 = vmatmul.msk.bf16.vlgmr.msra.gmra.mxu0 %vm336_vm1, %v2539_v4  ;;  %2414 = vmatmul.msk.bf16.vlgmr.msra.gmra.mxu2 %vm336_vm1, %v2547_v5  ;;  %v2542_v10 = vld [vmem:[%s2937_s10 + $0x18] sm:$0xff]  ;;  %v2543_v12 = vld [vmem:[%s2937_s10 + $0x20] sm:$0xff]  ;;  %v2544_v14 = vld [vmem:[%s2937_s10 + $0x28] sm:$0xff] }
  0x16   : > { %2422 = vmatmul.msk.bf16.vlgmr.msra.gmra.mxu1 %vm336_vm1, %v2539_v4  ;;  %2430 = vmatmul.msk.bf16.vlgmr.msra.gmra.mxu3 %vm336_vm1, %v2547_v5  ;;  %v2550_v11 = vld [vmem:[%s2937_s10 + $0x58] sm:$0xff]  ;;  %v2551_v13 = vld [vmem:[%s2937_s10 + $0x60] sm:$0xff]  ;;  %v2552_v15 = vld [vmem:[%s2937_s10 + $0x68] sm:$0xff] }
  0x17   : > { %v2545_v16 = vld [vmem:[%s2937_s10 + $0x30] sm:$0xff]  ;;  %v2546_v18 = vld [vmem:[%s2937_s10 + $0x38] sm:$0xff]  ;;  %v2995_v21 = vld [vmem:[%s4310_s4] ss:$0 sm:$0xff] }
  0x18   : > { %v2553_v17 = vld [vmem:[%s2937_s10 + $0x70] sm:$0xff]  ;;  %v2554_v19 = vld [vmem:[%s2937_s10 + $0x78] sm:$0xff] }
  0x25   : > { %2407 = vmatmul.msk.bf16.gmra.mxu0 %vm336_vm1, %v2540_v6  ;;  %2415 = vmatmul.msk.bf16.gmra.mxu2 %vm336_vm1, %v2548_v7 }
  0x26   : > { %2423 = vmatmul.msk.bf16.gmra.mxu1 %vm336_vm1, %v2540_v6  ;;  %2431 = vmatmul.msk.bf16.gmra.mxu3 %vm336_vm1, %v2548_v7 }
  0x35   : > { %2408 = vmatmul.msk.bf16.gmra.mxu0 %vm336_vm1, %v2541_v8  ;;  %2416 = vmatmul.msk.bf16.gmra.mxu2 %vm336_vm1, %v2549_v9 }
  0x36   : > { %2424 = vmatmul.msk.bf16.gmra.mxu1 %vm336_vm1, %v2541_v8  ;;  %2432 = vmatmul.msk.bf16.gmra.mxu3 %vm336_vm1, %v2549_v9 }
  0x45   : > { %2409 = vmatmul.msk.bf16.gmra.mxu0 %vm336_vm1, %v2542_v10  ;;  %2417 = vmatmul.msk.bf16.gmra.mxu2 %vm336_vm1, %v2550_v11 }
  0x46   : > { %2425 = vmatmul.msk.bf16.gmra.mxu1 %vm336_vm1, %v2542_v10  ;;  %2433 = vmatmul.msk.bf16.gmra.mxu3 %vm336_vm1, %v2550_v11 }
  0x55   : > { %2410 = vmatmul.msk.bf16.gmra.mxu0 %vm336_vm1, %v2543_v12  ;;  %2418 = vmatmul.msk.bf16.gmra.mxu2 %vm336_vm1, %v2551_v13 }
  0x56   : > { %2426 = vmatmul.msk.bf16.gmra.mxu1 %vm336_vm1, %v2543_v12  ;;  %2434 = vmatmul.msk.bf16.gmra.mxu3 %vm336_vm1, %v2551_v13 }
  0x65   : > { %2411 = vmatmul.msk.bf16.gmra.mxu0 %vm336_vm1, %v2544_v14  ;;  %2419 = vmatmul.msk.bf16.gmra.mxu2 %vm336_vm1, %v2552_v15 }
  0x66   : > { %2427 = vmatmul.msk.bf16.gmra.mxu1 %vm336_vm1, %v2544_v14  ;;  %2435 = vmatmul.msk.bf16.gmra.mxu3 %vm336_vm1, %v2552_v15 }
  0x75   : > { %2412 = vmatmul.msk.bf16.gmra.mxu0 %vm336_vm1, %v2545_v16  ;;  %2420 = vmatmul.msk.bf16.gmra.mxu2 %vm336_vm1, %v2553_v17 }
  0x76   : > { %2428 = vmatmul.msk.bf16.gmra.mxu1 %vm336_vm1, %v2545_v16  ;;  %2436 = vmatmul.msk.bf16.gmra.mxu3 %vm336_vm1, %v2553_v17 }
  0x85   : > { %2413 = vmatmul.msk.bf16.gmra.mxu0 %vm336_vm1, %v2546_v18  ;;  %2421 = vmatmul.msk.bf16.gmra.mxu2 %vm336_vm1, %v2554_v19 }
  0x86   : > { %2429 = vmatmul.msk.bf16.gmra.mxu1 %vm336_vm1, %v2546_v18  ;;  %2437 = vmatmul.msk.bf16.gmra.mxu3 %vm336_vm1, %v2554_v19 }
  0x92   : > { %v398_v22 = vpop.f32.mrf.mxu0 }
  0x93   : > { %v576_v23 = vmul.f32 %v2990_v20, %v398_v22  ;;  %v491_v24 = vpop.f32.mrf.mxu1 }
  0x94   : > { %v643_v25 = vmul.f32 %v2990_v20, %v491_v24 }
  0x95   : > { %v611_v26 = vadd.f32 %v2995_v21, %v576_v23 }
  0x96   : > { %v675_v27 = vadd.f32 %v2995_v21, %v643_v25 }
  0x97   : > { %v2438_v28 = vmul.f32 -1.442695, %v611_v26 }
  0x98   : > { %v2470_v29 = vmul.f32 -1.442695, %v675_v27  ;;  %v438_v30 = vpop.f32.mrf.mxu2 }
  0x99   : > { %2584 = vpow2.f32 %v2438_v28  ;;  %v592_v31 = vmul.f32 %v2990_v20, %v438_v30  ;;  %v531_v32 = vpop.f32.mrf.mxu3 }
  0x9a   : > { %2586 = vpow2.f32 %v2470_v29  ;;  %v659_v33 = vmul.f32 %v2990_v20, %v531_v32  ;;  %v400_v34 = vpop.f32.mrf.mxu0 }
  0x9b   : > { %v627_v35 = vadd.f32 %v2995_v21, %v592_v31  ;;  %v577_v36 = vmul.f32 %v2990_v20, %v400_v34  ;;  %v493_v37 = vpop.f32.mrf.mxu1 }
  0x9c   : > { %v691_v38 = vadd.f32 %v2995_v21, %v659_v33  ;;  %v644_v39 = vmul.f32 %v2990_v20, %v493_v37 }
  0x9d   : > { %v2454_v40 = vmul.f32 -1.442695, %v627_v35  ;;  %v612_v41 = vadd.f32 %v2995_v21, %v577_v36 }
  0x9e   : > { %v2486_v42 = vmul.f32 -1.442695, %v691_v38  ;;  %v676_v43 = vadd.f32 %v2995_v21, %v644_v39 }
  0x9f   : > { %v2585_v44 = vpop.eup %2584  ;;  %2588 = vpow2.f32 %v2454_v40  ;;  %v2439_v45 = vmul.f32 -1.442695, %v612_v41 }
  0xa0   : > { %v2587_v46 = vpop.eup %2586  ;;  %v3009_v47 = vadd.f32 1.0, %v2585_v44  ;;  %2590 = vpow2.f32 %v2486_v42  ;;  %v2471_v48 = vmul.f32 -1.442695, %v676_v43  ;;  %v440_v49 = vpop.f32.mrf.mxu2 }
  0xa1   : > { %v3011_v50 = vadd.f32 1.0, %v2587_v46  ;;  %2592 = vpow2.f32 %v2439_v45  ;;  %v593_v51 = vmul.f32 %v2990_v20, %v440_v49  ;;  %v533_v52 = vpop.f32.mrf.mxu3 }
  0xa2   : > { %2594 = vrcp.f32 %v3009_v47  ;;  %v403_v54 = vpop.f32.mrf.mxu0  ;;  %v844_v56 = vand.u32 2147483647, %v3009_v47  ;;  %v846_v57 = vand.u32 2147483648, %v3009_v47  ;;  %v660_v62 = vmul.f32 %v2990_v20, %v533_v52 }
  0xa3   : > { %2596 = vrcp.f32 %v3011_v50  ;;  %v628_v53 = vadd.f32 %v2995_v21, %v593_v51  ;;  %v1454_v58 = vand.u32 2147483648, %v3011_v50  ;;  %v1452_v60 = vand.u32 2147483647, %v3011_v50  ;;  %v496_v2 = vpop.f32.mrf.mxu1 }
  0xa4   : > { %2598 = vpow2.f32 %v2471_v48  ;;  %v578_v1 = vmul.f32 %v2990_v20, %v403_v54  ;;  %vm840_vm2 = vweird.f32 %v3009_v47  ;;  %vm1448_vm4 = vweird.f32 %v3011_v50 }
  0xa5   : > { %v2589_v55 = vpop.eup %2588  ;;  %v2455_v4 = vmul.f32 -1.442695, %v628_v53  ;;  %vm3031_vm5 = vcmp.eq.f32.partialorder %v844_v56, 8.507059e+37  ;;  %v847_v8 = vor.u32 1.1754944e-38, %v846_v57  ;;  %v1455_v9 = vor.u32 1.1754944e-38, %v1454_v58 }
  0xa6   : > { %v2591_v59 = vpop.eup %2590  ;;  %v3021_v61 = vadd.f32 1.0, %v2589_v55  ;;  %vm3038_vm6 = vcmp.eq.f32.partialorder %v1452_v60, 8.507059e+37  ;;  %v692_v14 = vadd.f32 %v2995_v21, %v660_v62  ;;  %v3045_v15 = vmul.f32 %v2990_v20, %v496_v2 }
  0xa7   : > { %v2593_v63 = vpop.eup %2592  ;;  %v3024_v0 = vadd.f32 1.0, %v2591_v59  ;;  %v3051_v19 = vadd.f32 %v2995_v21, %v578_v1 }
  0xa8   : > { %v2595_v3 = vpop.eup %2594  ;;  %2600 = vrcp.f32 %v3021_v61  ;;  %v1086_v13 = vand.u32 2147483648, %v3021_v61  ;;  %v1084_v17 = vand.u32 2147483647, %v3021_v61  ;;  %v3048_v18 = vadd.f32 1.0, %v2593_v63  ;;  %v443_v63 = vpop.f32.mrf.mxu2 }
  0xa9   : > { %v2597_v5 = vpop.eup %2596  ;;  %v836_v6 = vmul.f32 %v2595_v3, %v3009_v47  ;;  %2602 = vrcp.f32 %v3024_v0  ;;  %v1692_v23 = vand.u32 2147483647, %v3024_v0  ;;  %vm841_vm7 = vweird.f32 %v2595_v3 }
  0xaa   : > { %v2599_v10 = vpop.eup %2598  ;;  %v1444_v11 = vmul.f32 %v2597_v5, %v3011_v50  ;;  %2604 = vpow2.f32 %v2455_v4  ;;  %vm1080_vm8 = vweird.f32 %v3021_v61  ;;  %v1694_v26 = vand.u32 2147483648, %v3024_v0  ;;  %vm842_vm12 = vmor %vm840_vm2, %vm841_vm7  ;;  %v405_v7 = vpop.f32.mrf.mxu0 }
  0xab   : > { %v837_v16 = vsub.f32 1.0, %v836_v6  ;;  %v3054_v24 = vadd.f32 1.0, %v2599_v10  ;;  %2606 = vrcp.f32 %v3048_v18  ;;  %vm1449_vm9 = vweird.f32 %v2597_v5  ;;  %v536_v6 = vpop.f32.mrf.mxu3  ;;  %v498_v10 = vpop.f32.mrf.mxu1 }
  0xac   : > { %v1445_v22 = vsub.f32 1.0, %v1444_v11  ;;  %v1087_v29 = vor.u32 1.1754944e-38, %v1086_v13  ;;  %vm1688_vm10 = vweird.f32 %v3024_v0  ;;  %vm3063_vm11 = vcmp.eq.f32.partialorder %v1084_v17, 8.507059e+37  ;;  %vm1450_vm14 = vmor %vm1448_vm4, %vm1449_vm9 }
  0xad   : > { %v838_v25 = vmul.f32 %v2595_v3, %v837_v16  ;;  %2608 = vrcp.f32 %v3054_v24  ;;  %v2487_v34 = vmul.f32 -1.442695, %v692_v14  ;;  %vm3072_vm13 = vcmp.eq.f32.partialorder %v1692_v23, 8.507059e+37 }
  0xae   : > { %v2601_v27 = vpop.eup %2600  ;;  %v1446_v28 = vmul.f32 %v2597_v5, %v1445_v22  ;;  %v859_v38 = vand.u32 2147483647, %v3048_v18  ;;  %v1695_v41 = vor.u32 1.1754944e-38, %v1694_v26  ;;  %v861_v42 = vand.u32 2147483648, %v3048_v18 }
  0xaf   : > { %v2603_v30 = vpop.eup %2602  ;;  %v839_v31 = vadd.f32 %v2595_v3, %v838_v25  ;;  %v1076_v32 = vmul.f32 %v2601_v27, %v3021_v61  ;;  %vm1081_vm15 = vweird.f32 %v2601_v27  ;;  %vm855_vm0 = vweird.f32 %v3048_v18 }
  0xb0   : > { %v1447_v35 = vadd.f32 %v2597_v5, %v1446_v28  ;;  %v1684_v36 = vmul.f32 %v2603_v30, %v3024_v0  ;;  %v2605_v43 = vpop.eup %2604  ;;  %v1467_v50 = vand.u32 2147483647, %v3054_v24  ;;  %vm1689_vm1 = vweird.f32 %v2603_v30  ;;  %vm1082_vm4 = vmor %vm1080_vm8, %vm1081_vm15 }
  0xb1   : > { %v843_v39 = vsel %vm842_vm12, %v2595_v3, %v839_v31  ;;  %v1077_v40 = vsub.f32 1.0, %v1076_v32  ;;  %v2607_v47 = vpop.eup %2606  ;;  %v3092_v51 = vadd.f32 1.0, %v2605_v43  ;;  %vm3097_vm2 = vcmp.eq.f32.partialorder %v859_v38, 8.507059e+37 }
  0xb2   : > { %v848_v44 = vsel %vm3031_vm5, %v847_v8, %v843_v39  ;;  %v1451_v45 = vsel %vm1450_vm14, %v2597_v5, %v1447_v35  ;;  %v1685_v46 = vsub.f32 1.0, %v1684_v36  ;;  %v851_v53 = vmul.f32 %v2607_v47, %v3048_v18  ;;  %v445_v39 = vpop.f32.mrf.mxu2 }
  0xb3   : > { %1924 = vst.msk [vmem:[%s3085_s17] sm:$0xff] %vm1923_vm3, %v848_v44  ;;  %v1456_v48 = vsel %vm3038_vm6, %v1455_v9, %v1451_v45  ;;  %v1078_v49 = vmul.f32 %v2601_v27, %v1077_v40  ;;  %v2609_v55 = vpop.eup %2608  ;;  %v862_v57 = vor.u32 1.1754944e-38, %v861_v42  ;;  %v1469_v58 = vand.u32 2147483648, %v3054_v24  ;;  %vm1690_vm6 = vmor %vm1688_vm10, %vm1689_vm1 }
  0xb4   : > { %2502 = vst.msk [vmem:[%s3085_s17 + $0x100] sm:$0xff] %vm1923_vm3, %v1456_v48  ;;  %v1686_v52 = vmul.f32 %v2603_v30, %v1685_v46  ;;  %2610 = vrcp.f32 %v3092_v51  ;;  %v852_v60 = vsub.f32 1.0, %v851_v53  ;;  %v1459_v62 = vmul.f32 %v2609_v55, %v3054_v24 }
  0xb5   : > { %v1079_v56 = vadd.f32 %v2601_v27, %v1078_v49  ;;  %vm1463_vm5 = vweird.f32 %v3054_v24  ;;  %vm856_vm7 = vweird.f32 %v2607_v47  ;;  %vm3111_vm9 = vcmp.eq.f32.partialorder %v1467_v50, 8.507059e+37 }
  0xb6   : > { %v1687_v59 = vadd.f32 %v2603_v30, %v1686_v52  ;;  %2612 = vpow2.f32 %v2487_v34  ;;  %v853_v4 = vmul.f32 %v2607_v47, %v852_v60  ;;  %v1460_v5 = vsub.f32 1.0, %v1459_v62  ;;  %vm857_vm10 = vmor %vm855_vm0, %vm856_vm7  ;;  %v538_v62 = vpop.f32.mrf.mxu3 }
  0xb7   : > { %v1083_v1 = vsel %vm1082_vm4, %v2601_v27, %v1079_v56  ;;  %vm1464_vm8 = vweird.f32 %v2609_v55  ;;  %v1470_v8 = vor.u32 1.1754944e-38, %v1469_v58  ;;  %v2440_v9 = vmul.f32 -1.442695, %v3051_v19 }
  0xb8   : > { %v1088_v61 = vsel %vm3063_vm11, %v1087_v29, %v1083_v1  ;;  %v1691_v3 = vsel %vm1690_vm6, %v2603_v30, %v1687_v59  ;;  %v854_v11 = vadd.f32 %v2607_v47, %v853_v4  ;;  %v1461_v12 = vmul.f32 %v2609_v55, %v1460_v5  ;;  %vm1465_vm11 = vmor %vm1463_vm5, %vm1464_vm8 }
  0xb9   : > { %1940 = vst.msk [vmem:[%s3085_s17 + $0x80] sm:$0xff] %vm1923_vm3, %v1088_v61  ;;  %v1696_v0 = vsel %vm3072_vm13, %v1695_v41, %v1691_v3  ;;  %v677_v13 = vadd.f32 %v2995_v21, %v3045_v15  ;;  %v594_v14 = vmul.f32 %v2990_v20, %v443_v63  ;;  %v1101_v17 = vand.u32 2147483648, %v3092_v51  ;;  %v408_v63 = vpop.f32.mrf.mxu0 }
  0xba   : > { %2518 = vst.msk [vmem:[%s3085_s17 + $0x180] sm:$0xff] %vm1923_vm3, %v1696_v0  ;;  %v2611_v16 = vpop.eup %2610  ;;  %2614 = vpow2.f32 %v2440_v9  ;;  %v661_v19 = vmul.f32 %v2990_v20, %v536_v6  ;;  %v579_v22 = vmul.f32 %v2990_v20, %v405_v7  ;;  %v858_v23 = vsel %vm857_vm10, %v2607_v47, %v854_v11 }
  0xbb   : > { %v1462_v25 = vadd.f32 %v2609_v55, %v1461_v12  ;;  %v1091_v26 = vmul.f32 %v2611_v16, %v3092_v51  ;;  %v646_v15 = vmul.f32 %v2990_v20, %v498_v10  ;;  %v863_v18 = vsel %vm3097_vm2, %v862_v57, %v858_v23 }
  0xbc   : > { %v2613_v27 = vpop.eup %2612  ;;  %v2472_v28 = vmul.f32 -1.442695, %v677_v13  ;;  %v629_v29 = vadd.f32 %v2995_v21, %v594_v14  ;;  %v693_v30 = vadd.f32 %v2995_v21, %v661_v19  ;;  %1925 = vst.msk [vmem:[%s3085_s17 + $0x8] sm:$0xff] %vm1923_vm3, %v863_v18  ;;  %v614_v34 = vadd.f32 %v2995_v21, %v579_v22 }
  0xbd   : > { %v1466_v31 = vsel %vm1465_vm11, %v2609_v55, %v1462_v25  ;;  %v1092_v32 = vsub.f32 1.0, %v1091_v26  ;;  %v3144_v33 = vadd.f32 1.0, %v2613_v27  ;;  %vm1096_vm12 = vweird.f32 %v2611_v16 }
  0xbe   : > { %v1471_v35 = vsel %vm3111_vm9, %v1470_v8, %v1466_v31  ;;  %2616 = vpow2.f32 %v2472_v28  ;;  %v2456_v36 = vmul.f32 -1.442695, %v629_v29  ;;  %v2488_v24 = vmul.f32 -1.442695, %v693_v30 }
  0xbf   : > { %2503 = vst.msk [vmem:[%s3085_s17 + $0x108] sm:$0xff] %vm1923_vm3, %v1471_v35  ;;  %v1093_v37 = vmul.f32 %v2611_v16, %v1092_v32  ;;  %v1099_v38 = vand.u32 2147483647, %v3092_v51  ;;  %2618 = vrcp.f32 %v3144_v33  ;;  %v2441_v41 = vmul.f32 -1.442695, %v614_v34 }
  0xc0   : > { %v2615_v40 = vpop.eup %2614  ;;  %2620 = vpow2.f32 %v2456_v36  ;;  %v678_v42 = vadd.f32 %v2995_v21, %v646_v15  ;;  %vm1095_vm13 = vweird.f32 %v3092_v51  ;;  %v1102_v45 = vor.u32 1.1754944e-38, %v1101_v17 }
  0xc1   : > { %v1094_v43 = vadd.f32 %v2611_v16, %v1093_v37  ;;  %v3155_v44 = vadd.f32 1.0, %v2615_v40  ;;  %2622 = vpow2.f32 %v2488_v24  ;;  %vm1097_vm14 = vmor %vm1095_vm13, %vm1096_vm12  ;;  %v1707_v46 = vand.u32 2147483647, %v3144_v33 }
  0xc2   : > { %2624 = vpow2.f32 %v2441_v41  ;;  %v595_v47 = vmul.f32 %v2990_v20, %v445_v39  ;;  %vm1100_vm15 = vcmp.eq.f32.partialorder %v1099_v38, 8.507059e+37  ;;  %v1709_v49 = vand.u32 2147483648, %v3144_v33 }
  0xc3   : > { %v1098_v48 = vsel %vm1097_vm14, %v2611_v16, %v1094_v43  ;;  %2626 = vrcp.f32 %v3155_v44  ;;  %v2473_v51 = vmul.f32 -1.442695, %v678_v42  ;;  %vm1703_vm0 = vweird.f32 %v3144_v33 }
  0xc4   : > { %v2617_v50 = vpop.eup %2616  ;;  %v1103_v52 = vsel %vm1100_vm15, %v1102_v45, %v1098_v48  ;;  %v630_v53 = vadd.f32 %v2995_v21, %v595_v47  ;;  %vm3168_vm1 = vcmp.eq.f32.partialorder %v1707_v46, 8.507059e+37  ;;  %v874_v59 = vand.u32 2147483647, %v3155_v44 }
  0xc5   : > { %v2619_v54 = vpop.eup %2618  ;;  %1941 = vst.msk [vmem:[%s3085_s17 + $0x88] sm:$0xff] %vm1923_vm3, %v1103_v52  ;;  %v3165_v55 = vadd.f32 1.0, %v2617_v50  ;;  %v1710_v2 = vor.u32 1.1754944e-38, %v1709_v49  ;;  %vm870_vm2 = vweird.f32 %v3155_v44  ;;  %v876_v61 = vand.u32 2147483648, %v3155_v44  ;;  %v501_v52 = vpop.f32.mrf.mxu1 }
  0xc6   : > { %v2621_v56 = vpop.eup %2620  ;;  %v1699_v57 = vmul.f32 %v2619_v54, %v3144_v33  ;;  %v2457_v60 = vmul.f32 -1.442695, %v630_v53  ;;  %v662_v8 = vmul.f32 %v2990_v20, %v538_v62  ;;  %v3184_v9 = vmul.f32 %v2990_v20, %v408_v63 }
  0xc7   : > { %v2623_v1 = vpop.eup %2622  ;;  %2628 = vrcp.f32 %v3165_v55  ;;  %v3176_v5 = vadd.f32 1.0, %v2621_v56  ;;  %vm1704_vm4 = vweird.f32 %v2619_v54  ;;  %vm3187_vm5 = vcmp.eq.f32.partialorder %v874_v59, 8.507059e+37 }
  0xc8   : > { %v2625_v3 = vpop.eup %2624  ;;  %v1700_v4 = vsub.f32 1.0, %v1699_v57  ;;  %v3178_v6 = vadd.f32 1.0, %v2623_v1  ;;  %2630 = vpow2.f32 %v2473_v51  ;;  %v877_v13 = vor.u32 1.1754944e-38, %v876_v61  ;;  %vm1705_vm9 = vmor %vm1703_vm0, %vm1704_vm4  ;;  %v448_v57 = vpop.f32.mrf.mxu2 }
  0xc9   : > { %v2627_v7 = vpop.eup %2626  ;;  %v3180_v0 = vadd.f32 1.0, %v2625_v3  ;;  %2632 = vpow2.f32 %v2457_v60  ;;  %v1482_v14 = vand.u32 2147483647, %v3165_v55  ;;  %v1484_v16 = vand.u32 2147483648, %v3165_v55 }
  0xca   : > { %v1701_v10 = vmul.f32 %v2619_v54, %v1700_v4  ;;  %v866_v11 = vmul.f32 %v2627_v7, %v3155_v44  ;;  %2634 = vrcp.f32 %v3176_v5  ;;  %vm871_vm6 = vweird.f32 %v2627_v7 }
  0xcb   : > { %2636 = vrcp.f32 %v3178_v6  ;;  %vm1478_vm7 = vweird.f32 %v3165_v55  ;;  %v1114_v23 = vand.u32 2147483647, %v3176_v5  ;;  %v1116_v25 = vand.u32 2147483648, %v3176_v5  ;;  %vm872_vm12 = vmor %vm870_vm2, %vm871_vm6 }
  0xcc   : > { %v1702_v17 = vadd.f32 %v2619_v54, %v1701_v10  ;;  %v867_v19 = vsub.f32 1.0, %v866_v11  ;;  %v1722_v26 = vand.u32 2147483647, %v3178_v6  ;;  %2638 = vrcp.f32 %v3180_v0 }
  0xcd   : > { %v2629_v22 = vpop.eup %2628  ;;  %v1724_v29 = vand.u32 2147483648, %v3178_v6  ;;  %vm3206_vm8 = vcmp.eq.f32.partialorder %v1482_v14, 8.507059e+37  ;;  %v1485_v33 = vor.u32 1.1754944e-38, %v1484_v16  ;;  %v694_v34 = vadd.f32 %v2995_v21, %v662_v8 }
  0xce   : > { %v2631_v15 = vpop.eup %2630  ;;  %v1706_v27 = vsel %vm1705_vm9, %v2619_v54, %v1702_v17  ;;  %v868_v18 = vmul.f32 %v2627_v7, %v867_v19  ;;  %v1474_v28 = vmul.f32 %v2629_v22, %v3165_v55  ;;  %vm1110_vm10 = vweird.f32 %v3176_v5 }
  0xcf   : > { %v2633_v30 = vpop.eup %2632  ;;  %v1711_v31 = vsel %vm3168_vm1, %v1710_v2, %v1706_v27  ;;  %vm1718_vm11 = vweird.f32 %v3178_v6  ;;  %vm1479_vm13 = vweird.f32 %v2629_v22  ;;  %vm3219_vm14 = vcmp.eq.f32.partialorder %v1114_v23, 8.507059e+37 }
  0xd0   : > { %v2635_v35 = vpop.eup %2634  ;;  %2519 = vst.msk [vmem:[%s3085_s17 + $0x188] sm:$0xff] %vm1923_vm3, %v1711_v31  ;;  %v869_v36 = vadd.f32 %v2627_v7, %v868_v18  ;;  %v1475_v24 = vsub.f32 1.0, %v1474_v28  ;;  %v1117_v40 = vor.u32 1.1754944e-38, %v1116_v25  ;;  %v3223_v41 = vadd.f32 1.0, %v2631_v15  ;;  %vm1480_vm1 = vmor %vm1478_vm7, %vm1479_vm13  ;;  %v410_v15 = vpop.f32.mrf.mxu0 }
  0xd1   : > { %v2637_v37 = vpop.eup %2636  ;;  %v1106_v38 = vmul.f32 %v2635_v35, %v3176_v5  ;;  %vm3226_vm15 = vcmp.eq.f32.partialorder %v1722_v26, 8.507059e+37  ;;  %v1725_v44 = vor.u32 1.1754944e-38, %v1724_v29  ;;  %vm885_vm0 = vweird.f32 %v3180_v0 }
  0xd2   : > { %v873_v42 = vsel %vm872_vm12, %v2627_v7, %v869_v36  ;;  %v1476_v43 = vmul.f32 %v2629_v22, %v1475_v24  ;;  %v1714_v45 = vmul.f32 %v2637_v37, %v3178_v6  ;;  %v2639_v47 = vpop.eup %2638  ;;  %v3233_v50 = vadd.f32 1.0, %v2633_v30  ;;  %v541_v7 = vpop.f32.mrf.mxu3 }
  0xd3   : > { %v878_v48 = vsel %vm3187_vm5, %v877_v13, %v873_v42  ;;  %v1107_v49 = vsub.f32 1.0, %v1106_v38  ;;  %v881_v54 = vmul.f32 %v2639_v47, %v3180_v0  ;;  %v889_v56 = vand.u32 2147483647, %v3180_v0  ;;  %v503_v30 = vpop.f32.mrf.mxu1 }
  0xd4   : > { %1926 = vst.msk [vmem:[%s3085_s17 + $0x10] sm:$0xff] %vm1923_vm3, %v878_v48  ;;  %v1477_v51 = vadd.f32 %v2629_v22, %v1476_v43  ;;  %v1715_v53 = vsub.f32 1.0, %v1714_v45  ;;  %vm1111_vm2 = vweird.f32 %v2635_v35  ;;  %v891_v59 = vand.u32 2147483648, %v3180_v0 }
  0xd5   : > { %v1108_v58 = vmul.f32 %v2635_v35, %v1107_v49  ;;  %2640 = vrcp.f32 %v3223_v41  ;;  %vm1719_vm4 = vweird.f32 %v2637_v37  ;;  %v882_v63 = vsub.f32 1.0, %v881_v54  ;;  %vm1112_vm5 = vmor %vm1110_vm10, %vm1111_vm2 }
  0xd6   : > { %v1481_v60 = vsel %vm1480_vm1, %v2629_v22, %v1477_v51  ;;  %v1716_v62 = vmul.f32 %v2637_v37, %v1715_v53  ;;  %v1499_v61 = vand.u32 2147483648, %v3223_v41  ;;  %2642 = vrcp.f32 %v3233_v50  ;;  %vm1720_vm7 = vmor %vm1718_vm11, %vm1719_vm4 }
  0xd7   : > { %v1486_v1 = vsel %vm3206_vm8, %v1485_v33, %v1481_v60  ;;  %v1109_v2 = vadd.f32 %v2635_v35, %v1108_v58  ;;  %v883_v3 = vmul.f32 %v2639_v47, %v882_v63  ;;  %vm886_vm6 = vweird.f32 %v2639_v47 }
  0xd8   : > { %2504 = vst.msk [vmem:[%s3085_s17 + $0x110] sm:$0xff] %vm1923_vm3, %v1486_v1  ;;  %v1717_v55 = vadd.f32 %v2637_v37, %v1716_v62  ;;  %v1497_v4 = vand.u32 2147483647, %v3223_v41  ;;  %vm3255_vm9 = vcmp.eq.f32.partialorder %v889_v56, 8.507059e+37  ;;  %v892_v11 = vor.u32 1.1754944e-38, %v891_v59  ;;  %vm887_vm8 = vmor %vm885_vm0, %vm886_vm6 }
  0xd9   : > { %v1113_v8 = vsel %vm1112_vm5, %v2635_v35, %v1109_v2  ;;  %v2489_v12 = vmul.f32 -1.442695, %v694_v34  ;;  %v884_v14 = vadd.f32 %v2639_v47, %v883_v3  ;;  %v615_v16 = vadd.f32 %v2995_v21, %v3184_v9  ;;  %v450_v34 = vpop.f32.mrf.mxu2 }
  0xda   : > { %v1118_v5 = vsel %vm3219_vm14, %v1117_v40, %v1113_v8  ;;  %v1721_v13 = vsel %vm1720_vm7, %v2637_v37, %v1717_v55  ;;  %vm1493_vm10 = vweird.f32 %v3223_v41  ;;  %v1500_v19 = vor.u32 1.1754944e-38, %v1499_v61 }
  0xdb   : > { %v2641_v17 = vpop.eup %2640  ;;  %1942 = vst.msk [vmem:[%s3085_s17 + $0x90] sm:$0xff] %vm1923_vm3, %v1118_v5  ;;  %v1726_v6 = vsel %vm3226_vm15, %v1725_v44, %v1721_v13  ;;  %2644 = vpow2.f32 %v2489_v12  ;;  %v888_v22 = vsel %vm887_vm8, %v2639_v47, %v884_v14  ;;  %vm3274_vm11 = vcmp.eq.f32.partialorder %v1497_v4, 8.507059e+37  ;;  %v506_v13 = vpop.f32.mrf.mxu1 }
  0xdc   : > { %2520 = vst.msk [vmem:[%s3085_s17 + $0x190] sm:$0xff] %vm1923_vm3, %v1726_v6  ;;  %v1489_v9 = vmul.f32 %v2641_v17, %v3223_v41  ;;  %v1129_v25 = vand.u32 2147483647, %v3233_v50  ;;  %v2442_v26 = vmul.f32 -1.442695, %v615_v16  ;;  %v2643_v0 = vpop.eup %2642  ;;  %v893_v27 = vsel %vm3255_vm9, %v892_v11, %v888_v22 }
  0xdd   : > { %v647_v18 = vmul.f32 %v2990_v20, %v501_v52  ;;  %v596_v28 = vmul.f32 %v2990_v20, %v448_v57  ;;  %v663_v29 = vmul.f32 %v2990_v20, %v541_v7  ;;  %1927 = vst.msk [vmem:[%s3085_s17 + $0x18] sm:$0xff] %vm1923_vm3, %v893_v27  ;;  %v1121_v32 = vmul.f32 %v2643_v0, %v3233_v50  ;;  %v543_v52 = vpop.f32.mrf.mxu3  ;;  %v413_v7 = vpop.f32.mrf.mxu0 }
  0xde   : > { %v1490_v31 = vsub.f32 1.0, %v1489_v9  ;;  %v1131_v33 = vand.u32 2147483648, %v3233_v50  ;;  %2646 = vpow2.f32 %v2442_v26  ;;  %vm1494_vm12 = vweird.f32 %v2641_v17 }
  0xdf   : > { %v679_v35 = vadd.f32 %v2995_v21, %v647_v18  ;;  %v631_v36 = vadd.f32 %v2995_v21, %v596_v28  ;;  %v581_v24 = vmul.f32 %v2990_v20, %v410_v15  ;;  %v1122_v38 = vsub.f32 1.0, %v1121_v32  ;;  %vm1495_vm14 = vmor %vm1493_vm10, %vm1494_vm12 }
  0xe0   : > { %v1491_v37 = vmul.f32 %v2641_v17, %v1490_v31  ;;  %v695_v39 = vadd.f32 %v2995_v21, %v663_v29  ;;  %v648_v40 = vmul.f32 %v2990_v20, %v503_v30  ;;  %vm1126_vm13 = vweird.f32 %v2643_v0 }
  0xe1   : > { %v2645_v42 = vpop.eup %2644  ;;  %v2474_v43 = vmul.f32 -1.442695, %v679_v35  ;;  %v616_v45 = vadd.f32 %v2995_v21, %v581_v24  ;;  %v597_v46 = vmul.f32 %v2990_v20, %v450_v34  ;;  %v1123_v47 = vmul.f32 %v2643_v0, %v1122_v38 }
  0xe2   : > { %v1492_v44 = vadd.f32 %v2641_v17, %v1491_v37  ;;  %v3295_v48 = vadd.f32 1.0, %v2645_v42  ;;  %v2458_v49 = vmul.f32 -1.442695, %v631_v36  ;;  %vm1125_vm15 = vweird.f32 %v3233_v50 }
  0xe3   : > { %v1132_v51 = vor.u32 1.1754944e-38, %v1131_v33  ;;  %2648 = vpow2.f32 %v2474_v43  ;;  %v680_v53 = vadd.f32 %v2995_v21, %v648_v40  ;;  %v1124_v57 = vadd.f32 %v2643_v0, %v1123_v47  ;;  %vm1127_vm0 = vmor %vm1125_vm15, %vm1126_vm13  ;;  %v508_v42 = vpop.f32.mrf.mxu1 }
  0xe4   : > { %v2647_v54 = vpop.eup %2646  ;;  %v1496_v56 = vsel %vm1495_vm14, %v2641_v17, %v1492_v44  ;;  %2650 = vrcp.f32 %v3295_v48  ;;  %v2490_v58 = vmul.f32 -1.442695, %v695_v39  ;;  %v2443_v60 = vmul.f32 -1.442695, %v616_v45 }
  0xe5   : > { %v1501_v59 = vsel %vm3274_vm11, %v1500_v19, %v1496_v56  ;;  %v3306_v41 = vadd.f32 1.0, %v2647_v54  ;;  %v664_v50 = vmul.f32 %v2990_v20, %v543_v52  ;;  %v1128_v62 = vsel %vm1127_vm0, %v2643_v0, %v1124_v57 }
  0xe6   : > { %2505 = vst.msk [vmem:[%s3085_s17 + $0x118] sm:$0xff] %vm1923_vm3, %v1501_v59  ;;  %vm1130_vm1 = vcmp.eq.f32.partialorder %v1129_v25, 8.507059e+37  ;;  %2652 = vpow2.f32 %v2458_v49  ;;  %v632_v63 = vadd.f32 %v2995_v21, %v597_v46  ;;  %v1737_v2 = vand.u32 2147483647, %v3295_v48 }
  0xe7   : > { %v1133_v1 = vsel %vm1130_vm1, %v1132_v51, %v1128_v62  ;;  %2654 = vrcp.f32 %v3306_v41  ;;  %v2475_v61 = vmul.f32 -1.442695, %v680_v53  ;;  %v1739_v55 = vand.u32 2147483648, %v3295_v48 }
  0xe8   : > { %1943 = vst.msk [vmem:[%s3085_s17 + $0x98] sm:$0xff] %vm1923_vm3, %v1133_v1  ;;  %2656 = vpow2.f32 %v2490_v58  ;;  %v696_v4 = vadd.f32 %v2995_v21, %v664_v50  ;;  %v904_v10 = vand.u32 2147483647, %v3306_v41  ;;  %v906_v11 = vand.u32 2147483648, %v3306_v41 }
  0xe9   : > { %v2649_v3 = vpop.eup %2648  ;;  %2658 = vpow2.f32 %v2443_v60  ;;  %v2459_v5 = vmul.f32 -1.442695, %v632_v63  ;;  %vm1733_vm2 = vweird.f32 %v3295_v48  ;;  %vm3324_vm4 = vcmp.eq.f32.partialorder %v1737_v2, 8.507059e+37 }
  0xea   : > { %v2651_v8 = vpop.eup %2650  ;;  %v3320_v12 = vadd.f32 1.0, %v2649_v3  ;;  %2660 = vpow2.f32 %v2475_v61  ;;  %v1740_v6 = vor.u32 1.1754944e-38, %v1739_v55  ;;  %vm900_vm5 = vweird.f32 %v3306_v41 }
  0xeb   : > { %v1729_v14 = vmul.f32 %v2651_v8, %v3295_v48  ;;  %v582_v19 = vmul.f32 %v2990_v20, %v413_v7  ;;  %v2491_v25 = vmul.f32 -1.442695, %v696_v4  ;;  %v3334_v26 = vmul.f32 %v2990_v20, %v506_v13 }
  0xec   : > { %v2653_v17 = vpop.eup %2652  ;;  %2662 = vrcp.f32 %v3320_v12  ;;  %vm3337_vm6 = vcmp.eq.f32.partialorder %v904_v10, 8.507059e+37  ;;  %v907_v18 = vor.u32 1.1754944e-38, %v906_v11  ;;  %vm1734_vm7 = vweird.f32 %v2651_v8 }
  0xed   : > { %v2655_v22 = vpop.eup %2654  ;;  %v1730_v9 = vsub.f32 1.0, %v1729_v14  ;;  %v3331_v23 = vadd.f32 1.0, %v2653_v17  ;;  %2664 = vpow2.f32 %v2459_v5  ;;  %v1512_v30 = vand.u32 2147483647, %v3320_v12  ;;  %vm1735_vm8 = vmor %vm1733_vm2, %vm1734_vm7 }
  0xee   : > { %v2657_v15 = vpop.eup %2656  ;;  %v896_v0 = vmul.f32 %v2655_v22, %v3306_v41  ;;  %vm1508_vm9 = vweird.f32 %v3320_v12  ;;  %v1514_v35 = vand.u32 2147483648, %v3320_v12  ;;  %v617_v36 = vadd.f32 %v2995_v21, %v582_v19 }
  0xef   : > { %v2659_v28 = vpop.eup %2658  ;;  %v1731_v29 = vmul.f32 %v2651_v8, %v1730_v9  ;;  %2666 = vrcp.f32 %v3331_v23  ;;  %v3344_v20 = vadd.f32 1.0, %v2657_v15  ;;  %vm901_vm10 = vweird.f32 %v2655_v22 }
  0xf0   : > { %v897_v31 = vsub.f32 1.0, %v896_v0  ;;  %v3346_v32 = vadd.f32 1.0, %v2659_v28  ;;  %v2661_v33 = vpop.eup %2660  ;;  %2668 = vpow2.f32 %v2491_v25  ;;  %v1144_v38 = vand.u32 2147483647, %v3331_v23  ;;  %vm902_vm12 = vmor %vm900_vm5, %vm901_vm10  ;;  %v453_v28 = vpop.f32.mrf.mxu2 }
  0xf1   : > { %v1732_v34 = vadd.f32 %v2651_v8, %v1731_v29  ;;  %2670 = vrcp.f32 %v3344_v20  ;;  %vm3355_vm11 = vcmp.eq.f32.partialorder %v1512_v30, 8.507059e+37  ;;  %v1146_v21 = vand.u32 2147483648, %v3331_v23 }
  0xf2   : > { %v2663_v24 = vpop.eup %2662  ;;  %v898_v37 = vmul.f32 %v2655_v22, %v897_v31  ;;  %2672 = vrcp.f32 %v3346_v32  ;;  %v3363_v44 = vadd.f32 1.0, %v2661_v33  ;;  %v1515_v49 = vor.u32 1.1754944e-38, %v1514_v35  ;;  %v511_v33 = vpop.f32.mrf.mxu1 }
  0xf3   : > { %v1736_v39 = vsel %vm1735_vm8, %v2651_v8, %v1732_v34  ;;  %v1504_v40 = vmul.f32 %v2663_v24, %v3320_v12  ;;  %v2665_v43 = vpop.eup %2664  ;;  %vm1140_vm13 = vweird.f32 %v3331_v23  ;;  %v1752_v52 = vand.u32 2147483647, %v3344_v20 }
  0xf4   : > { %v1741_v45 = vsel %vm3324_vm4, %v1740_v6, %v1736_v39  ;;  %v899_v46 = vadd.f32 %v2655_v22, %v898_v37  ;;  %vm3372_vm14 = vcmp.eq.f32.partialorder %v1144_v38, 8.507059e+37  ;;  %v1754_v56 = vand.u32 2147483648, %v3344_v20 }
  0xf5   : > { %v2667_v47 = vpop.eup %2666  ;;  %2521 = vst.msk [vmem:[%s3085_s17 + $0x198] sm:$0xff] %vm1923_vm3, %v1741_v45  ;;  %v1505_v48 = vsub.f32 1.0, %v1504_v40  ;;  %vm1509_vm15 = vweird.f32 %v2663_v24  ;;  %v2444_v41 = vmul.f32 -1.442695, %v617_v36  ;;  %v1147_v62 = vor.u32 1.1754944e-38, %v1146_v21  ;;  %v415_v40 = vpop.f32.mrf.mxu0 }
  0xf6   : > { %v903_v51 = vsel %vm902_vm12, %v2655_v22, %v899_v46  ;;  %v1136_v53 = vmul.f32 %v2667_v47, %v3331_v23  ;;  %v2669_v57 = vpop.eup %2668  ;;  %vm1748_vm0 = vweird.f32 %v3344_v20  ;;  %2674 = vrcp.f32 %v3363_v44  ;;  %vm1510_vm4 = vmor %vm1508_vm9, %vm1509_vm15 }
  0xf7   : > { %v908_v58 = vsel %vm3337_vm6, %v907_v18, %v903_v51  ;;  %v1506_v59 = vmul.f32 %v2663_v24, %v1505_v48  ;;  %v2671_v60 = vpop.eup %2670  ;;  %vm3384_vm1 = vcmp.eq.f32.partialorder %v1752_v52, 8.507059e+37  ;;  %vm915_vm2 = vweird.f32 %v3346_v32  ;;  %v3451_v52 = vld [vmem:[%s4309_s3] ss:$0 sm:$0xff] }
  0xf8   : > { %1928 = vst.msk [vmem:[%s3085_s17 + $0x20] sm:$0xff] %vm1923_vm3, %v908_v58  ;;  %v1137_v50 = vsub.f32 1.0, %v1136_v53  ;;  %v1744_v1 = vmul.f32 %v2671_v60, %v3344_v20  ;;  %v919_v61 = vand.u32 2147483647, %v3346_v32  ;;  %v2673_v55 = vpop.eup %2672  ;;  %vm1141_vm5 = vweird.f32 %v2667_v47  ;;  %v546_v20 = vpop.f32.mrf.mxu3 }
  0xf9   : > { %v1507_v63 = vadd.f32 %v2663_v24, %v1506_v59  ;;  %v1755_v4 = vor.u32 1.1754944e-38, %v1754_v56  ;;  %v3392_v7 = vadd.f32 1.0, %v2665_v43  ;;  %v911_v11 = vmul.f32 %v2673_v55, %v3346_v32  ;;  %vm1142_vm6 = vmor %vm1140_vm13, %vm1141_vm5 }
  0xfa   : > { %v1138_v3 = vmul.f32 %v2667_v47, %v1137_v50  ;;  %v1745_v10 = vsub.f32 1.0, %v1744_v1  ;;  %v921_v5 = vand.u32 2147483648, %v3346_v32  ;;  %v1527_v16 = vand.u32 2147483647, %v3363_v44 }
  0xfb   : > { %v1511_v8 = vsel %vm1510_vm4, %v2663_v24, %v1507_v63  ;;  %2676 = vrcp.f32 %v3392_v7  ;;  %vm1749_vm7 = vweird.f32 %v2671_v60  ;;  %v912_v17 = vsub.f32 1.0, %v911_v11  ;;  %v3433_v24 = vld [vmem:[%s4310_s4] ss:$0 sm:$0xff] }
  0xfc   : > { %v1516_v13 = vsel %vm3355_vm11, %v1515_v49, %v1511_v8  ;;  %v1139_v14 = vadd.f32 %v2667_v47, %v1138_v3  ;;  %v1746_v12 = vmul.f32 %v2671_v60, %v1745_v10  ;;  %v1529_v6 = vand.u32 2147483648, %v3363_v44  ;;  %v2675_v19 = vpop.eup %2674  ;;  %vm1750_vm8 = vmor %vm1748_vm0, %vm1749_vm7  ;;  %v455_v8 = vpop.f32.mrf.mxu2 }
  0xfd   : > { %2506 = vst.msk [vmem:[%s3085_s17 + $0x120] sm:$0xff] %vm1923_vm3, %v1516_v13  ;;  %vm916_vm9 = vweird.f32 %v2673_v55  ;;  %v3405_v9 = vadd.f32 1.0, %v2669_v57  ;;  %2678 = vpow2.f32 %v2444_v41  ;;  %v913_v0 = vmul.f32 %v2673_v55, %v912_v17  ;;  %v418_v23 = vpop.f32.mrf.mxu0 }
  0xfe   : > { %v1143_v22 = vsel %vm1142_vm6, %v2667_v47, %v1139_v14  ;;  %v1747_v15 = vadd.f32 %v2671_v60, %v1746_v12  ;;  %v1519_v27 = vmul.f32 %v2675_v19, %v3363_v44  ;;  %vm3414_vm10 = vcmp.eq.f32.partialorder %v919_v61, 8.507059e+37  ;;  %vm917_vm13 = vmor %vm915_vm2, %vm916_vm9 }
  0xff   : > { %v1148_v25 = vsel %vm3372_vm14, %v1147_v62, %v1143_v22  ;;  %v922_v18 = vor.u32 1.1754944e-38, %v921_v5  ;;  %vm1523_vm11 = vweird.f32 %v3363_v44  ;;  %2680 = vrcp.f32 %v3405_v9 }
 0x100   : > { %1944 = vst.msk [vmem:[%s3085_s17 + $0xa0] sm:$0xff] %vm1923_vm3, %v1148_v25  ;;  %v1751_v29 = vsel %vm1750_vm8, %v2671_v60, %v1747_v15  ;;  %v914_v30 = vadd.f32 %v2673_v55, %v913_v0  ;;  %v1520_v31 = vsub.f32 1.0, %v1519_v27  ;;  %vm3420_vm12 = vcmp.eq.f32.partialorder %v1527_v16, 8.507059e+37  ;;  %v548_v13 = vpop.f32.mrf.mxu3 }
 0x101   : > { %v2677_v34 = vpop.eup %2676  ;;  %v1756_v35 = vsel %vm3384_vm1, %v1755_v4, %v1751_v29  ;;  %v1530_v36 = vor.u32 1.1754944e-38, %v1529_v6  ;;  %vm1155_vm14 = vweird.f32 %v3392_v7  ;;  %v681_v37 = vadd.f32 %v3433_v24, %v3334_v26 }
 0x102   : > { %2522 = vst.msk [vmem:[%s3085_s17 + $0x1a0] sm:$0xff] %vm1923_vm3, %v1756_v35  ;;  %v918_v38 = vsel %vm917_vm13, %v2673_v55, %v914_v30  ;;  %v1521_v39 = vmul.f32 %v2675_v19, %v1520_v31  ;;  %vm1524_vm15 = vweird.f32 %v2675_v19  ;;  %v1151_v32 = vmul.f32 %v2677_v34, %v3392_v7 }
 0x103   : > { %v2679_v21 = vpop.eup %2678  ;;  %v923_v43 = vsel %vm3414_vm10, %v922_v18, %v918_v38  ;;  %v1159_v45 = vand.u32 2147483647, %v3392_v7  ;;  %v1161_v46 = vand.u32 2147483648, %v3392_v7  ;;  %v2476_v47 = vmul.f32 -1.442695, %v681_v37  ;;  %vm1525_vm0 = vmor %vm1523_vm11, %vm1524_vm15 }
 0x104   : > { %1929 = vst.msk [vmem:[%s3085_s17 + $0x28] sm:$0xff] %vm1923_vm3, %v923_v43  ;;  %v1522_v26 = vadd.f32 %v2675_v19, %v1521_v39  ;;  %v1152_v48 = vsub.f32 1.0, %v1151_v32  ;;  %v3446_v49 = vadd.f32 1.0, %v2679_v21  ;;  %v598_v51 = vmul.f32 %v3451_v52, %v453_v28  ;;  %v458_v50 = vpop.f32.mrf.mxu2 }
 0x105   : > { %v2681_v53 = vpop.eup %2680  ;;  %2682 = vpow2.f32 %v2476_v47  ;;  %v665_v54 = vmul.f32 %v3451_v52, %v546_v20  ;;  %v583_v56 = vmul.f32 %v3451_v52, %v415_v40  ;;  %v650_v57 = vmul.f32 %v3451_v52, %v508_v42 }
 0x106   : > { %v1526_v58 = vsel %vm1525_vm0, %v2675_v19, %v1522_v26  ;;  %v1153_v59 = vmul.f32 %v2677_v34, %v1152_v48  ;;  %vm1156_vm1 = vweird.f32 %v2677_v34  ;;  %v1759_v41 = vmul.f32 %v2681_v53, %v3405_v9 }
 0x107   : > { %v1531_v60 = vsel %vm3420_vm12, %v1530_v36, %v1526_v58  ;;  %vm3463_vm2 = vcmp.eq.f32.partialorder %v1159_v45, 8.507059e+37  ;;  %v1162_v44 = vor.u32 1.1754944e-38, %v1161_v46  ;;  %2684 = vrcp.f32 %v3446_v49  ;;  %vm1157_vm4 = vmor %vm1155_vm14, %vm1156_vm1 }
 0x108   : > { %2507 = vst.msk [vmem:[%s3085_s17 + $0x128] sm:$0xff] %vm1923_vm3, %v1531_v60  ;;  %v1154_v62 = vadd.f32 %v2677_v34, %v1153_v59  ;;  %v1760_v63 = vsub.f32 1.0, %v1759_v41  ;;  %v1767_v1 = vand.u32 2147483647, %v3405_v9  ;;  %v633_v2 = vadd.f32 %v3433_v24, %v598_v51 }
 0x109   : > { %v1769_v61 = vand.u32 2147483648, %v3405_v9  ;;  %v697_v55 = vadd.f32 %v3433_v24, %v665_v54  ;;  %v618_v3 = vadd.f32 %v3433_v24, %v583_v56  ;;  %v682_v4 = vadd.f32 %v3433_v24, %v650_v57 }
 0x10a   : > { %v1158_v10 = vsel %vm1157_vm4, %v2677_v34, %v1154_v62  ;;  %v1761_v11 = vmul.f32 %v2681_v53, %v1760_v63  ;;  %vm1764_vm5 = vweird.f32 %v2681_v53  ;;  %v2460_v5 = vmul.f32 -1.442695, %v633_v2 }
 0x10b   : > { %v2683_v14 = vpop.eup %2682  ;;  %v1163_v7 = vsel %vm3463_vm2, %v1162_v44, %v1158_v10  ;;  %vm1763_vm6 = vweird.f32 %v3405_v9  ;;  %v2492_v16 = vmul.f32 -1.442695, %v697_v55  ;;  %v2445_v12 = vmul.f32 -1.442695, %v618_v3  ;;  %v551_v44 = vpop.f32.mrf.mxu3 }
 0x10c   : > { %1945 = vst.msk [vmem:[%s3085_s17 + $0xa8] sm:$0xff] %vm1923_vm3, %v1163_v7  ;;  %v1762_v17 = vadd.f32 %v2681_v53, %v1761_v11  ;;  %v3483_v6 = vadd.f32 1.0, %v2683_v14  ;;  %2686 = vpow2.f32 %v2460_v5  ;;  %v599_v19 = vmul.f32 %v3451_v52, %v455_v8  ;;  %vm1765_vm7 = vmor %vm1763_vm6, %vm1764_vm5 }
 0x10d   : > { %v2685_v22 = vpop.eup %2684  ;;  %v1770_v25 = vor.u32 1.1754944e-38, %v1769_v61  ;;  %2688 = vpow2.f32 %v2492_v16  ;;  %v2477_v15 = vmul.f32 -1.442695, %v682_v4  ;;  %v666_v0 = vmul.f32 %v3451_v52, %v548_v13 }
 0x10e   : > { %v1766_v27 = vsel %vm1765_vm7, %v2681_v53, %v1762_v17  ;;  %vm1768_vm9 = vcmp.eq.f32.partialorder %v1767_v1, 8.507059e+37  ;;  %v926_v9 = vmul.f32 %v2685_v22, %v3446_v49  ;;  %2690 = vrcp.f32 %v3483_v6 }
 0x10f   : > { %v1771_v18 = vsel %vm1768_vm9, %v1770_v25, %v1766_v27  ;;  %v934_v28 = vand.u32 2147483647, %v3446_v49  ;;  %v936_v29 = vand.u32 2147483648, %v3446_v49  ;;  %vm930_vm8 = vweird.f32 %v3446_v49 }
 0x110   : > { %2523 = vst.msk [vmem:[%s3085_s17 + $0x1a8] sm:$0xff] %vm1923_vm3, %v1771_v18  ;;  %v927_v30 = vsub.f32 1.0, %v926_v9  ;;  %2692 = vpow2.f32 %v2445_v12  ;;  %v634_v31 = vadd.f32 %v3433_v24, %v599_v19  ;;  %v1542_v20 = vand.u32 2147483647, %v3483_v6 }
 0x111   : > { %2694 = vpow2.f32 %v2477_v15  ;;  %v698_v34 = vadd.f32 %v3433_v24, %v666_v0  ;;  %v584_v35 = vmul.f32 %v3451_v52, %v418_v23  ;;  %vm931_vm10 = vweird.f32 %v2685_v22 }
 0x112   : > { %v2687_v36 = vpop.eup %2686  ;;  %v928_v37 = vmul.f32 %v2685_v22, %v927_v30  ;;  %v1544_v38 = vand.u32 2147483648, %v3483_v6  ;;  %v2461_v39 = vmul.f32 -1.442695, %v634_v31  ;;  %vm3499_vm11 = vcmp.eq.f32.partialorder %v934_v28, 8.507059e+37  ;;  %vm932_vm13 = vmor %vm930_vm8, %vm931_vm10 }
 0x113   : > { %v2689_v32 = vpop.eup %2688  ;;  %v937_v42 = vor.u32 1.1754944e-38, %v936_v29  ;;  %v3503_v21 = vadd.f32 1.0, %v2687_v36  ;;  %v651_v43 = vmul.f32 %v3451_v52, %v511_v33  ;;  %vm1538_vm12 = vweird.f32 %v3483_v6 }
 0x114   : > { %v2691_v45 = vpop.eup %2690  ;;  %v929_v46 = vadd.f32 %v2685_v22, %v928_v37  ;;  %v3507_v47 = vadd.f32 1.0, %v2689_v32  ;;  %2696 = vpow2.f32 %v2461_v39  ;;  %vm3512_vm14 = vcmp.eq.f32.partialorder %v1542_v20, 8.507059e+37 }
 0x115   : > { %v1534_v26 = vmul.f32 %v2691_v45, %v3483_v6  ;;  %2698 = vrcp.f32 %v3503_v21  ;;  %v2493_v51 = vmul.f32 -1.442695, %v698_v34  ;;  %v1545_v56 = vor.u32 1.1754944e-38, %v1544_v38 }
 0x116   : > { %v2693_v53 = vpop.eup %2692  ;;  %v933_v54 = vsel %vm932_vm13, %v2685_v22, %v929_v46  ;;  %2700 = vrcp.f32 %v3507_v47  ;;  %v619_v57 = vadd.f32 %v3433_v24, %v584_v35  ;;  %v1174_v41 = vand.u32 2147483647, %v3503_v21 }
 0x117   : > { %v2695_v58 = vpop.eup %2694  ;;  %v938_v49 = vsel %vm3499_vm11, %v937_v42, %v933_v54  ;;  %v1535_v59 = vsub.f32 1.0, %v1534_v26  ;;  %v683_v60 = vadd.f32 %v3433_v24, %v651_v43  ;;  %vm1539_vm15 = vweird.f32 %v2691_v45 }
 0x118   : > { %1930 = vst.msk [vmem:[%s3085_s17 + $0x30] sm:$0xff] %vm1923_vm3, %v938_v49  ;;  %v1176_v62 = vand.u32 2147483648, %v3503_v21  ;;  %v1782_v63 = vand.u32 2147483647, %v3507_v47  ;;  %v3527_v1 = vadd.f32 1.0, %v2693_v53  ;;  %v1784_v61 = vand.u32 2147483648, %v3507_v47  ;;  %vm1540_vm1 = vmor %vm1538_vm12, %vm1539_vm15 }
 0x119   : > { %v1536_v2 = vmul.f32 %v2691_v45, %v1535_v59  ;;  %v3530_v55 = vadd.f32 1.0, %v2695_v58  ;;  %2702 = vpow2.f32 %v2493_v51  ;;  %v2446_v4 = vmul.f32 -1.442695, %v619_v57 }
 0x11a   : > { %v2697_v3 = vpop.eup %2696  ;;  %2704 = vrcp.f32 %v3527_v1  ;;  %v600_v8 = vmul.f32 %v3451_v52, %v458_v50  ;;  %v3535_v10 = vmul.f32 %v3451_v52, %v551_v44  ;;  %vm1170_vm0 = vweird.f32 %v3503_v21 }
 0x11b   : > { %v2699_v11 = vpop.eup %2698  ;;  %v1537_v5 = vadd.f32 %v2691_v45, %v1536_v2  ;;  %2706 = vrcp.f32 %v3530_v55  ;;  %v2478_v13 = vmul.f32 -1.442695, %v683_v60  ;;  %vm3543_vm2 = vcmp.eq.f32.partialorder %v1174_v41, 8.507059e+37  ;;  %v420_v2 = vpop.f32.mrf.mxu0 }
 0x11c   : > { %v2701_v14 = vpop.eup %2700  ;;  %v1166_v7 = vmul.f32 %v2699_v11, %v3503_v21  ;;  %v1177_v12 = vor.u32 1.1754944e-38, %v1176_v62  ;;  %vm1778_vm4 = vweird.f32 %v3507_v47  ;;  %vm3549_vm5 = vcmp.eq.f32.partialorder %v1782_v63, 8.507059e+37 }
 0x11d   : > { %v1541_v17 = vsel %vm1540_vm1, %v2691_v45, %v1537_v5  ;;  %v1774_v19 = vmul.f32 %v2701_v14, %v3507_v47  ;;  %v1785_v25 = vor.u32 1.1754944e-38, %v1784_v61  ;;  %v949_v6 = vand.u32 2147483647, %v3527_v1 }
 0x11e   : > { %v1546_v15 = vsel %vm3512_vm14, %v1545_v56, %v1541_v17  ;;  %v1167_v0 = vsub.f32 1.0, %v1166_v7  ;;  %v951_v27 = vand.u32 2147483648, %v3527_v1  ;;  %v1557_v9 = vand.u32 2147483647, %v3530_v55 }
 0x11f   : > { %v2703_v23 = vpop.eup %2702  ;;  %2508 = vst.msk [vmem:[%s3085_s17 + $0x130] sm:$0xff] %vm1923_vm3, %v1546_v15  ;;  %v1775_v18 = vsub.f32 1.0, %v1774_v19  ;;  %vm945_vm6 = vweird.f32 %v3527_v1  ;;  %v1559_v28 = vand.u32 2147483648, %v3530_v55  ;;  %v3562_v29 = vadd.f32 1.0, %v2697_v3 }
 0x120   : > { %2708 = vpow2.f32 %v2446_v4  ;;  %v2705_v30 = vpop.eup %2704  ;;  %v1168_v31 = vmul.f32 %v2699_v11, %v1167_v0  ;;  %vm1171_vm7 = vweird.f32 %v2699_v11  ;;  %vm1553_vm9 = vweird.f32 %v3530_v55 }
 0x121   : > { %v3565_v33 = vadd.f32 1.0, %v2703_v23  ;;  %2710 = vpow2.f32 %v2478_v13  ;;  %v2707_v20 = vpop.eup %2706  ;;  %v1776_v34 = vmul.f32 %v2701_v14, %v1775_v18  ;;  %vm1779_vm8 = vweird.f32 %v2701_v14  ;;  %vm1172_vm12 = vmor %vm1170_vm0, %vm1171_vm7 }
 0x122   : > { %v941_v35 = vmul.f32 %v2705_v30, %v3527_v1  ;;  %vm3568_vm10 = vcmp.eq.f32.partialorder %v949_v6, 8.507059e+37  ;;  %2712 = vrcp.f32 %v3562_v29  ;;  %v1169_v37 = vadd.f32 %v2699_v11, %v1168_v31  ;;  %vm1780_vm13 = vmor %vm1778_vm4, %vm1779_vm8  ;;  %v513_v1 = vpop.f32.mrf.mxu1  ;;  %v553_v31 = vpop.f32.mrf.mxu3 }
 0x123   : > { %v952_v38 = vor.u32 1.1754944e-38, %v951_v27  ;;  %v1549_v39 = vmul.f32 %v2707_v20, %v3530_v55  ;;  %vm3574_vm11 = vcmp.eq.f32.partialorder %v1557_v9, 8.507059e+37  ;;  %v1777_v40 = vadd.f32 %v2701_v14, %v1776_v34 }
 0x124   : > { %v942_v42 = vsub.f32 1.0, %v941_v35  ;;  %v1560_v43 = vor.u32 1.1754944e-38, %v1559_v28  ;;  %v635_v45 = vadd.f32 %v3433_v24, %v600_v8  ;;  %v1173_v46 = vsel %vm1172_vm12, %v2699_v11, %v1169_v37 }
 0x125   : > { %vm946_vm14 = vweird.f32 %v2705_v30  ;;  %v1550_v26 = vsub.f32 1.0, %v1549_v39  ;;  %2714 = vrcp.f32 %v3565_v33  ;;  %v1178_v21 = vsel %vm3543_vm2, %v1177_v12, %v1173_v46 }
 0x126   : > { %v2709_v48 = vpop.eup %2708  ;;  %v1781_v51 = vsel %vm1780_vm13, %v2701_v14, %v1777_v40  ;;  %v943_v53 = vmul.f32 %v2705_v30, %v942_v42  ;;  %v1189_v54 = vand.u32 2147483647, %v3562_v29  ;;  %1946 = vst.msk [vmem:[%s3085_s17 + $0xb0] sm:$0xff] %vm1923_vm3, %v1178_v21  ;;  %vm1554_vm15 = vweird.f32 %v2707_v20  ;;  %vm947_vm1 = vmor %vm945_vm6, %vm946_vm14 }
 0x127   : > { %v2711_v56 = vpop.eup %2710  ;;  %v1786_v47 = vsel %vm3549_vm5, %v1785_v25, %v1781_v51  ;;  %v1551_v57 = vmul.f32 %v2707_v20, %v1550_v26  ;;  %v1191_v58 = vand.u32 2147483648, %v3562_v29  ;;  %vm1185_vm0 = vweird.f32 %v3562_v29  ;;  %vm1555_vm2 = vmor %vm1553_vm9, %vm1554_vm15 }
 0x128   : > { %v2713_v49 = vpop.eup %2712  ;;  %2524 = vst.msk [vmem:[%s3085_s17 + $0x1b0] sm:$0xff] %vm1923_vm3, %v1786_v47  ;;  %v944_v59 = vadd.f32 %v2705_v30, %v943_v53  ;;  %v1797_v41 = vand.u32 2147483647, %v3565_v33  ;;  %v3596_v60 = vadd.f32 1.0, %v2709_v48  ;;  %v1799_v62 = vand.u32 2147483648, %v3565_v33 }
 0x129   : > { %v1552_v50 = vadd.f32 %v2707_v20, %v1551_v57  ;;  %v1181_v44 = vmul.f32 %v2713_v49, %v3562_v29  ;;  %v3603_v63 = vadd.f32 1.0, %v2711_v56  ;;  %vm3608_vm4 = vcmp.eq.f32.partialorder %v1189_v54, 8.507059e+37 }
 0x12a   : > { %v948_v61 = vsel %vm947_vm1, %v2705_v30, %v944_v59  ;;  %vm1793_vm5 = vweird.f32 %v3565_v33  ;;  %2716 = vrcp.f32 %v3596_v60  ;;  %v1192_v13 = vor.u32 1.1754944e-38, %v1191_v58  ;;  %v460_v30 = vpop.f32.mrf.mxu2  ;;  %v516_v26 = vpop.f32.mrf.mxu1 }
 0x12b   : > { %v2715_v4 = vpop.eup %2714  ;;  %v953_v8 = vsel %vm3568_vm10, %v952_v38, %v948_v61  ;;  %v1556_v11 = vsel %vm1555_vm2, %v2707_v20, %v1552_v50  ;;  %v1182_v5 = vsub.f32 1.0, %v1181_v44  ;;  %vm1186_vm6 = vweird.f32 %v2713_v49 }
 0x12c   : > { %1931 = vst.msk [vmem:[%s3085_s17 + $0x38] sm:$0xff] %vm1923_vm3, %v953_v8  ;;  %v1561_v55 = vsel %vm3574_vm11, %v1560_v43, %v1556_v11  ;;  %v1789_v14 = vmul.f32 %v2715_v4, %v3565_v33  ;;  %v966_v7 = vand.u32 2147483648, %v3596_v60  ;;  %vm3624_vm7 = vcmp.eq.f32.partialorder %v1797_v41, 8.507059e+37  ;;  %vm1187_vm10 = vmor %vm1185_vm0, %vm1186_vm6  ;;  %v423_v43 = vpop.f32.mrf.mxu0 }
 0x12d   : > { %2509 = vst.msk [vmem:[%s3085_s17 + $0x138] sm:$0xff] %vm1923_vm3, %v1561_v55  ;;  %v1183_v16 = vmul.f32 %v2713_v49, %v1182_v5  ;;  %v1800_v17 = vor.u32 1.1754944e-38, %v1799_v62  ;;  %2718 = vrcp.f32 %v3603_v63  ;;  %vm1794_vm9 = vweird.f32 %v2715_v4 }
 0x12e   : > { %v1790_v19 = vsub.f32 1.0, %v1789_v14  ;;  %vm960_vm8 = vweird.f32 %v3596_v60  ;;  %v964_v22 = vand.u32 2147483647, %v3596_v60  ;;  %v2462_v6 = vmul.f32 -1.442695, %v635_v45  ;;  %vm1795_vm12 = vmor %vm1793_vm5, %vm1794_vm9 }
 0x12f   : > { %v1184_v25 = vadd.f32 %v2713_v49, %v1183_v16  ;;  %v699_v15 = vadd.f32 %v3433_v24, %v3535_v10  ;;  %v585_v0 = vmul.f32 %v3451_v52, %v420_v2  ;;  %v967_v23 = vor.u32 1.1754944e-38, %v966_v7 }
 0x130   : > { %v2717_v27 = vpop.eup %2716  ;;  %v1791_v9 = vmul.f32 %v2715_v4, %v1790_v19  ;;  %vm1568_vm11 = vweird.f32 %v3603_v63  ;;  %v1572_v18 = vand.u32 2147483647, %v3603_v63  ;;  %v652_v28 = vmul.f32 %v3451_v52, %v513_v1 }
 0x131   : > { %v1188_v20 = vsel %vm1187_vm10, %v2713_v49, %v1184_v25  ;;  %v956_v10 = vmul.f32 %v2717_v27, %v3596_v60  ;;  %v1574_v34 = vand.u32 2147483648, %v3603_v63  ;;  %2720 = vpow2.f32 %v2462_v6 }
 0x132   : > { %v1193_v29 = vsel %vm3608_vm4, %v1192_v13, %v1188_v20  ;;  %v1792_v35 = vadd.f32 %v2715_v4, %v1791_v9  ;;  %v2494_v36 = vmul.f32 -1.442695, %v699_v15  ;;  %v620_v37 = vadd.f32 %v3433_v24, %v585_v0  ;;  %v463_v8 = vpop.f32.mrf.mxu2  ;;  %v556_v15 = vpop.f32.mrf.mxu3 }
 0x133   : > { %v2719_v38 = vpop.eup %2718  ;;  %1947 = vst.msk [vmem:[%s3085_s17 + $0xb8] sm:$0xff] %vm1923_vm3, %v1193_v29  ;;  %v957_v39 = vsub.f32 1.0, %v956_v10  ;;  %v684_v32 = vadd.f32 %v3433_v24, %v652_v28  ;;  %v601_v40 = vmul.f32 %v3451_v52, %v460_v30  ;;  %v668_v42 = vmul.f32 %v3451_v52, %v553_v31 }
 0x134   : > { %v1796_v45 = vsel %vm1795_vm12, %v2715_v4, %v1792_v35  ;;  %vm961_vm13 = vweird.f32 %v2717_v27  ;;  %v1564_v46 = vmul.f32 %v2719_v38, %v3603_v63  ;;  %2722 = vpow2.f32 %v2494_v36 }
 0x135   : > { %v1801_v48 = vsel %vm3624_vm7, %v1800_v17, %v1796_v45  ;;  %v958_v33 = vmul.f32 %v2717_v27, %v957_v39  ;;  %v2447_v21 = vmul.f32 -1.442695, %v620_v37  ;;  %v2479_v51 = vmul.f32 -1.442695, %v684_v32  ;;  %vm962_vm15 = vmor %vm960_vm8, %vm961_vm13 }
 0x136   : > { %2525 = vst.msk [vmem:[%s3085_s17 + $0x1b8] sm:$0xff] %vm1923_vm3, %v1801_v48  ;;  %v1565_v53 = vsub.f32 1.0, %v1564_v46  ;;  %v636_v54 = vadd.f32 %v3433_v24, %v601_v40  ;;  %v700_v56 = vadd.f32 %v3433_v24, %v668_v42  ;;  %v586_v47 = vmul.f32 %v3451_v52, %v423_v43 }
 0x137   : > { %v2721_v57 = vpop.eup %2720  ;;  %v959_v58 = vadd.f32 %v2717_v27, %v958_v33  ;;  %vm1569_vm14 = vweird.f32 %v2719_v38  ;;  %2724 = vpow2.f32 %v2447_v21  ;;  %v653_v49 = vmul.f32 %v3451_v52, %v516_v26 }
 0x138   : > { %v1566_v59 = vmul.f32 %v2719_v38, %v1565_v53  ;;  %v3665_v41 = vadd.f32 1.0, %v2721_v57  ;;  %2726 = vpow2.f32 %v2479_v51  ;;  %v2463_v50 = vmul.f32 -1.442695, %v636_v54  ;;  %vm1570_vm1 = vmor %vm1568_vm11, %vm1569_vm14 }
 0x139   : > { %v963_v44 = vsel %vm962_vm15, %v2717_v27, %v959_v58  ;;  %vm965_vm0 = vcmp.eq.f32.partialorder %v964_v22, 8.507059e+37  ;;  %v2495_v62 = vmul.f32 -1.442695, %v700_v56  ;;  %v621_v2 = vadd.f32 %v3433_v24, %v586_v47 }
 0x13a   : > { %v2723_v61 = vpop.eup %2722  ;;  %v968_v3 = vsel %vm965_vm0, %v967_v23, %v963_v44  ;;  %v1567_v1 = vadd.f32 %v2719_v38, %v1566_v59  ;;  %2728 = vrcp.f32 %v3665_v41  ;;  %vm1573_vm2 = vcmp.eq.f32.partialorder %v1572_v18, 8.507059e+37  ;;  %v558_v21 = vpop.f32.mrf.mxu3 }
 0x13b   : > { %1932 = vst.msk [vmem:[%s3085_s17 + $0x40] sm:$0xff] %vm1923_vm3, %v968_v3  ;;  %v1575_v60 = vor.u32 1.1754944e-38, %v1574_v34  ;;  %v3674_v4 = vadd.f32 1.0, %v2723_v61  ;;  %2730 = vpow2.f32 %v2463_v50  ;;  %v2448_v5 = vmul.f32 -1.442695, %v621_v2 }
 0x13c   : > { %v1571_v11 = vsel %vm1570_vm1, %v2719_v38, %v1567_v1  ;;  %2732 = vpow2.f32 %v2495_v62  ;;  %v685_v13 = vadd.f32 %v3433_v24, %v653_v49  ;;  %v1204_v7 = vand.u32 2147483647, %v3665_v41 }
 0x13d   : > { %v2725_v55 = vpop.eup %2724  ;;  %v1576_v14 = vsel %vm1573_vm2, %v1575_v60, %v1571_v11  ;;  %v1206_v16 = vand.u32 2147483648, %v3665_v41  ;;  %2734 = vrcp.f32 %v3674_v4  ;;  %v602_v17 = vmul.f32 %v3451_v52, %v463_v8 }
 0x13e   : > { %v2727_v63 = vpop.eup %2726  ;;  %2510 = vst.msk [vmem:[%s3085_s17 + $0x140] sm:$0xff] %vm1923_vm3, %v1576_v14  ;;  %v3682_v12 = vadd.f32 1.0, %v2725_v55  ;;  %2736 = vpow2.f32 %v2448_v5  ;;  %vm1200_vm4 = vweird.f32 %v3665_v41  ;;  %v1812_v25 = vand.u32 2147483647, %v3674_v4 }
 0x13f   : > { %v3685_v19 = vadd.f32 1.0, %v2727_v63  ;;  %v1814_v6 = vand.u32 2147483648, %v3674_v4  ;;  %vm3692_vm5 = vcmp.eq.f32.partialorder %v1204_v7, 8.507059e+37  ;;  %v1207_v23 = vor.u32 1.1754944e-38, %v1206_v16  ;;  %v425_v63 = vpop.f32.mrf.mxu0 }
 0x140   : > { %v2729_v22 = vpop.eup %2728  ;;  %2738 = vrcp.f32 %v3682_v12  ;;  %v3696_v18 = vmul.f32 -1.442695, %v685_v13  ;;  %vm1808_vm6 = vweird.f32 %v3674_v4  ;;  %v981_v30 = vand.u32 2147483648, %v3682_v12 }
 0x141   : > { %v2731_v0 = vpop.eup %2730  ;;  %v1196_v27 = vmul.f32 %v2729_v22, %v3665_v41  ;;  %2740 = vrcp.f32 %v3685_v19  ;;  %v3702_v31 = vadd.f32 %v3433_v24, %v602_v17  ;;  %v979_v34 = vand.u32 2147483647, %v3682_v12 }
 0x142   : > { %v2733_v28 = vpop.eup %2732  ;;  %v3705_v29 = vadd.f32 1.0, %v2731_v0  ;;  %v3708_v35 = vmul.f32 %v3451_v52, %v556_v15  ;;  %vm1201_vm7 = vweird.f32 %v2729_v22  ;;  %vm3711_vm9 = vcmp.eq.f32.partialorder %v1812_v25, 8.507059e+37 }
 0x143   : > { %v2735_v20 = vpop.eup %2734  ;;  %v1197_v10 = vsub.f32 1.0, %v1196_v27  ;;  %v1815_v38 = vor.u32 1.1754944e-38, %v1814_v6  ;;  %v1587_v40 = vand.u32 2147483647, %v3685_v19  ;;  %v1589_v42 = vand.u32 2147483648, %v3685_v19  ;;  %vm1202_vm13 = vmor %vm1200_vm4, %vm1201_vm7 }
 0x144   : > { %v1804_v36 = vmul.f32 %v2735_v20, %v3674_v4  ;;  %v2737_v39 = vpop.eup %2736  ;;  %2742 = vrcp.f32 %v3705_v29  ;;  %vm975_vm8 = vweird.f32 %v3682_v12  ;;  %v982_v46 = vor.u32 1.1754944e-38, %v981_v30  ;;  %v518_v30 = vpop.f32.mrf.mxu1 }
 0x145   : > { %v1198_v32 = vmul.f32 %v2729_v22, %v1197_v10  ;;  %v3719_v26 = vadd.f32 1.0, %v2733_v28  ;;  %vm1809_vm10 = vweird.f32 %v2735_v20  ;;  %vm3722_vm11 = vcmp.eq.f32.partialorder %v979_v34, 8.507059e+37 }
 0x146   : > { %v2739_v43 = vpop.eup %2738  ;;  %v1805_v45 = vsub.f32 1.0, %v1804_v36  ;;  %vm1583_vm12 = vweird.f32 %v3685_v19  ;;  %v3727_v51 = vadd.f32 1.0, %v2737_v39  ;;  %v1219_v56 = vand.u32 2147483647, %v3705_v29  ;;  %vm1810_vm0 = vmor %vm1808_vm6, %vm1809_vm10 }
 0x147   : > { %v1199_v48 = vadd.f32 %v2729_v22, %v1198_v32  ;;  %v971_v33 = vmul.f32 %v2739_v43, %v3682_v12  ;;  %v2741_v53 = vpop.eup %2740  ;;  %v1221_v47 = vand.u32 2147483648, %v3705_v29  ;;  %2744 = vrcp.f32 %v3719_v26 }
 0x148   : > { %v1806_v54 = vmul.f32 %v2735_v20, %v1805_v45  ;;  %v1579_v49 = vmul.f32 %v2741_v53, %v3685_v19  ;;  %vm3736_vm14 = vcmp.eq.f32.partialorder %v1587_v40, 8.507059e+37  ;;  %v1590_v50 = vor.u32 1.1754944e-38, %v1589_v42 }
 0x149   : > { %v1203_v57 = vsel %vm1202_vm13, %v2729_v22, %v1199_v48  ;;  %v972_v58 = vsub.f32 1.0, %v971_v33  ;;  %vm1215_vm15 = vweird.f32 %v3705_v29  ;;  %v1829_v62 = vand.u32 2147483648, %v3719_v26 }
 0x14a   : > { %v1208_v41 = vsel %vm3692_vm5, %v1207_v23, %v1203_v57  ;;  %v1807_v44 = vadd.f32 %v2735_v20, %v1806_v54  ;;  %v2743_v2 = vpop.eup %2742  ;;  %vm976_vm1 = vweird.f32 %v2739_v43  ;;  %v1580_v3 = vsub.f32 1.0, %v1579_v49  ;;  %v428_v57 = vpop.f32.mrf.mxu0 }
 0x14b   : > { %1948 = vst.msk [vmem:[%s3085_s17 + $0xc0] sm:$0xff] %vm1923_vm3, %v1208_v41  ;;  %v973_v61 = vmul.f32 %v2739_v43, %v972_v58  ;;  %2746 = vrcp.f32 %v3727_v51  ;;  %vm1584_vm2 = vweird.f32 %v2741_v53  ;;  %v1211_v60 = vmul.f32 %v2743_v2, %v3705_v29  ;;  %vm977_vm6 = vmor %vm975_vm8, %vm976_vm1 }
 0x14c   : > { %v1811_v1 = vsel %vm1810_vm0, %v2735_v20, %v1807_v44  ;;  %vm3751_vm4 = vcmp.eq.f32.partialorder %v1219_v56, 8.507059e+37  ;;  %v1222_v11 = vor.u32 1.1754944e-38, %v1221_v47  ;;  %v1581_v13 = vmul.f32 %v2741_v53, %v1580_v3  ;;  %v465_v20 = vpop.f32.mrf.mxu2 }
 0x14d   : > { %v1816_v5 = vsel %vm3711_vm9, %v1815_v38, %v1811_v1  ;;  %v974_v4 = vadd.f32 %v2739_v43, %v973_v61  ;;  %vm1823_vm5 = vweird.f32 %v3719_v26  ;;  %v1827_v55 = vand.u32 2147483647, %v3719_v26  ;;  %v2745_v14 = vpop.eup %2744  ;;  %vm1585_vm9 = vmor %vm1583_vm12, %vm1584_vm2 }
 0x14e   : > { %2526 = vst.msk [vmem:[%s3085_s17 + $0x1c0] sm:$0xff] %vm1923_vm3, %v1816_v5  ;;  %v1212_v7 = vsub.f32 1.0, %v1211_v60  ;;  %vm1216_vm7 = vweird.f32 %v2743_v2  ;;  %v1830_v16 = vor.u32 1.1754944e-38, %v1829_v62  ;;  %vm990_vm10 = vweird.f32 %v3727_v51 }
 0x14f   : > { %2748 = vpow2.f32 %v3696_v18  ;;  %v978_v17 = vsel %vm977_vm6, %v2739_v43, %v974_v4  ;;  %v1582_v22 = vadd.f32 %v2741_v53, %v1581_v13  ;;  %v1819_v25 = vmul.f32 %v2745_v14, %v3719_v26  ;;  %vm1217_vm12 = vmor %vm1215_vm15, %vm1216_vm7 }
 0x150   : > { %v994_v6 = vand.u32 2147483647, %v3727_v51  ;;  %v983_v15 = vsel %vm3722_vm11, %v982_v46, %v978_v17  ;;  %v1213_v12 = vmul.f32 %v2743_v2, %v1212_v7  ;;  %vm1824_vm8 = vweird.f32 %v2745_v14 }
 0x151   : > { %v996_v0 = vand.u32 2147483648, %v3727_v51  ;;  %v2747_v27 = vpop.eup %2746  ;;  %1933 = vst.msk [vmem:[%s3085_s17 + $0x48] sm:$0xff] %vm1923_vm3, %v983_v15  ;;  %v1586_v9 = vsel %vm1585_vm9, %v2741_v53, %v1582_v22  ;;  %v1820_v23 = vsub.f32 1.0, %v1819_v25  ;;  %v2464_v18 = vmul.f32 -1.442695, %v3702_v31  ;;  %vm1825_vm13 = vmor %vm1823_vm5, %vm1824_vm8 }
 0x152   : > { %v701_v28 = vadd.f32 %v3433_v24, %v3708_v35  ;;  %v1591_v19 = vsel %vm3736_vm14, %v1590_v50, %v1586_v9  ;;  %v1214_v10 = vadd.f32 %v2743_v2, %v1213_v12  ;;  %v986_v34 = vmul.f32 %v2747_v27, %v3727_v51 }
 0x153   : > { %vm991_vm11 = vweird.f32 %v2747_v27  ;;  %2511 = vst.msk [vmem:[%s3085_s17 + $0x148] sm:$0xff] %vm1923_vm3, %v1591_v19  ;;  %v1821_v31 = vmul.f32 %v2745_v14, %v1820_v23  ;;  %2750 = vpow2.f32 %v2464_v18  ;;  %v587_v35 = vmul.f32 %v3451_v52, %v425_v63 }
 0x154   : > { %v2496_v36 = vmul.f32 -1.442695, %v701_v28  ;;  %v1218_v38 = vsel %vm1217_vm12, %v2743_v2, %v1214_v10  ;;  %v987_v39 = vsub.f32 1.0, %v986_v34  ;;  %v654_v32 = vmul.f32 %v3451_v52, %v518_v30  ;;  %vm992_vm0 = vmor %vm990_vm10, %vm991_vm11  ;;  %v468_v9 = vpop.f32.mrf.mxu2 }
 0x155   : > { %v2749_v37 = vpop.eup %2748  ;;  %v603_v40 = vmul.f32 %v3451_v52, %v465_v20  ;;  %v1223_v42 = vsel %vm3751_vm4, %v1222_v11, %v1218_v38  ;;  %v1822_v43 = vadd.f32 %v2745_v14, %v1821_v31  ;;  %v622_v46 = vadd.f32 %v3433_v24, %v587_v35 }
 0x156   : > { %v3792_v45 = vadd.f32 1.0, %v2749_v37  ;;  %2752 = vpow2.f32 %v2496_v36  ;;  %1949 = vst.msk [vmem:[%s3085_s17 + $0xc8] sm:$0xff] %vm1923_vm3, %v1223_v42  ;;  %v988_v29 = vmul.f32 %v2747_v27, %v987_v39  ;;  %v686_v48 = vadd.f32 %v3433_v24, %v654_v32 }
 0x157   : > { %v638_v33 = vadd.f32 %v3433_v24, %v603_v40  ;;  %v1826_v53 = vsel %vm1825_vm13, %v2745_v14, %v1822_v43  ;;  %vm1828_vm14 = vcmp.eq.f32.partialorder %v1827_v55, 8.507059e+37  ;;  %vm995_vm15 = vcmp.eq.f32.partialorder %v994_v6, 8.507059e+37  ;;  %v521_v6 = vpop.f32.mrf.mxu1 }
 0x158   : > { %2754 = vrcp.f32 %v3792_v45  ;;  %v1831_v54 = vsel %vm1828_vm14, %v1830_v16, %v1826_v53  ;;  %v989_v56 = vadd.f32 %v2747_v27, %v988_v29  ;;  %v2449_v47 = vmul.f32 -1.442695, %v622_v46 }
 0x159   : > { %v2751_v26 = vpop.eup %2750  ;;  %2527 = vst.msk [vmem:[%s3085_s17 + $0x1c8] sm:$0xff] %vm1923_vm3, %v1831_v54  ;;  %v997_v58 = vor.u32 1.1754944e-38, %v996_v0  ;;  %v1602_v49 = vand.u32 2147483647, %v3792_v45  ;;  %v2481_v59 = vmul.f32 -1.442695, %v686_v48  ;;  %v670_v50 = vmul.f32 %v3451_v52, %v558_v21 }
 0x15a   : > { %v993_v41 = vsel %vm992_vm0, %v2747_v27, %v989_v56  ;;  %v3810_v44 = vadd.f32 1.0, %v2751_v26  ;;  %2756 = vpow2.f32 %v2449_v47  ;;  %v2465_v62 = vmul.f32 -1.442695, %v638_v33  ;;  %v3868_v48 = vld [vmem:[%s4310_s4] ss:$0 sm:$0xff] }
 0x15b   : > { %v998_v61 = vsel %vm995_vm15, %v997_v58, %v993_v41  ;;  %2758 = vpow2.f32 %v2481_v59  ;;  %v702_v3 = vadd.f32 %v3433_v24, %v670_v50  ;;  %v588_v1 = vmul.f32 %v3451_v52, %v428_v57 }
 0x15c   : > { %v2753_v2 = vpop.eup %2752  ;;  %1934 = vst.msk [vmem:[%s3085_s17 + $0x50] sm:$0xff] %vm1923_vm3, %v998_v61  ;;  %2760 = vrcp.f32 %v3810_v44  ;;  %v1604_v60 = vand.u32 2147483648, %v3792_v45  ;;  %vm1598_vm1 = vweird.f32 %v3792_v45  ;;  %vm3823_vm2 = vcmp.eq.f32.partialorder %v1602_v49, 8.507059e+37 }
 0x15d   : > { %v3818_v8 = vadd.f32 1.0, %v2753_v2  ;;  %v2497_v11 = vmul.f32 -1.442695, %v702_v3  ;;  %v623_v5 = vadd.f32 %v3433_v24, %v588_v1  ;;  %2762 = vpow2.f32 %v2465_v62 }
 0x15e   : > { %v2755_v51 = vpop.eup %2754  ;;  %v1234_v55 = vand.u32 2147483647, %v3810_v44  ;;  %v1236_v16 = vand.u32 2147483648, %v3810_v44  ;;  %v1605_v17 = vor.u32 1.1754944e-38, %v1604_v60  ;;  %vm1230_vm5 = vweird.f32 %v3810_v44 }
 0x15f   : > { %v1594_v4 = vmul.f32 %v2755_v51, %v3792_v45  ;;  %2764 = vrcp.f32 %v3818_v8  ;;  %v2450_v63 = vmul.f32 -1.442695, %v623_v5  ;;  %vm1599_vm4 = vweird.f32 %v2755_v51 }
 0x160   : > { %v2757_v14 = vpop.eup %2756  ;;  %2766 = vpow2.f32 %v2497_v11  ;;  %v1844_v22 = vand.u32 2147483648, %v3818_v8  ;;  %v1842_v0 = vand.u32 2147483647, %v3818_v8  ;;  %vm3838_vm6 = vcmp.eq.f32.partialorder %v1234_v55, 8.507059e+37  ;;  %vm1600_vm7 = vmor %vm1598_vm1, %vm1599_vm4 }
 0x161   : > { %v1595_v7 = vsub.f32 1.0, %v1594_v4  ;;  %v2759_v24 = vpop.eup %2758  ;;  %v3831_v25 = vadd.f32 1.0, %v2757_v14  ;;  %2768 = vpow2.f32 %v2450_v63  ;;  %v1237_v20 = vor.u32 1.1754944e-38, %v1236_v16  ;;  %v561_v63 = vpop.f32.mrf.mxu3 }
 0x162   : > { %v2761_v15 = vpop.eup %2760  ;;  %v3834_v27 = vadd.f32 1.0, %v2759_v24  ;;  %v655_v19 = vmul.f32 %v3451_v52, %v521_v6  ;;  %vm1838_vm10 = vweird.f32 %v3818_v8  ;;  %v1845_v31 = vor.u32 1.1754944e-38, %v1844_v22 }
 0x163   : > { %v1596_v12 = vmul.f32 %v2755_v51, %v1595_v7  ;;  %v1226_v23 = vmul.f32 %v2761_v15, %v3810_v44  ;;  %2770 = vrcp.f32 %v3831_v25  ;;  %v2763_v28 = vpop.eup %2762  ;;  %v604_v36 = vmul.f32 %v3451_v52, %v468_v9 }
 0x164   : > { %2772 = vrcp.f32 %v3834_v27  ;;  %vm1231_vm9 = vweird.f32 %v2761_v15  ;;  %vm3851_vm8 = vcmp.eq.f32.partialorder %v1842_v0, 8.507059e+37  ;;  %v1009_v32 = vand.u32 2147483647, %v3831_v25 }
 0x165   : > { %v1597_v30 = vadd.f32 %v2755_v51, %v1596_v12  ;;  %v2765_v10 = vpop.eup %2764  ;;  %v1227_v34 = vsub.f32 1.0, %v1226_v23  ;;  %v1011_v43 = vand.u32 2147483648, %v3831_v25  ;;  %v1617_v45 = vand.u32 2147483647, %v3834_v27  ;;  %vm1232_vm14 = vmor %vm1230_vm5, %vm1231_vm9 }
 0x166   : > { %v2767_v35 = vpop.eup %2766  ;;  %v1834_v38 = vmul.f32 %v2765_v10, %v3818_v8  ;;  %vm1005_vm11 = vweird.f32 %v3831_v25  ;;  %v3863_v46 = vadd.f32 1.0, %v2763_v28  ;;  %v687_v33 = vadd.f32 %v3868_v48, %v655_v19  ;;  %v430_v28 = vpop.f32.mrf.mxu0 }
 0x167   : > { %v1601_v37 = vsel %vm1600_vm7, %v2755_v51, %v1597_v30  ;;  %v1228_v42 = vmul.f32 %v2761_v15, %v1227_v34  ;;  %v2769_v52 = vpop.eup %2768  ;;  %vm1839_vm12 = vweird.f32 %v2765_v10  ;;  %vm1613_vm13 = vweird.f32 %v3834_v27  ;;  %v523_v30 = vpop.f32.mrf.mxu1 }
 0x168   : > { %v1606_v40 = vsel %vm3823_vm2, %v1605_v17, %v1601_v37  ;;  %v1835_v29 = vsub.f32 1.0, %v1834_v38  ;;  %v1619_v54 = vand.u32 2147483648, %v3834_v27  ;;  %v3873_v56 = vadd.f32 1.0, %v2767_v35  ;;  %vm1840_vm1 = vmor %vm1838_vm10, %vm1839_vm12 }
 0x169   : > { %2512 = vst.msk [vmem:[%s3085_s17 + $0x150] sm:$0xff] %vm1923_vm3, %v1606_v40  ;;  %v2771_v21 = vpop.eup %2770  ;;  %v1229_v53 = vadd.f32 %v2761_v15, %v1228_v42  ;;  %vm3879_vm15 = vcmp.eq.f32.partialorder %v1009_v32, 8.507059e+37  ;;  %2774 = vrcp.f32 %v3863_v46  ;;  %v1012_v59 = vor.u32 1.1754944e-38, %v1011_v43 }
 0x16a   : > { %v2773_v47 = vpop.eup %2772  ;;  %v1836_v57 = vmul.f32 %v2765_v10, %v1835_v29  ;;  %v1001_v26 = vmul.f32 %v2771_v21, %v3831_v25  ;;  %vm3885_vm0 = vcmp.eq.f32.partialorder %v1617_v45, 8.507059e+37  ;;  %v3891_v61 = vadd.f32 1.0, %v2769_v52 }
 0x16b   : > { %v1233_v49 = vsel %vm1232_vm14, %v2761_v15, %v1229_v53  ;;  %v1609_v50 = vmul.f32 %v2773_v47, %v3834_v27  ;;  %v1249_v1 = vand.u32 2147483647, %v3863_v46  ;;  %2776 = vrcp.f32 %v3873_v56 }
 0x16c   : > { %v1238_v44 = vsel %vm3838_vm6, %v1237_v20, %v1233_v49  ;;  %v1837_v62 = vadd.f32 %v2765_v10, %v1836_v57  ;;  %v1002_v2 = vsub.f32 1.0, %v1001_v26  ;;  %v2482_v51 = vmul.f32 -1.442695, %v687_v33 }
 0x16d   : > { %1950 = vst.msk [vmem:[%s3085_s17 + $0xd0] sm:$0xff] %vm1923_vm3, %v1238_v44  ;;  %v1610_v3 = vsub.f32 1.0, %v1609_v50  ;;  %vm1006_vm2 = vweird.f32 %v2771_v21  ;;  %v1251_v5 = vand.u32 2147483648, %v3863_v46  ;;  %vm1614_vm4 = vweird.f32 %v2773_v47 }
 0x16e   : > { %v1841_v60 = vsel %vm1840_vm1, %v2765_v10, %v1837_v62  ;;  %v1003_v11 = vmul.f32 %v2771_v21, %v1002_v2  ;;  %v639_v55 = vadd.f32 %v3868_v48, %v604_v36  ;;  %v1620_v7 = vor.u32 1.1754944e-38, %v1619_v54  ;;  %vm1007_vm5 = vmor %vm1005_vm11, %vm1006_vm2  ;;  %v470_v10 = vpop.f32.mrf.mxu2  ;;  %v3935_v36 = vld [vmem:[%s4309_s3] ss:$0 sm:$0xff] }
 0x16f   : > { %v1846_v4 = vsel %vm3851_vm8, %v1845_v31, %v1841_v60  ;;  %v1611_v13 = vmul.f32 %v2773_v47, %v1610_v3  ;;  %v2775_v8 = vpop.eup %2774  ;;  %v1859_v16 = vand.u32 2147483648, %v3873_v56  ;;  %2778 = vrcp.f32 %v3891_v61  ;;  %vm1615_vm10 = vmor %vm1613_vm13, %vm1614_vm4 }
 0x170   : > { %2528 = vst.msk [vmem:[%s3085_s17 + $0x1d0] sm:$0xff] %vm1923_vm3, %v1846_v4  ;;  %v1004_v14 = vadd.f32 %v2771_v21, %v1003_v11  ;;  %v1241_v17 = vmul.f32 %v2775_v8, %v3863_v46  ;;  %vm1245_vm6 = vweird.f32 %v3863_v46  ;;  %vm3912_vm7 = vcmp.eq.f32.partialorder %v1249_v1, 8.507059e+37  ;;  %v563_v46 = vpop.f32.mrf.mxu3 }
 0x171   : > { %v1612_v24 = vadd.f32 %v2773_v47, %v1611_v13  ;;  %v1252_v15 = vor.u32 1.1754944e-38, %v1251_v5  ;;  %vm1853_vm9 = vweird.f32 %v3873_v56  ;;  %v1857_v25 = vand.u32 2147483647, %v3873_v56  ;;  %v2777_v12 = vpop.eup %2776  ;;  %v433_v13 = vpop.f32.mrf.mxu0 }
 0x172   : > { %v1008_v6 = vsel %vm1007_vm5, %v2771_v21, %v1004_v14  ;;  %2780 = vpow2.f32 %v2482_v51  ;;  %v1242_v23 = vsub.f32 1.0, %v1241_v17  ;;  %vm1020_vm8 = vweird.f32 %v3891_v61  ;;  %v526_v14 = vpop.f32.mrf.mxu1 }
 0x173   : > { %v1013_v0 = vsel %vm3879_vm15, %v1012_v59, %v1008_v6  ;;  %v1616_v9 = vsel %vm1615_vm10, %v2773_v47, %v1612_v24  ;;  %v2466_v18 = vmul.f32 -1.442695, %v639_v55  ;;  %vm1246_vm11 = vweird.f32 %v2775_v8 }
 0x174   : > { %1935 = vst.msk [vmem:[%s3085_s17 + $0x58] sm:$0xff] %vm1923_vm3, %v1013_v0  ;;  %v1621_v27 = vsel %vm3885_vm0, %v1620_v7, %v1616_v9  ;;  %v1849_v20 = vmul.f32 %v2777_v12, %v3873_v56  ;;  %v1860_v19 = vor.u32 1.1754944e-38, %v1859_v16  ;;  %v1243_v34 = vmul.f32 %v2775_v8, %v1242_v23  ;;  %vm1247_vm12 = vmor %vm1245_vm6, %vm1246_vm11 }
 0x175   : > { %2513 = vst.msk [vmem:[%s3085_s17 + $0x158] sm:$0xff] %vm1923_vm3, %v1621_v27  ;;  %v1024_v31 = vand.u32 2147483647, %v3891_v61  ;;  %2782 = vpow2.f32 %v2466_v18  ;;  %v671_v35 = vmul.f32 %v3935_v36, %v561_v63  ;;  %v2779_v37 = vpop.eup %2778  ;;  %v1026_v39 = vand.u32 2147483648, %v3891_v61 }
 0x176   : > { %v1850_v38 = vsub.f32 1.0, %v1849_v20  ;;  %v589_v32 = vmul.f32 %v3935_v36, %v430_v28  ;;  %v656_v40 = vmul.f32 %v3935_v36, %v523_v30  ;;  %v1244_v42 = vadd.f32 %v2775_v8, %v1243_v34  ;;  %v473_v7 = vpop.f32.mrf.mxu2 }
 0x177   : > { %v1016_v43 = vmul.f32 %v2779_v37, %v3891_v61  ;;  %v703_v45 = vadd.f32 %v3868_v48, %v671_v35  ;;  %v605_v52 = vmul.f32 %v3935_v36, %v470_v10  ;;  %vm1854_vm13 = vweird.f32 %v2777_v12 }
 0x178   : > { %v2781_v29 = vpop.eup %2780  ;;  %v1851_v33 = vmul.f32 %v2777_v12, %v1850_v38  ;;  %v624_v21 = vadd.f32 %v3868_v48, %v589_v32  ;;  %v688_v53 = vadd.f32 %v3868_v48, %v656_v40  ;;  %v1248_v54 = vsel %vm1247_vm12, %v2775_v8, %v1244_v42  ;;  %vm1855_vm15 = vmor %vm1853_vm9, %vm1854_vm13  ;;  %v566_v27 = vpop.f32.mrf.mxu3 }
 0x179   : > { %v1017_v47 = vsub.f32 1.0, %v1016_v43  ;;  %v3949_v57 = vadd.f32 1.0, %v2781_v29  ;;  %v2498_v26 = vmul.f32 -1.442695, %v703_v45  ;;  %v1253_v58 = vsel %vm3912_vm7, %v1252_v15, %v1248_v54 }
 0x17a   : > { %v1852_v49 = vadd.f32 %v2777_v12, %v1851_v33  ;;  %vm1021_vm14 = vweird.f32 %v2779_v37  ;;  %v2451_v59 = vmul.f32 -1.442695, %v624_v21  ;;  %1951 = vst.msk [vmem:[%s3085_s17 + $0xd8] sm:$0xff] %vm1923_vm3, %v1253_v58  ;;  %v2483_v44 = vmul.f32 -1.442695, %v688_v53 }
 0x17b   : > { %v2783_v50 = vpop.eup %2782  ;;  %v1018_v41 = vmul.f32 %v2779_v37, %v1017_v47  ;;  %2784 = vrcp.f32 %v3949_v57  ;;  %v640_v62 = vadd.f32 %v3868_v48, %v605_v52  ;;  %vm1858_vm0 = vcmp.eq.f32.partialorder %v1857_v25, 8.507059e+37  ;;  %vm1022_vm1 = vmor %vm1020_vm8, %vm1021_vm14 }
 0x17c   : > { %v1856_v2 = vsel %vm1855_vm15, %v2777_v12, %v1852_v49  ;;  %v3959_v3 = vadd.f32 1.0, %v2783_v50  ;;  %2786 = vpow2.f32 %v2498_v26  ;;  %vm1025_vm2 = vcmp.eq.f32.partialorder %v1024_v31, 8.507059e+37 }
 0x17d   : > { %v1861_v1 = vsel %vm1858_vm0, %v1860_v19, %v1856_v2  ;;  %v1019_v51 = vadd.f32 %v2779_v37, %v1018_v41  ;;  %2788 = vpow2.f32 %v2451_v59  ;;  %v1027_v56 = vor.u32 1.1754944e-38, %v1026_v39 }
 0x17e   : > { %2529 = vst.msk [vmem:[%s3085_s17 + $0x1d8] sm:$0xff] %vm1923_vm3, %v1861_v1  ;;  %v1632_v60 = vand.u32 2147483647, %v3949_v57  ;;  %2790 = vrcp.f32 %v3959_v3  ;;  %v1634_v5 = vand.u32 2147483648, %v3949_v57  ;;  %v2467_v4 = vmul.f32 -1.442695, %v640_v62 }
 0x17f   : > { %v1023_v11 = vsel %vm1022_vm1, %v2779_v37, %v1019_v51  ;;  %2792 = vpow2.f32 %v2483_v44  ;;  %v672_v8 = vmul.f32 %v3935_v36, %v563_v46  ;;  %v1264_v16 = vand.u32 2147483647, %v3959_v3 }
 0x180   : > { %v1028_v55 = vsel %vm1025_vm2, %v1027_v56, %v1023_v11  ;;  %v1266_v63 = vand.u32 2147483648, %v3959_v3  ;;  %2794 = vpow2.f32 %v2467_v4  ;;  %vm1628_vm4 = vweird.f32 %v3949_v57 }
 0x181   : > { %v2785_v61 = vpop.eup %2784  ;;  %1936 = vst.msk [vmem:[%s3085_s17 + $0x60] sm:$0xff] %vm1923_vm3, %v1028_v55  ;;  %vm3976_vm5 = vcmp.eq.f32.partialorder %v1632_v60, 8.507059e+37  ;;  %v590_v6 = vmul.f32 %v3935_v36, %v433_v13  ;;  %v1635_v25 = vor.u32 1.1754944e-38, %v1634_v5  ;;  %v657_v0 = vmul.f32 %v3935_v36, %v526_v14 }
 0x182   : > { %v2787_v24 = vpop.eup %2786  ;;  %v1624_v17 = vmul.f32 %v2785_v61, %v3949_v57  ;;  %v606_v9 = vmul.f32 %v3935_v36, %v473_v7  ;;  %vm1260_vm6 = vweird.f32 %v3959_v3  ;;  %v704_v30 = vadd.f32 %v3868_v48, %v672_v8 }
 0x183   : > { %v2789_v15 = vpop.eup %2788  ;;  %v3981_v12 = vadd.f32 1.0, %v2787_v24  ;;  %vm3990_vm7 = vcmp.eq.f32.partialorder %v1264_v16, 8.507059e+37  ;;  %v1267_v34 = vor.u32 1.1754944e-38, %v1266_v63  ;;  %vm1629_vm10 = vweird.f32 %v2785_v61  ;;  %v435_v63 = vpop.f32.mrf.mxu0 }
 0x184   : > { %v2791_v23 = vpop.eup %2790  ;;  %v1625_v18 = vsub.f32 1.0, %v1624_v17  ;;  %v3986_v28 = vadd.f32 1.0, %v2789_v15  ;;  %v625_v35 = vadd.f32 %v3868_v48, %v590_v6  ;;  %v689_v39 = vadd.f32 %v3868_v48, %v657_v0  ;;  %vm1630_vm9 = vmor %vm1628_vm4, %vm1629_vm10 }
 0x185   : > { %v2793_v20 = vpop.eup %2792  ;;  %v1256_v19 = vmul.f32 %v2791_v23, %v3959_v3  ;;  %2796 = vrcp.f32 %v3981_v12  ;;  %v641_v32 = vadd.f32 %v3868_v48, %v606_v9  ;;  %v673_v40 = vmul.f32 %v3935_v36, %v566_v27 }
 0x186   : > { %v1626_v31 = vmul.f32 %v2785_v61, %v1625_v18  ;;  %2798 = vrcp.f32 %v3986_v28  ;;  %v2795_v37 = vpop.eup %2794  ;;  %v1872_v43 = vand.u32 2147483647, %v3981_v12  ;;  %v4001_v45 = vadd.f32 1.0, %v2793_v20 }
 0x187   : > { %v1257_v38 = vsub.f32 1.0, %v1256_v19  ;;  %v2499_v52 = vmul.f32 -1.442695, %v704_v30  ;;  %vm1261_vm8 = vweird.f32 %v2791_v23  ;;  %v1874_v33 = vand.u32 2147483648, %v3981_v12 }
 0x188   : > { %v1627_v42 = vadd.f32 %v2785_v61, %v1626_v31  ;;  %v4006_v21 = vadd.f32 1.0, %v2795_v37  ;;  %v1039_v54 = vand.u32 2147483647, %v3986_v28  ;;  %v1041_v47 = vand.u32 2147483648, %v3986_v28  ;;  %vm1262_vm11 = vmor %vm1260_vm6, %vm1261_vm8  ;;  %v528_v37 = vpop.f32.mrf.mxu1 }
 0x189   : > { %v1258_v29 = vmul.f32 %v2791_v23, %v1257_v38  ;;  %2800 = vrcp.f32 %v4001_v45  ;;  %v2452_v49 = vmul.f32 -1.442695, %v625_v35  ;;  %vm1868_vm12 = vweird.f32 %v3981_v12  ;;  %v475_v38 = vpop.f32.mrf.mxu2 }
 0x18a   : > { %v1631_v53 = vsel %vm1630_vm9, %v2785_v61, %v1627_v42  ;;  %2802 = vrcp.f32 %v4006_v21  ;;  %vm4020_vm13 = vcmp.eq.f32.partialorder %v1872_v43, 8.507059e+37  ;;  %vm1035_vm14 = vweird.f32 %v3986_v28 }
 0x18b   : > { %v2797_v26 = vpop.eup %2796  ;;  %v1636_v58 = vsel %vm3976_vm5, %v1635_v25, %v1631_v53  ;;  %v1259_v57 = vadd.f32 %v2791_v23, %v1258_v29  ;;  %v1875_v44 = vor.u32 1.1754944e-38, %v1874_v33  ;;  %v1647_v2 = vand.u32 2147483647, %v4001_v45 }
 0x18c   : > { %v2799_v59 = vpop.eup %2798  ;;  %2514 = vst.msk [vmem:[%s3085_s17 + $0x160] sm:$0xff] %vm1923_vm3, %v1636_v58  ;;  %v1864_v46 = vmul.f32 %v2797_v26, %v3981_v12  ;;  %vm4029_vm15 = vcmp.eq.f32.partialorder %v1039_v54, 8.507059e+37  ;;  %v1042_v56 = vor.u32 1.1754944e-38, %v1041_v47  ;;  %vm1643_vm0 = vweird.f32 %v4001_v45 }
 0x18d   : > { %v1263_v41 = vsel %vm1262_vm11, %v2791_v23, %v1259_v57  ;;  %v1031_v62 = vmul.f32 %v2799_v59, %v3986_v28  ;;  %2804 = vpow2.f32 %v2499_v52  ;;  %v2484_v11 = vmul.f32 -1.442695, %v689_v39 }
 0x18e   : > { %v1268_v3 = vsel %vm3990_vm7, %v1267_v34, %v1263_v41  ;;  %v1865_v1 = vsub.f32 1.0, %v1864_v46  ;;  %v2468_v5 = vmul.f32 -1.442695, %v641_v32  ;;  %vm1869_vm1 = vweird.f32 %v2797_v26 }
 0x18f   : > { %1952 = vst.msk [vmem:[%s3085_s17 + $0xe0] sm:$0xff] %vm1923_vm3, %v1268_v3  ;;  %v1032_v60 = vsub.f32 1.0, %v1031_v62  ;;  %v2801_v4 = vpop.eup %2800  ;;  %v1649_v55 = vand.u32 2147483648, %v4001_v45  ;;  %2806 = vpow2.f32 %v2452_v49  ;;  %vm1036_vm2 = vweird.f32 %v2799_v59  ;;  %vm1870_vm5 = vmor %vm1868_vm12, %vm1869_vm1 }
 0x190   : > { %v1866_v13 = vmul.f32 %v2797_v26, %v1865_v1  ;;  %v2803_v8 = vpop.eup %2802  ;;  %v1639_v7 = vmul.f32 %v2801_v4, %v4001_v45  ;;  %vm4038_vm4 = vcmp.eq.f32.partialorder %v1647_v2, 8.507059e+37  ;;  %v1279_v16 = vand.u32 2147483647, %v4006_v21  ;;  %vm1037_vm6 = vmor %vm1035_vm14, %vm1036_vm2 }
 0x191   : > { %v1033_v14 = vmul.f32 %v2799_v59, %v1032_v60  ;;  %v1271_v17 = vmul.f32 %v2803_v8, %v4006_v21  ;;  %v1281_v22 = vand.u32 2147483648, %v4006_v21  ;;  %2808 = vpow2.f32 %v2484_v11 }
 0x192   : > { %v1867_v24 = vadd.f32 %v2797_v26, %v1866_v13  ;;  %v1640_v15 = vsub.f32 1.0, %v1639_v7  ;;  %2810 = vpow2.f32 %v2468_v5  ;;  %v705_v25 = vadd.f32 %v3868_v48, %v673_v40  ;;  %v568_v5 = vpop.f32.mrf.mxu3 }
 0x193   : > { %v1034_v6 = vadd.f32 %v2799_v59, %v1033_v14  ;;  %vm1644_vm7 = vweird.f32 %v2801_v4  ;;  %v1272_v9 = vsub.f32 1.0, %v1271_v17  ;;  %v591_v23 = vmul.f32 %v3935_v36, %v435_v63  ;;  %v2805_v18 = vpop.eup %2804 }
 0x194   : > { %v1871_v0 = vsel %vm1870_vm5, %v2797_v26, %v1867_v24  ;;  %v1641_v27 = vmul.f32 %v2801_v4, %v1640_v15  ;;  %v2500_v20 = vmul.f32 -1.442695, %v705_v25  ;;  %vm1276_vm10 = vweird.f32 %v2803_v8  ;;  %vm1645_vm8 = vmor %vm1643_vm0, %vm1644_vm7 }
 0x195   : > { %v1876_v12 = vsel %vm4020_vm13, %v1875_v44, %v1871_v0  ;;  %v1038_v30 = vsel %vm1037_vm6, %v2799_v59, %v1034_v6  ;;  %v2807_v19 = vpop.eup %2806  ;;  %v1273_v28 = vmul.f32 %v2803_v8, %v1272_v9  ;;  %v4058_v34 = vadd.f32 1.0, %v2805_v18 }
 0x196   : > { %2530 = vst.msk [vmem:[%s3085_s17 + $0x1e0] sm:$0xff] %vm1923_vm3, %v1876_v12  ;;  %v1043_v10 = vsel %vm4029_vm15, %v1042_v56, %v1038_v30  ;;  %v1642_v31 = vadd.f32 %v2801_v4, %v1641_v27  ;;  %vm1275_vm9 = vweird.f32 %v4006_v21  ;;  %v4063_v35 = vadd.f32 1.0, %v2807_v19 }
 0x197   : > { %1937 = vst.msk [vmem:[%s3085_s17 + $0x68] sm:$0xff] %vm1923_vm3, %v1043_v10  ;;  %2812 = vpow2.f32 %v2500_v20  ;;  %v2809_v39 = vpop.eup %2808  ;;  %v1650_v32 = vor.u32 1.1754944e-38, %v1649_v55  ;;  %v1274_v40 = vadd.f32 %v2803_v8, %v1273_v28  ;;  %vm1280_vm11 = vcmp.eq.f32.partialorder %v1279_v16, 8.507059e+37  ;;  %vm1277_vm12 = vmor %vm1275_vm9, %vm1276_vm10 }
 0x198   : > { %2814 = vrcp.f32 %v4058_v34  ;;  %v2811_v42 = vpop.eup %2810  ;;  %v1646_v43 = vsel %vm1645_vm8, %v2801_v4, %v1642_v31  ;;  %v1282_v52 = vor.u32 1.1754944e-38, %v1281_v22  ;;  %v626_v29 = vadd.f32 %v3868_v48, %v591_v23 }
 0x199   : > { %2816 = vrcp.f32 %v4063_v35  ;;  %v1651_v45 = vsel %vm4038_vm4, %v1650_v32, %v1646_v43  ;;  %v1278_v33 = vsel %vm1277_vm12, %v2803_v8, %v1274_v40  ;;  %v658_v21 = vmul.f32 %v3935_v36, %v528_v37 }
 0x19a   : > { %v607_v53 = vmul.f32 %v3935_v36, %v475_v38  ;;  %2515 = vst.msk [vmem:[%s3085_s17 + $0x168] sm:$0xff] %vm1923_vm3, %v1651_v45  ;;  %v1283_v54 = vsel %vm1280_vm11, %v1282_v52, %v1278_v33  ;;  %v1887_v47 = vand.u32 2147483647, %v4058_v34  ;;  %v1889_v26 = vand.u32 2147483648, %v4058_v34 }
 0x19b   : > { %v4080_v58 = vadd.f32 1.0, %v2809_v39  ;;  %1953 = vst.msk [vmem:[%s3085_s17 + $0xe8] sm:$0xff] %vm1923_vm3, %v1283_v54  ;;  %v1054_v57 = vand.u32 2147483647, %v4063_v35  ;;  %v1056_v49 = vand.u32 2147483648, %v4063_v35  ;;  %v4086_v59 = vadd.f32 1.0, %v2811_v42 }
 0x19c   : > { %v2453_v50 = vmul.f32 -1.442695, %v626_v29  ;;  %vm1883_vm13 = vweird.f32 %v4058_v34  ;;  %vm1050_vm14 = vweird.f32 %v4063_v35  ;;  %v690_v44 = vadd.f32 %v3868_v48, %v658_v21 }
 0x19d   : > { %v2813_v46 = vpop.eup %2812  ;;  %2818 = vrcp.f32 %v4080_v58  ;;  %vm4094_vm15 = vcmp.eq.f32.partialorder %v1887_v47, 8.507059e+37  ;;  %v1890_v1 = vor.u32 1.1754944e-38, %v1889_v26  ;;  %v642_v51 = vadd.f32 %v3868_v48, %v607_v53 }
 0x19e   : > { %v2815_v41 = vpop.eup %2814  ;;  %2820 = vrcp.f32 %v4086_v59  ;;  %vm4100_vm0 = vcmp.eq.f32.partialorder %v1054_v57, 8.507059e+37  ;;  %v1057_v11 = vor.u32 1.1754944e-38, %v1056_v49  ;;  %vm1658_vm1 = vweird.f32 %v4080_v58 }
 0x19f   : > { %v2817_v62 = vpop.eup %2816  ;;  %v1879_v2 = vmul.f32 %v2815_v41, %v4058_v34  ;;  %v1662_v13 = vand.u32 2147483647, %v4080_v58  ;;  %v4106_v55 = vadd.f32 1.0, %v2813_v46  ;;  %2822 = vpow2.f32 %v2453_v50 }
 0x1a0   : > { %v1046_v56 = vmul.f32 %v2817_v62, %v4063_v35  ;;  %vm1884_vm2 = vweird.f32 %v2815_v41  ;;  %v1664_v14 = vand.u32 2147483648, %v4080_v58  ;;  %v2485_v7 = vmul.f32 -1.442695, %v690_v44 }
 0x1a1   : > { %v1880_v4 = vsub.f32 1.0, %v1879_v2  ;;  %2824 = vrcp.f32 %v4106_v55  ;;  %v2469_v63 = vmul.f32 -1.442695, %v642_v51  ;;  %v674_v24 = vmul.f32 %v3935_v36, %v568_v5  ;;  %vm1885_vm6 = vmor %vm1883_vm13, %vm1884_vm2 }
 0x1a2   : > { %v1047_v8 = vsub.f32 1.0, %v1046_v56  ;;  %vm1051_vm4 = vweird.f32 %v2817_v62  ;;  %vm1290_vm5 = vweird.f32 %v4086_v59  ;;  %v1294_v0 = vand.u32 2147483647, %v4086_v59 }
 0x1a3   : > { %v2819_v61 = vpop.eup %2818  ;;  %v1881_v16 = vmul.f32 %v2815_v41, %v1880_v4  ;;  %v1296_v9 = vand.u32 2147483648, %v4086_v59  ;;  %2826 = vpow2.f32 %v2485_v7  ;;  %vm1052_vm10 = vmor %vm1050_vm14, %vm1051_vm4  ;;  %v706_v27 = vadd.f32 %v3868_v48, %v674_v24 }
 0x1a4   : > { %v2821_v17 = vpop.eup %2820  ;;  %v1048_v22 = vmul.f32 %v2817_v62, %v1047_v8  ;;  %v1654_v6 = vmul.f32 %v2819_v61, %v4080_v58  ;;  %vm1659_vm7 = vweird.f32 %v2819_v61  ;;  %2828 = vpow2.f32 %v2469_v63 }
 0x1a5   : > { %v1882_v15 = vadd.f32 %v2815_v41, %v1881_v16  ;;  %v1286_v25 = vmul.f32 %v2821_v17, %v4086_v59  ;;  %v2823_v18 = vpop.eup %2822  ;;  %vm1291_vm9 = vweird.f32 %v2821_v17  ;;  %v2501_v35 = vmul.f32 -1.442695, %v706_v27  ;;  %vm1660_vm11 = vmor %vm1658_vm1, %vm1659_vm7 }
 0x1a6   : > { %v1049_v36 = vadd.f32 %v2817_v62, %v1048_v22  ;;  %v1655_v23 = vsub.f32 1.0, %v1654_v6  ;;  %v4124_v28 = vadd.f32 1.0, %v2823_v18  ;;  %vm1663_vm8 = vcmp.eq.f32.partialorder %v1662_v13, 8.507059e+37  ;;  %vm1292_vm13 = vmor %vm1290_vm5, %vm1291_vm9 }
 0x1a7   : > { %v1886_v12 = vsel %vm1885_vm6, %v2815_v41, %v1882_v15  ;;  %v1287_v30 = vsub.f32 1.0, %v1286_v25  ;;  %v2825_v34 = vpop.eup %2824  ;;  %v1665_v39 = vor.u32 1.1754944e-38, %v1664_v14  ;;  %vm1295_vm12 = vcmp.eq.f32.partialorder %v1294_v0, 8.507059e+37 }
 0x1a8   : > { %v1891_v20 = vsel %vm4094_vm15, %v1890_v1, %v1886_v12  ;;  %v1053_v19 = vsel %vm1052_vm10, %v2817_v62, %v1049_v36  ;;  %v1656_v10 = vmul.f32 %v2819_v61, %v1655_v23  ;;  %v1894_v48 = vmul.f32 %v2825_v34, %v4106_v55 }
 0x1a9   : > { %2531 = vst.msk [vmem:[%s3085_s17 + $0x1e8] sm:$0xff] %vm1923_vm3, %v1891_v20  ;;  %v1058_v31 = vsel %vm4100_vm0, %v1057_v11, %v1053_v19  ;;  %v1288_v37 = vmul.f32 %v2821_v17, %v1287_v30  ;;  %2830 = vrcp.f32 %v4124_v28  ;;  %v1297_v40 = vor.u32 1.1754944e-38, %v1296_v9  ;;  %v2827_v42 = vpop.eup %2826 }
 0x1aa   : > { %1938 = vst.msk [vmem:[%s3085_s17 + $0x70] sm:$0xff] %vm1923_vm3, %v1058_v31  ;;  %v1657_v38 = vadd.f32 %v2819_v61, %v1656_v10  ;;  %v1895_v52 = vsub.f32 1.0, %v1894_v48  ;;  %v1902_v29 = vand.u32 2147483647, %v4106_v55  ;;  %2832 = vpow2.f32 %v2501_v35  ;;  %v2829_v45 = vpop.eup %2828  ;;  %v2153_v35 = vld [vmem:[%s3085_s17] sm:$0xff] (%p2923_p4)  ;;  %v2157_v48 = vld [vmem:[%s3085_s17 + $0x10] sm:$0xff] (%p2923_p4) }
 0x1ab   : > { %v1289_v32 = vadd.f32 %v2821_v17, %v1288_v37  ;;  %vm1899_vm14 = vweird.f32 %v2825_v34  ;;  %v1904_v53 = vand.u32 2147483648, %v4106_v55  ;;  %v1426_v26 = vadd.f32 1.0, %v2827_v42  ;;  %2154 = vst [vmem:[%s4168_s9] sm:$0xff] (%p2923_p4), %v2153_v35  ;;  %v2165_v42 = vld [vmem:[%s3085_s17 + $0x30] sm:$0xff] (%p2923_p4) }
 0x1ac   : > { %v1661_v43 = vsel %vm1660_vm11, %v2819_v61, %v1657_v38  ;;  %v1896_v47 = vmul.f32 %v2825_v34, %v1895_v52  ;;  %v834_v58 = vadd.f32 1.0, %v2829_v45  ;;  %vm1898_vm15 = vweird.f32 %v4106_v55  ;;  %v2155_v38 = vld [vmem:[%s3085_s17 + $0x8] sm:$0xff] (%p2923_p4)  ;;  %2158 = vst [vmem:[%s4168_s9 + $0x10] sm:$0xff] (%p2923_p4), %v2157_v48  ;;  %v2169_v52 = vld [vmem:[%s3085_s17 + $0x40] sm:$0xff] (%p2923_p4)  ;;  %v2173_v45 = vld [vmem:[%s3085_s17 + $0x50] sm:$0xff] (%p2923_p4) }
 0x1ad   : > { %v1666_v33 = vsel %vm1663_vm8, %v1665_v39, %v1661_v43  ;;  %v1293_v21 = vsel %vm1292_vm13, %v2821_v17, %v1289_v32  ;;  %2834 = vrcp.f32 %v1426_v26  ;;  %vm1900_vm0 = vmor %vm1898_vm15, %vm1899_vm14  ;;  %v1905_v59 = vor.u32 1.1754944e-38, %v1904_v53  ;;  %v2159_v39 = vld [vmem:[%s3085_s17 + $0x18] sm:$0xff] (%p2923_p4)  ;;  %2156 = vst [vmem:[%s4168_s9 + $0x8] sm:$0xff] (%p2923_p4), %v2155_v38  ;;  %v2161_v32 = vld [vmem:[%s3085_s17 + $0x20] sm:$0xff] (%p2923_p4) }
 0x1ae   : > { %2516 = vst.msk [vmem:[%s3085_s17 + $0x170] sm:$0xff] %vm1923_vm3, %v1666_v33  ;;  %v1298_v54 = vsel %vm1295_vm12, %v1297_v40, %v1293_v21  ;;  %v1897_v49 = vadd.f32 %v2825_v34, %v1896_v47  ;;  %2836 = vrcp.f32 %v834_v58  ;;  %vm1903_vm1 = vcmp.eq.f32.partialorder %v1902_v29, 8.507059e+37  ;;  %v2163_v40 = vld [vmem:[%s3085_s17 + $0x28] sm:$0xff] (%p2923_p4)  ;;  %v2167_v43 = vld [vmem:[%s3085_s17 + $0x38] sm:$0xff] (%p2923_p4)  ;;  %v2177_v21 = vld [vmem:[%s3085_s17 + $0x60] sm:$0xff] (%p2923_p4) }
 0x1af   : > { %1954 = vst.msk [vmem:[%s3085_s17 + $0xf0] sm:$0xff] %vm1923_vm3, %v1298_v54  ;;  %v2831_v57 = vpop.eup %2830  ;;  %v1071_v2 = vand.u32 2147483648, %v4124_v28  ;;  %v1069_v51 = vand.u32 2147483647, %v4124_v28  ;;  %vm1065_vm4 = vweird.f32 %v4124_v28  ;;  %v1679_v7 = vand.u32 2147483648, %v1426_v26  ;;  %v2171_v29 = vld [vmem:[%s3085_s17 + $0x48] sm:$0xff] (%p2923_p4) }
 0x1b0   : > { %v1061_v46 = vmul.f32 %v2831_v57, %v4124_v28  ;;  %v2833_v50 = vpop.eup %2832  ;;  %v1901_v41 = vsel %vm1900_vm0, %v2825_v34, %v1897_v49  ;;  %vm1066_vm2 = vweird.f32 %v2831_v57  ;;  %v1677_v63 = vand.u32 2147483647, %v1426_v26  ;;  %2160 = vst [vmem:[%s4168_s9 + $0x18] sm:$0xff] (%p2923_p4), %v2159_v39  ;;  %v2175_v33 = vld [vmem:[%s3085_s17 + $0x58] sm:$0xff] (%p2923_p4)  ;;  %v2179_v53 = vld [vmem:[%s3085_s17 + $0x68] sm:$0xff] (%p2923_p4) }
 0x1b1   : > { %v1906_v44 = vsel %vm1903_vm1, %v1905_v59, %v1901_v41  ;;  %v1442_v3 = vadd.f32 1.0, %v2833_v50  ;;  %vm1067_vm5 = vmor %vm1065_vm4, %vm1066_vm2  ;;  %v1072_v4 = vor.u32 1.1754944e-38, %v1071_v2  ;;  %vm1070_vm6 = vcmp.eq.f32.partialorder %v1069_v51, 8.507059e+37  ;;  %2162 = vst [vmem:[%s4168_s9 + $0x20] sm:$0xff] (%p2923_p4), %v2161_v32  ;;  %v2181_v54 = vld [vmem:[%s3085_s17 + $0x70] sm:$0xff] (%p2923_p4)  ;;  %v2191_v49 = vld [vmem:[%s3085_s17 + $0x98] sm:$0xff] (%p2923_p4) }
 0x1b2   : > { %v1062_v62 = vsub.f32 1.0, %v1061_v46  ;;  %2532 = vst.msk [vmem:[%s3085_s17 + $0x1f0] sm:$0xff] %vm1923_vm3, %v1906_v44  ;;  %v1311_v24 = vand.u32 2147483648, %v834_v58  ;;  %v1309_v6 = vand.u32 2147483647, %v834_v58  ;;  %vm1673_vm9 = vweird.f32 %v1426_v26  ;;  %v2193_v59 = vld [vmem:[%s3085_s17 + $0xa0] sm:$0xff] (%p2923_p4) }
 0x1b3   : > { %v2835_v56 = vpop.eup %2834  ;;  %2838 = vrcp.f32 %v1442_v3  ;;  %v1680_v0 = vor.u32 1.1754944e-38, %v1679_v7  ;;  %vm1305_vm11 = vweird.f32 %v834_v58  ;;  %vm1678_vm12 = vcmp.eq.f32.partialorder %v1677_v63, 8.507059e+37  ;;  %2164 = vst [vmem:[%s4168_s9 + $0x28] sm:$0xff] (%p2923_p4), %v2163_v40  ;;  %v2195_v46 = vld [vmem:[%s3085_s17 + $0xa8] sm:$0xff] (%p2923_p4)  ;;  %v2197_v50 = vld [vmem:[%s3085_s17 + $0xb0] sm:$0xff] (%p2923_p4)  ;;  %v2199_v41 = vld [vmem:[%s3085_s17 + $0xb8] sm:$0xff] (%p2923_p4) }
 0x1b4   : > { %v1063_v1 = vmul.f32 %v2831_v57, %v1062_v62  ;;  %v2837_v60 = vpop.eup %2836  ;;  %v1669_v5 = vmul.f32 %v2835_v56, %v1426_v26  ;;  %vm1674_vm7 = vweird.f32 %v2835_v56  ;;  %v1312_v23 = vor.u32 1.1754944e-38, %v1311_v24  ;;  %2166 = vst [vmem:[%s4168_s9 + $0x30] sm:$0xff] (%p2923_p4), %v2165_v42  ;;  %v2185_v26 = vld [vmem:[%s3085_s17 + $0x80] sm:$0xff] (%p2923_p4)  ;;  %v2203_v62 = vld [vmem:[%s3085_s17 + $0xc8] sm:$0xff] (%p2923_p4)  ;;  %v2205_v2 = vld [vmem:[%s3085_s17 + $0xd0] sm:$0xff] (%p2923_p4) }
 0x1b5   : > { %v1301_v13 = vmul.f32 %v2837_v60, %v834_v58  ;;  %vm1306_vm10 = vweird.f32 %v2837_v60  ;;  %vm1675_vm8 = vmor %vm1673_vm9, %vm1674_vm7  ;;  %vm1310_vm14 = vcmp.eq.f32.partialorder %v1309_v6, 8.507059e+37  ;;  %v1919_v27 = vand.u32 2147483648, %v1442_v3  ;;  %2168 = vst [vmem:[%s4168_s9 + $0x38] sm:$0xff] (%p2923_p4), %v2167_v43  ;;  %v2187_v58 = vld [vmem:[%s3085_s17 + $0x88] sm:$0xff] (%p2923_p4)  ;;  %v2201_v44 = vld [vmem:[%s3085_s17 + $0xc0] sm:$0xff] (%p2923_p4) }
 0x1b6   : > { %v1064_v11 = vadd.f32 %v2831_v57, %v1063_v1  ;;  %v1670_v8 = vsub.f32 1.0, %v1669_v5  ;;  %vm1307_vm13 = vmor %vm1305_vm11, %vm1306_vm10  ;;  %v1917_v10 = vand.u32 2147483647, %v1442_v3  ;;  %vm1913_vm0 = vweird.f32 %v1442_v3  ;;  %2170 = vst [vmem:[%s4168_s9 + $0x40] sm:$0xff] (%p2923_p4), %v2169_v52  ;;  %v2209_v1 = vld [vmem:[%s3085_s17 + $0xe0] sm:$0xff] (%p2923_p4)  ;;  %v2211_v51 = vld [vmem:[%s3085_s17 + $0xe8] sm:$0xff] (%p2923_p4) }
 0x1b7   : > { %v1302_v61 = vsub.f32 1.0, %v1301_v13  ;;  %v1920_v34 = vor.u32 1.1754944e-38, %v1919_v27  ;;  %2172 = vst [vmem:[%s4168_s9 + $0x48] sm:$0xff] (%p2923_p4), %v2171_v29  ;;  %v2219_v5 = vld [vmem:[%s3085_s17 + $0x108] sm:$0xff] (%p2923_p4)  ;;  %v2223_v13 = vld [vmem:[%s3085_s17 + $0x118] sm:$0xff] (%p2923_p4)  ;;  %v2237_v63 = vld [vmem:[%s3085_s17 + $0x150] sm:$0xff] (%p2923_p4) }
 0x1b8   : > { %v1068_v55 = vsel %vm1067_vm5, %v2831_v57, %v1064_v11  ;;  %v1671_v16 = vmul.f32 %v2835_v56, %v1670_v8  ;;  %vm1918_vm2 = vcmp.eq.f32.partialorder %v1917_v10, 8.507059e+37  ;;  %2174 = vst [vmem:[%s4168_s9 + $0x50] sm:$0xff] (%p2923_p4), %v2173_v45  ;;  %v2189_v57 = vld [vmem:[%s3085_s17 + $0x90] sm:$0xff] (%p2923_p4)  ;;  %v2217_v11 = vld [vmem:[%s3085_s17 + $0x100] sm:$0xff] (%p2923_p4)  ;;  %v2227_v8 = vld [vmem:[%s3085_s17 + $0x128] sm:$0xff] (%p2923_p4) }
 0x1b9   : > { %v1073_v14 = vsel %vm1070_vm6, %v1072_v4, %v1068_v55  ;;  %v2839_v17 = vpop.eup %2838  ;;  %v1303_v22 = vmul.f32 %v2837_v60, %v1302_v61  ;;  %2176 = vst [vmem:[%s4168_s9 + $0x58] sm:$0xff] (%p2923_p4), %v2175_v33  ;;  %v2221_v4 = vld [vmem:[%s3085_s17 + $0x110] sm:$0xff] (%p2923_p4)  ;;  %v2225_v55 = vld [vmem:[%s3085_s17 + $0x120] sm:$0xff] (%p2923_p4)  ;;  %v2231_v7 = vld [vmem:[%s3085_s17 + $0x138] sm:$0xff] (%p2923_p4) }
 0x1ba   : > { %1939 = vst.msk [vmem:[%s3085_s17 + $0x78] sm:$0xff] %vm1923_vm3, %v1073_v14  ;;  %v1672_v15 = vadd.f32 %v2835_v56, %v1671_v16  ;;  %v1909_v25 = vmul.f32 %v2839_v17, %v1442_v3  ;;  %vm1914_vm15 = vweird.f32 %v2839_v17  ;;  %v2207_v3 = vld [vmem:[%s3085_s17 + $0xd8] sm:$0xff] (%p2923_p4)  ;;  %v2229_v14 = vld [vmem:[%s3085_s17 + $0x130] sm:$0xff] (%p2923_p4)  ;;  %v2233_v61 = vld [vmem:[%s3085_s17 + $0x140] sm:$0xff] (%p2923_p4) }
 0x1bb   : > { %v1304_v9 = vadd.f32 %v2837_v60, %v1303_v22  ;;  %vm1915_vm1 = vmor %vm1913_vm0, %vm1914_vm15  ;;  %2178 = vst [vmem:[%s4168_s9 + $0x60] sm:$0xff] (%p2923_p4), %v2177_v21  ;;  %v2235_v16 = vld [vmem:[%s3085_s17 + $0x148] sm:$0xff] (%p2923_p4)  ;;  %v2239_v24 = vld [vmem:[%s3085_s17 + $0x158] sm:$0xff] (%p2923_p4) }
 0x1bc   : > { %v1676_v36 = vsel %vm1675_vm8, %v2835_v56, %v1672_v15  ;;  %v1910_v18 = vsub.f32 1.0, %v1909_v25  ;;  %2180 = vst [vmem:[%s4168_s9 + $0x68] sm:$0xff] (%p2923_p4), %v2179_v53  ;;  %v2213_v56 = vld [vmem:[%s3085_s17 + $0xf0] sm:$0xff] (%p2923_p4)  ;;  %v2243_v22 = vld [vmem:[%s3085_s17 + $0x168] sm:$0xff] (%p2923_p4)  ;;  %v2249_v25 = vld [vmem:[%s3085_s17 + $0x180] sm:$0xff] (%p2923_p4) }
 0x1bd   : > { %v1681_v12 = vsel %vm1678_vm12, %v1680_v0, %v1676_v36  ;;  %v1308_v30 = vsel %vm1307_vm13, %v2837_v60, %v1304_v9  ;;  %2182 = vst [vmem:[%s4168_s9 + $0x70] sm:$0xff] (%p2923_p4), %v2181_v54  ;;  %v2245_v6 = vld [vmem:[%s3085_s17 + $0x170] sm:$0xff] (%p2923_p4)  ;;  %v2251_v0 = vld [vmem:[%s3085_s17 + $0x188] sm:$0xff] (%p2923_p4)  ;;  %v2255_v36 = vld [vmem:[%s3085_s17 + $0x198] sm:$0xff] (%p2923_p4) }
 0x1be   : > { %2517 = vst.msk [vmem:[%s3085_s17 + $0x178] sm:$0xff] %vm1923_vm3, %v1681_v12  ;;  %v1313_v20 = vsel %vm1310_vm14, %v1312_v23, %v1308_v30  ;;  %v1911_v19 = vmul.f32 %v2839_v17, %v1910_v18  ;;  %v2253_v9 = vld [vmem:[%s3085_s17 + $0x190] sm:$0xff] (%p2923_p4)  ;;  %v2257_v23 = vld [vmem:[%s3085_s17 + $0x1a0] sm:$0xff] (%p2923_p4)  ;;  %v2259_v18 = vld [vmem:[%s3085_s17 + $0x1a8] sm:$0xff] (%p2923_p4) }
 0x1bf   : > { %1955 = vst.msk [vmem:[%s3085_s17 + $0xf8] sm:$0xff] %vm1923_vm3, %v1313_v20  ;;  %v2261_v12 = vld [vmem:[%s3085_s17 + $0x1b0] sm:$0xff] (%p2923_p4)  ;;  %v2263_v30 = vld [vmem:[%s3085_s17 + $0x1b8] sm:$0xff] (%p2923_p4)  ;;  %v2265_v27 = vld [vmem:[%s3085_s17 + $0x1c0] sm:$0xff] (%p2923_p4) }
 0x1c0   : > { %v1912_v28 = vadd.f32 %v2839_v17, %v1911_v19  ;;  %1995 = sbr.rel (!%p2923_p4) target bundleno = 498 (0x1f2), region = 44  ;;  %2186 = vst [vmem:[%s4168_s9 + $0x80] sm:$0xff] (%p2923_p4), %v2185_v26  ;;  %v2267_v20 = vld [vmem:[%s3085_s17 + $0x1c8] sm:$0xff] (%p2923_p4)  ;;  %v2269_v19 = vld [vmem:[%s3085_s17 + $0x1d0] sm:$0xff] (%p2923_p4)  ;;  %v2271_v10 = vld [vmem:[%s3085_s17 + $0x1d8] sm:$0xff] (%p2923_p4) }
 0x1c1   : > { %v2183_v47 = vld [vmem:[%s3085_s17 + $0x78] sm:$0xff] (%p2923_p4)  ;;  %2188 = vst [vmem:[%s4168_s9 + $0x88] sm:$0xff] (%p2923_p4), %v2187_v58 }
 0x1c2   : > { %v1916_v31 = vsel %vm1915_vm1, %v2839_v17, %v1912_v28  ;;  %2184 = vst [vmem:[%s4168_s9 + $0x78] sm:$0xff] (%p2923_p4), %v2183_v47  ;;  %v2241_v17 = vld [vmem:[%s3085_s17 + $0x160] sm:$0xff] (%p2923_p4) }
 0x1c3   : > { %v1921_v37 = vsel %vm1918_vm2, %v1920_v34, %v1916_v31  ;;  %2190 = vst [vmem:[%s4168_s9 + $0x90] sm:$0xff] (%p2923_p4), %v2189_v57  ;;  %v2273_v28 = vld [vmem:[%s3085_s17 + $0x1e0] sm:$0xff] (%p2923_p4)  ;;  %v2275_v34 = vld [vmem:[%s3085_s17 + $0x1e8] sm:$0xff] (%p2923_p4)  ;;  %v2277_v31 = vld [vmem:[%s3085_s17 + $0x1f0] sm:$0xff] (%p2923_p4) }
 0x1c4   : > { %2533 = vst.msk [vmem:[%s3085_s17 + $0x1f8] sm:$0xff] %vm1923_vm3, %v1921_v37 }
 0x1c5   : > { %2192 = vst [vmem:[%s4168_s9 + $0x98] sm:$0xff] %v2191_v49  ;;  %v2247_v15 = vld [vmem:[%s3085_s17 + $0x178] sm:$0xff] }
 0x1c6   : > { %2194 = vst [vmem:[%s4168_s9 + $0xa0] sm:$0xff] %v2193_v59  ;;  %v2215_v60 = vld [vmem:[%s3085_s17 + $0xf8] sm:$0xff] }
 0x1c7   : > { %2196 = vst [vmem:[%s4168_s9 + $0xa8] sm:$0xff] %v2195_v46 }
 0x1c8   : > { %2198 = vst [vmem:[%s4168_s9 + $0xb0] sm:$0xff] %v2197_v50 }
 0x1c9   : > { %2200 = vst [vmem:[%s4168_s9 + $0xb8] sm:$0xff] %v2199_v41 }
 0x1ca   : > { %2202 = vst [vmem:[%s4168_s9 + $0xc0] sm:$0xff] %v2201_v44 }
 0x1cb   : > { %2204 = vst [vmem:[%s4168_s9 + $0xc8] sm:$0xff] %v2203_v62  ;;  %v2279_v37 = vld [vmem:[%s3085_s17 + $0x1f8] sm:$0xff] }
 0x1cc   : > { %2206 = vst [vmem:[%s4168_s9 + $0xd0] sm:$0xff] %v2205_v2 }
 0x1cd   : > { %2208 = vst [vmem:[%s4168_s9 + $0xd8] sm:$0xff] %v2207_v3 }
 0x1ce   : > { %2210 = vst [vmem:[%s4168_s9 + $0xe0] sm:$0xff] %v2209_v1 }
 0x1cf   : > { %2212 = vst [vmem:[%s4168_s9 + $0xe8] sm:$0xff] %v2211_v51 }
 0x1d0   : > { %2214 = vst [vmem:[%s4168_s9 + $0xf0] sm:$0xff] %v2213_v56 }
 0x1d1   : > { %2216 = vst [vmem:[%s4168_s9 + $0xf8] sm:$0xff] %v2215_v60 }
 0x1d2   : > { %2218 = vst [vmem:[%s4168_s9 + $0x200] sm:$0xff] %v2217_v11 }
 0x1d3   : > { %2220 = vst [vmem:[%s4168_s9 + $0x208] sm:$0xff] %v2219_v5 }
 0x1d4   : > { %2222 = vst [vmem:[%s4168_s9 + $0x210] sm:$0xff] %v2221_v4 }
 0x1d5   : > { %2224 = vst [vmem:[%s4168_s9 + $0x218] sm:$0xff] %v2223_v13 }
 0x1d6   : > { %2226 = vst [vmem:[%s4168_s9 + $0x220] sm:$0xff] %v2225_v55 }
 0x1d7   : > { %2228 = vst [vmem:[%s4168_s9 + $0x228] sm:$0xff] %v2227_v8 }
 0x1d8   : > { %2230 = vst [vmem:[%s4168_s9 + $0x230] sm:$0xff] %v2229_v14 }
 0x1d9   : > { %2232 = vst [vmem:[%s4168_s9 + $0x238] sm:$0xff] %v2231_v7 }
 0x1da   : > { %2234 = vst [vmem:[%s4168_s9 + $0x240] sm:$0xff] %v2233_v61 }
 0x1db   : > { %2236 = vst [vmem:[%s4168_s9 + $0x248] sm:$0xff] %v2235_v16 }
 0x1dc   : > { %2238 = vst [vmem:[%s4168_s9 + $0x250] sm:$0xff] %v2237_v63 }
 0x1dd   : > { %2240 = vst [vmem:[%s4168_s9 + $0x258] sm:$0xff] %v2239_v24 }
 0x1de   : > { %2242 = vst [vmem:[%s4168_s9 + $0x260] sm:$0xff] %v2241_v17 }
 0x1df   : > { %2244 = vst [vmem:[%s4168_s9 + $0x268] sm:$0xff] %v2243_v22 }
 0x1e0   : > { %2246 = vst [vmem:[%s4168_s9 + $0x270] sm:$0xff] %v2245_v6 }
 0x1e1   : > { %2248 = vst [vmem:[%s4168_s9 + $0x278] sm:$0xff] %v2247_v15 }
 0x1e2   : > { %2250 = vst [vmem:[%s4168_s9 + $0x280] sm:$0xff] %v2249_v25 }
 0x1e3   : > { %2252 = vst [vmem:[%s4168_s9 + $0x288] sm:$0xff] %v2251_v0 }
 0x1e4   : > { %2254 = vst [vmem:[%s4168_s9 + $0x290] sm:$0xff] %v2253_v9 }
 0x1e5   : > { %2256 = vst [vmem:[%s4168_s9 + $0x298] sm:$0xff] %v2255_v36 }
 0x1e6   : > { %2258 = vst [vmem:[%s4168_s9 + $0x2a0] sm:$0xff] %v2257_v23 }
 0x1e7   : > { %2260 = vst [vmem:[%s4168_s9 + $0x2a8] sm:$0xff] %v2259_v18 }
 0x1e8   : > { %2262 = vst [vmem:[%s4168_s9 + $0x2b0] sm:$0xff] %v2261_v12 }
 0x1e9   : > { %2264 = vst [vmem:[%s4168_s9 + $0x2b8] sm:$0xff] %v2263_v30 }
 0x1ea   : > { %2266 = vst [vmem:[%s4168_s9 + $0x2c0] sm:$0xff] %v2265_v27 }
 0x1eb   : > { %2268 = vst [vmem:[%s4168_s9 + $0x2c8] sm:$0xff] %v2267_v20 }
 0x1ec   : > { %2270 = vst [vmem:[%s4168_s9 + $0x2d0] sm:$0xff] %v2269_v19 }
 0x1ed   : > { %2272 = vst [vmem:[%s4168_s9 + $0x2d8] sm:$0xff] %v2271_v10 }
 0x1ee   : > { %2274 = vst [vmem:[%s4168_s9 + $0x2e0] sm:$0xff] %v2273_v28 }
 0x1ef   : > { %2276 = vst [vmem:[%s4168_s9 + $0x2e8] sm:$0xff] %v2275_v34 }
 0x1f0   : > { %2278 = vst [vmem:[%s4168_s9 + $0x2f0] sm:$0xff] %v2277_v31 }
 0x1f1   : > { %2280 = vst [vmem:[%s4168_s9 + $0x2f8] sm:$0xff] %v2279_v37 }
 0x1f2 PF: > { %p12_p8 = scmp.ge.s32.totalorder %s2913_s22, 4   ;;  %s4407_s18 = smov %s2862_s19 }
 0x1f3   : > { %s4408_s19 = smov %s2921_s25  ;;  %s4409_s20 = smov %s2913_s22 }
 0x1f4   :  { %14 = sbr.rel (!%p12_p8) target bundleno = 2 (0x2), region = 109 }

</bundles_post_ra>
